<compile_context>
chip_gen: v6e
topology: v6e:2x2x1
jax: 0.10.0
libtpu: 0.0.40
codegen_flags: <defaults>
</compile_context>

<pallas_src>
import functools

import numpy as np
import jax
import jax.numpy as jnp
from jax.experimental import pallas as pl
from jax.experimental.pallas import tpu as pltpu


def _round_up(n, m):
    return ((n + m - 1) // m) * m


def stitch_kernel(x_ref, wb_ref, bias_ref, wst_ref, wht_ref, pool_ref,
                  out_ref, tap_ref, *, wp):
    """One block of TB lane-concatenated images per grid step."""
    cb = wb_ref.shape[0]                        # backbone channels
    ch = wst_ref.shape[0]                       # stitch output dim
    nc = wht_ref.shape[0]                       # num classes

    x = x_ref[0].astype(jnp.float32)            # (Cin, W), W = TB*Npp
    cin, wl = x.shape

    # Build the 27-row im2col slab in VMEM: row 3*t + c holds input plane c
    # shifted by tap offset off_t (XLU lane rolls, no HBM patch expansion).
    # Roll wrap-around / cross-image leakage only lands at positions the pool
    # matrix zeroes, because every kept (interior) position reads strictly
    # inside its own image's real padded data.
    for t in range(9):
        kh, kw = divmod(t, 3)
        off = (kh - 1) * wp + (kw - 1)          # flat-index shift of this tap
        tap = x if off == 0 else pltpu.roll(x, shift=(-off) % wl, axis=1)
        tap_ref[pl.ds(t * cin, cin), :] = tap

    # Conv: ONE (Cb, 27) @ (27, W) bf16 MXU matmul, f32 accumulation.
    acc = jnp.dot(wb_ref[...], tap_ref[...].astype(jnp.bfloat16),
                  preferred_element_type=jnp.float32)            # (Cb, W)
    feat = jnp.maximum(acc + bias_ref[0:cb, :], 0.0)             # bias + ReLU

    # Masked global-average pool folded into one dot: (Cb, W)@(W, TB) -> (Cb, TB).
    pooled = jnp.dot(feat, pool_ref[...], preferred_element_type=jnp.float32)

    # Batch-wide stitch and head matmuls (TB images on the lane axis).
    stitched = jnp.dot(wst_ref[...], pooled,
                       preferred_element_type=jnp.float32) + bias_ref[cb:cb + ch, :]
    logits = jnp.dot(wht_ref[...], stitched,
                     preferred_element_type=jnp.float32) + bias_ref[cb + ch:cb + ch + nc, :]

    out_ref[0] = logits                          # (nc, TB) lane-dense store


def stitch_model_forward(x_nchw, params, *, block_batch=16):
    """x_nchw: (B, Cin, H, W) float32 -> logits (B, num_classes)."""
    wbt, bbc, wst, bst, wht, bht = params
    b, cin, h, w = x_nchw.shape
    hp, wp = h + 2, w + 2
    n_flat = hp * wp
    # Per-image lane-padded length; tail >= wp+1 so no tap ever needs data past
    # its own image's real region (interior positions read only real data).
    npp = _round_up(n_flat + wp + 1, 128)
    cb, ch, nc = wbt.shape[1], wst.shape[0], wht.shape[0]

    # TB images per grid step; keep >= 2 grid blocks so both v7x TCs get work.
    tb = max(1, min(block_batch, (b + 1) // 2))
    nb = pl.cdiv(b, tb)
    bp = nb * tb
    wlane = tb * npp                             # lane width of one block

    # Zero-pad each image (conv halo), flatten, pad batch, lane-concatenate TB
    # images per block -> (nb, Cin, TB*Npp), stored bf16 (halves x HBM bytes).
    xp = jnp.pad(x_nchw, ((0, bp - b), (0, 0), (1, 1), (1, 1)))
    xflat = jnp.pad(xp.reshape(bp, cin, n_flat),
                    ((0, 0), (0, 0), (0, npp - n_flat)))
    xg = (xflat.reshape(nb, tb, cin, npp)
               .transpose(0, 2, 1, 3)
               .reshape(nb, cin, wlane)
               .astype(jnp.bfloat16))

    # Conv weight as a single (Cb, 27) bf16 matrix, column index = tap*Cin + cin.
    wb27 = jnp.transpose(wbt, (1, 0, 2)).reshape(cb, 9 * cin).astype(jnp.bfloat16)

    # Single fused bias buffer: [conv bias | stitch bias | head bias] (f32).
    biases = jnp.concatenate([bbc, bst, bht], axis=0)            # (Cb+Ch+nc, 1)

    # Block-diagonal pool matrix: column t averages the interior (valid conv
    # output) positions of image t in the block; 1/(H*W) scale folded in.
    m2d = np.zeros((hp, wp), np.float32)
    m2d[1:h + 1, 1:w + 1] = 1.0 / (h * w)
    mvec = np.zeros((npp,), np.float32)
    mvec[:n_flat] = m2d.reshape(-1)
    poolmat_np = np.zeros((wlane, tb), np.float32)
    for t in range(tb):
        poolmat_np[t * npp:(t + 1) * npp, t] = mvec
    poolmat = jnp.asarray(poolmat_np)

    kernel = functools.partial(stitch_kernel, wp=wp)

    flops = nb * (2 * cb * 9 * cin * wlane + 3 * cb * wlane
                  + 2 * cb * wlane * tb + 2 * ch * cb * tb + 2 * nc * ch * tb)
    bytes_accessed = (2 * nb * cin * wlane + 4 * wlane * tb
                      + 2 * cb * 9 * cin
                      + 4 * (cb + ch + nc + ch * cb + nc * ch)
                      + 4 * nb * nc * tb)

    # Only raise the scoped-VMEM limit if a large TB actually needs it; leave
    # headroom under v7x's 64 MiB physical VMEM (v5e/v6e have 128 MiB).
    vmem_est = (2 * cin * wlane * 2 + 9 * cin * wlane * 4 + 2 * cb * wlane * 4
                + wlane * tb * 4 + (2 << 20))
    vmem_limit = None if vmem_est <= (24 << 20) else min(2 * vmem_est, 56 << 20)

    out = pl.pallas_call(
        kernel,
        out_shape=jax.ShapeDtypeStruct((nb, nc, tb), jnp.float32),
        grid=(nb,),
        in_specs=[
            pl.BlockSpec((1, cin, wlane), lambda i: (i, 0, 0)),    # TB images / step
            pl.BlockSpec((cb, 9 * cin), lambda i: (0, 0)),         # conv weight (bf16)
            pl.BlockSpec((cb + ch + nc, 1), lambda i: (0, 0)),     # fused biases
            pl.BlockSpec((ch, cb), lambda i: (0, 0)),              # stitch weight
            pl.BlockSpec((nc, ch), lambda i: (0, 0)),              # head weight
            pl.BlockSpec((wlane, tb), lambda i: (0, 0)),           # pool matrix
        ],
        out_specs=pl.BlockSpec((1, nc, tb), lambda i: (i, 0, 0)),  # lane-dense (nc, TB)
        scratch_shapes=[pltpu.VMEM((9 * cin, wlane), jnp.float32)],
        compiler_params=pltpu.CompilerParams(
            dimension_semantics=("parallel",),
            vmem_limit_bytes=vmem_limit),
        cost_estimate=pl.CostEstimate(flops=flops, transcendentals=0,
                                      bytes_accessed=bytes_accessed),
    )(xg, wb27, biases, wst, wht, poolmat)

    # (nb, nc, TB) -> (B, num_classes)
    return jnp.transpose(out, (0, 2, 1)).reshape(bp, nc)[:b]


def reference_forward(x_nchw, params):
    """Pure-JAX reference mirroring the kernel's numerics (bf16 conv operands,
    f32 accumulation; bias/ReLU/pool/stitch/head in f32)."""
    wbt, bbc, wst, bst, wht, bht = params
    b, cin, h, w = x_nchw.shape
    x_nhwc = jnp.transpose(x_nchw, (0, 2, 3, 1)).astype(jnp.bfloat16)
    xp = jnp.pad(x_nhwc, ((0, 0), (1, 1), (1, 1), (0, 0)))
    taps = [xp[:, kh:kh + h, kw:kw + w, :] for kh in range(3) for kw in range(3)]
    patches = jnp.stack(taps, axis=3)                            # (B,H,W,9,Cin) bf16
    feat = jnp.einsum("bhwtc,toc->bhwo", patches, wbt.astype(jnp.bfloat16),
                      preferred_element_type=jnp.float32) + bbc[:, 0]
    feat = jnp.maximum(feat, 0.0)
    pooled = feat.mean(axis=(1, 2))                              # (B, Cb)
    stitched = pooled @ wst.T + bst[:, 0]
    logits = stitched @ wht.T + bht[:, 0]
    return logits


def make_params(key, cin=3, cb=16, ch=32, num_classes=10):
    k1, k2, k3, k4, k5, k6 = jax.random.split(key, 6)
    # backbone 3x3 conv, stored tap-major (9, Cout, Cin), t = kh*3 + kw
    # (== PyTorch conv weight (Cout, Cin, 3, 3) transposed to (kh, kw, Cout, Cin))
    wbt = jax.random.normal(k1, (9, cb, cin), jnp.float32) * 0.1
    bbc = jax.random.normal(k2, (cb, 1), jnp.float32) * 0.1
    # stitch Linear(cb -> ch): PyTorch nn.Linear (out_features, in_features) layout
    wst = jax.random.normal(k3, (ch, cb), jnp.float32) * 0.1
    bst = jax.random.normal(k4, (ch, 1), jnp.float32) * 0.1
    # head classifier Linear(ch -> num_classes)
    wht = jax.random.normal(k5, (num_classes, ch), jnp.float32) * 0.1
    bht = jax.random.normal(k6, (num_classes, 1), jnp.float32) * 0.1
    return wbt, bbc, wst, bst, wht, bht


if __name__ == "__main__":
    key = jax.random.PRNGKey(0)
    kx, kp = jax.random.split(key)

    B, Cin, H, W = 8, 3, 32, 32
    x = jax.random.normal(kx, (B, Cin, H, W), jnp.float32)
    params = make_params(kp)

    fwd = jax.jit(functools.partial(stitch_model_forward, block_batch=16))
    out = jax.block_until_ready(fwd(x, params))

    ref = reference_forward(x, params)
    assert out.shape == (B, 10)
    assert jnp.allclose(out, ref, atol=2e-3, rtol=2e-3), "mismatch vs reference"

    print("KERNEL_OK")
</pallas_src>

<mosaic_0001>
module attributes {stable_mosaic.version = 11 : i64} {
  func.func @stitch_kernel(%arg0: i32, %arg1: memref<1x3x5120xbf16, #tpu.memory_space<vmem>>, %arg2: memref<16x27xbf16, #tpu.memory_space<vmem>>, %arg3: memref<58x1xf32, #tpu.memory_space<vmem>>, %arg4: memref<32x16xf32, #tpu.memory_space<vmem>>, %arg5: memref<10x32xf32, #tpu.memory_space<vmem>>, %arg6: memref<5120x4xf32, #tpu.memory_space<vmem>>, %arg7: memref<1x10x4xf32, #tpu.memory_space<vmem>>, %arg8: memref<27x5120xf32, #tpu.memory_space<vmem>>) attributes {dimension_semantics = [#tpu.dimension_semantics<parallel>], iteration_bounds = array<i64: 2>, scalar_prefetch = 0 : i64, scratch_operands = 1 : i64, tpu.core_type = #tpu.core_type<tc>, window_params = [{transform_indices = @transform_0, window_bounds = array<i64: 1, 3, 5120>}, {pipeline_mode = #tpu.pipeline_mode<synchronous>, transform_indices = @transform_1, window_bounds = array<i64: 16, 27>}, {pipeline_mode = #tpu.pipeline_mode<synchronous>, transform_indices = @transform_2, window_bounds = array<i64: 58, 1>}, {pipeline_mode = #tpu.pipeline_mode<synchronous>, transform_indices = @transform_3, window_bounds = array<i64: 32, 16>}, {pipeline_mode = #tpu.pipeline_mode<synchronous>, transform_indices = @transform_4, window_bounds = array<i64: 10, 32>}, {pipeline_mode = #tpu.pipeline_mode<synchronous>, transform_indices = @transform_5, window_bounds = array<i64: 5120, 4>}, {transform_indices = @transform_6, window_bounds = array<i64: 1, 10, 4>}]} {
    %c0 = arith.constant 0 : index
    %c0_0 = arith.constant 0 : index
    %c0_1 = arith.constant 0 : index
    %0 = vector.load %arg1[%c0, %c0_0, %c0_1] : memref<1x3x5120xbf16, #tpu.memory_space<vmem>>, vector<1x3x5120xbf16>
    %1 = vector.shape_cast %0 : vector<1x3x5120xbf16> to vector<3x5120xbf16>
    %2 = arith.extf %1 : vector<3x5120xbf16> to vector<3x5120xf32>
    %c35_i32 = arith.constant 35 : i32
    %3 = tpu.dynamic_rotate %2 by %c35_i32 dim 1 : vector<3x5120xf32>, i32 -> vector<3x5120xf32>
    %c0_2 = arith.constant 0 : index
    %c0_3 = arith.constant 0 : index
    %4 = vector.load %arg8[%c0_2, %c0_3] : memref<27x5120xf32, #tpu.memory_space<vmem>>, vector<3x5120xf32>
    tpu.vector_store %arg8[%c0_2, %c0_3], %3 {strides = array<i32>} : memref<27x5120xf32, #tpu.memory_space<vmem>>, vector<3x5120xf32>,
    %c34_i32 = arith.constant 34 : i32
    %5 = tpu.dynamic_rotate %2 by %c34_i32 dim 1 : vector<3x5120xf32>, i32 -> vector<3x5120xf32>
    %c3 = arith.constant 3 : index
    %c0_4 = arith.constant 0 : index
    %6 = vector.load %arg8[%c3, %c0_4] : memref<27x5120xf32, #tpu.memory_space<vmem>>, vector<3x5120xf32>
    tpu.vector_store %arg8[%c3, %c0_4], %5 {strides = array<i32>} : memref<27x5120xf32, #tpu.memory_space<vmem>>, vector<3x5120xf32>,
    %c33_i32 = arith.constant 33 : i32
    %7 = tpu.dynamic_rotate %2 by %c33_i32 dim 1 : vector<3x5120xf32>, i32 -> vector<3x5120xf32>
    %c6 = arith.constant 6 : index
    %c0_5 = arith.constant 0 : index
    %8 = vector.load %arg8[%c6, %c0_5] : memref<27x5120xf32, #tpu.memory_space<vmem>>, vector<3x5120xf32>
    tpu.vector_store %arg8[%c6, %c0_5], %7 {strides = array<i32>} : memref<27x5120xf32, #tpu.memory_space<vmem>>, vector<3x5120xf32>,
    %c1_i32 = arith.constant 1 : i32
    %9 = tpu.dynamic_rotate %2 by %c1_i32 dim 1 : vector<3x5120xf32>, i32 -> vector<3x5120xf32>
    %c9 = arith.constant 9 : index
    %c0_6 = arith.constant 0 : index
    %10 = vector.load %arg8[%c9, %c0_6] : memref<27x5120xf32, #tpu.memory_space<vmem>>, vector<3x5120xf32>
    tpu.vector_store %arg8[%c9, %c0_6], %9 {strides = array<i32>} : memref<27x5120xf32, #tpu.memory_space<vmem>>, vector<3x5120xf32>,
    %c12 = arith.constant 12 : index
    %c0_7 = arith.constant 0 : index
    %11 = vector.load %arg8[%c12, %c0_7] : memref<27x5120xf32, #tpu.memory_space<vmem>>, vector<3x5120xf32>
    tpu.vector_store %arg8[%c12, %c0_7], %2 {strides = array<i32>} : memref<27x5120xf32, #tpu.memory_space<vmem>>, vector<3x5120xf32>,
    %c5119_i32 = arith.constant 5119 : i32
    %12 = tpu.dynamic_rotate %2 by %c5119_i32 dim 1 : vector<3x5120xf32>, i32 -> vector<3x5120xf32>
    %c15 = arith.constant 15 : index
    %c0_8 = arith.constant 0 : index
    %13 = vector.load %arg8[%c15, %c0_8] : memref<27x5120xf32, #tpu.memory_space<vmem>>, vector<3x5120xf32>
    tpu.vector_store %arg8[%c15, %c0_8], %12 {strides = array<i32>} : memref<27x5120xf32, #tpu.memory_space<vmem>>, vector<3x5120xf32>,
    %c5087_i32 = arith.constant 5087 : i32
    %14 = tpu.dynamic_rotate %2 by %c5087_i32 dim 1 : vector<3x5120xf32>, i32 -> vector<3x5120xf32>
    %c18 = arith.constant 18 : index
    %c0_9 = arith.constant 0 : index
    %15 = vector.load %arg8[%c18, %c0_9] : memref<27x5120xf32, #tpu.memory_space<vmem>>, vector<3x5120xf32>
    tpu.vector_store %arg8[%c18, %c0_9], %14 {strides = array<i32>} : memref<27x5120xf32, #tpu.memory_space<vmem>>, vector<3x5120xf32>,
    %c5086_i32 = arith.constant 5086 : i32
    %16 = tpu.dynamic_rotate %2 by %c5086_i32 dim 1 : vector<3x5120xf32>, i32 -> vector<3x5120xf32>
    %c21 = arith.constant 21 : index
    %c0_10 = arith.constant 0 : index
    %17 = vector.load %arg8[%c21, %c0_10] : memref<27x5120xf32, #tpu.memory_space<vmem>>, vector<3x5120xf32>
    tpu.vector_store %arg8[%c21, %c0_10], %16 {strides = array<i32>} : memref<27x5120xf32, #tpu.memory_space<vmem>>, vector<3x5120xf32>,
    %c5085_i32 = arith.constant 5085 : i32
    %18 = tpu.dynamic_rotate %2 by %c5085_i32 dim 1 : vector<3x5120xf32>, i32 -> vector<3x5120xf32>
    %c24 = arith.constant 24 : index
    %c0_11 = arith.constant 0 : index
    %19 = vector.load %arg8[%c24, %c0_11] : memref<27x5120xf32, #tpu.memory_space<vmem>>, vector<3x5120xf32>
    tpu.vector_store %arg8[%c24, %c0_11], %18 {strides = array<i32>} : memref<27x5120xf32, #tpu.memory_space<vmem>>, vector<3x5120xf32>,
    %c0_12 = arith.constant 0 : index
    %c0_13 = arith.constant 0 : index
    %20 = vector.load %arg2[%c0_12, %c0_13] : memref<16x27xbf16, #tpu.memory_space<vmem>>, vector<16x27xbf16>
    %c0_14 = arith.constant 0 : index
    %c0_15 = arith.constant 0 : index
    %21 = vector.load %arg8[%c0_14, %c0_15] : memref<27x5120xf32, #tpu.memory_space<vmem>>, vector<27x5120xf32>
    %22 = arith.truncf %21 : vector<27x5120xf32> to vector<27x5120xbf16>
    %cst = arith.constant dense<0.000000e+00> : vector<16x5120xf32>
    %23 = tpu.matmul %20, %22, %cst {dimension_numbers = #tpu.dot_dimension_numbers<[1], [0], [0], [1], [0, 0, 1, 1], [], []>} : vector<16x27xbf16>, vector<27x5120xbf16>, vector<16x5120xf32> -> vector<16x5120xf32>
    %c0_16 = arith.constant 0 : index
    %c0_17 = arith.constant 0 : index
    %24 = vector.load %arg3[%c0_16, %c0_17] : memref<58x1xf32, #tpu.memory_space<vmem>>, vector<16x1xf32>
    %25 = vector.broadcast %24 : vector<16x1xf32> to vector<16x5120xf32>
    %26 = arith.addf %23, %25 : vector<16x5120xf32>
    %cst_18 = arith.constant 0.000000e+00 : f32
    %27 = vector.broadcast %cst_18 : f32 to vector<16x5120xf32>
    %28 = arith.maximumf %26, %27 : vector<16x5120xf32>
    %c0_19 = arith.constant 0 : index
    %c0_20 = arith.constant 0 : index
    %29 = vector.load %arg6[%c0_19, %c0_20] : memref<5120x4xf32, #tpu.memory_space<vmem>>, vector<5120x4xf32>
    %cst_21 = arith.constant dense<0.000000e+00> : vector<16x4xf32>
    %30 = tpu.matmul %28, %29, %cst_21 {dimension_numbers = #tpu.dot_dimension_numbers<[1], [0], [0], [1], [0, 0, 1, 1], [], []>} : vector<16x5120xf32>, vector<5120x4xf32>, vector<16x4xf32> -> vector<16x4xf32>
    %c0_22 = arith.constant 0 : index
    %c0_23 = arith.constant 0 : index
    %31 = vector.load %arg4[%c0_22, %c0_23] : memref<32x16xf32, #tpu.memory_space<vmem>>, vector<32x16xf32>
    %cst_24 = arith.constant dense<0.000000e+00> : vector<32x4xf32>
    %32 = tpu.matmul %31, %30, %cst_24 {dimension_numbers = #tpu.dot_dimension_numbers<[1], [0], [0], [1], [0, 0, 1, 1], [], []>} : vector<32x16xf32>, vector<16x4xf32>, vector<32x4xf32> -> vector<32x4xf32>
    %c16 = arith.constant 16 : index
    %c0_25 = arith.constant 0 : index
    %33 = vector.load %arg3[%c16, %c0_25] : memref<58x1xf32, #tpu.memory_space<vmem>>, vector<32x1xf32>
    %34 = vector.broadcast %33 : vector<32x1xf32> to vector<32x4xf32>
    %35 = arith.addf %32, %34 : vector<32x4xf32>
    %c0_26 = arith.constant 0 : index
    %c0_27 = arith.constant 0 : index
    %36 = vector.load %arg5[%c0_26, %c0_27] : memref<10x32xf32, #tpu.memory_space<vmem>>, vector<10x32xf32>
    %cst_28 = arith.constant dense<0.000000e+00> : vector<10x4xf32>
    %37 = tpu.matmul %36, %35, %cst_28 {dimension_numbers = #tpu.dot_dimension_numbers<[1], [0], [0], [1], [0, 0, 1, 1], [], []>} : vector<10x32xf32>, vector<32x4xf32>, vector<10x4xf32> -> vector<10x4xf32>
    %c48 = arith.constant 48 : index
    %c0_29 = arith.constant 0 : index
    %38 = vector.load %arg3[%c48, %c0_29] : memref<58x1xf32, #tpu.memory_space<vmem>>, vector<10x1xf32>
    %39 = vector.broadcast %38 : vector<10x1xf32> to vector<10x4xf32>
    %40 = arith.addf %37, %39 : vector<10x4xf32>
    %c0_30 = arith.constant 0 : index
    %c0_31 = arith.constant 0 : index
    %c0_32 = arith.constant 0 : index
    %41 = vector.load %arg7[%c0_30, %c0_31, %c0_32] : memref<1x10x4xf32, #tpu.memory_space<vmem>>, vector<1x10x4xf32>
    %42 = vector.shape_cast %41 : vector<1x10x4xf32> to vector<10x4xf32>
    %43 = vector.shape_cast %40 : vector<10x4xf32> to vector<1x10x4xf32>
    tpu.vector_store %arg7[%c0_30, %c0_31, %c0_32], %43 {strides = array<i32>} : memref<1x10x4xf32, #tpu.memory_space<vmem>>, vector<1x10x4xf32>,
    return
  }
  func.func @transform_0(%arg0: i32) -> (i32, i32, i32) {
    %c0_i32 = arith.constant 0 : i32
    %c0_i32_0 = arith.constant 0 : i32
    %c0_i32_1 = arith.constant 0 : i32
    return %arg0, %c0_i32, %c0_i32_0 : i32, i32, i32
  }
  func.func @transform_1(%arg0: i32) -> (i32, i32) {
    %c0_i32 = arith.constant 0 : i32
    %c0_i32_0 = arith.constant 0 : i32
    %c0_i32_1 = arith.constant 0 : i32
    return %c0_i32, %c0_i32_0 : i32, i32
  }
  func.func @transform_2(%arg0: i32) -> (i32, i32) {
    %c0_i32 = arith.constant 0 : i32
    %c0_i32_0 = arith.constant 0 : i32
    %c0_i32_1 = arith.constant 0 : i32
    return %c0_i32, %c0_i32_0 : i32, i32
  }
  func.func @transform_3(%arg0: i32) -> (i32, i32) {
    %c0_i32 = arith.constant 0 : i32
    %c0_i32_0 = arith.constant 0 : i32
    %c0_i32_1 = arith.constant 0 : i32
    return %c0_i32, %c0_i32_0 : i32, i32
  }
  func.func @transform_4(%arg0: i32) -> (i32, i32) {
    %c0_i32 = arith.constant 0 : i32
    %c0_i32_0 = arith.constant 0 : i32
    %c0_i32_1 = arith.constant 0 : i32
    return %c0_i32, %c0_i32_0 : i32, i32
  }
  func.func @transform_5(%arg0: i32) -> (i32, i32) {
    %c0_i32 = arith.constant 0 : i32
    %c0_i32_0 = arith.constant 0 : i32
    %c0_i32_1 = arith.constant 0 : i32
    return %c0_i32, %c0_i32_0 : i32, i32
  }
  func.func @transform_6(%arg0: i32) -> (i32, i32, i32) {
    %c0_i32 = arith.constant 0 : i32
    %c0_i32_0 = arith.constant 0 : i32
    %c0_i32_1 = arith.constant 0 : i32
    return %arg0, %c0_i32, %c0_i32_0 : i32, i32, i32
  }
}

</mosaic_0001>

<bundles_post_ra>
// kernel: stitch_model_forward.1
= control target key start
LH: loop header
LB: loop body
LE: loop exit
PB: predicated region body
PF: predicated region fallthrough
CT: control target
= control target key end

     0   :  { %11 = vsyncpa [#allocation4], 0  ;;  %s10649_s0 = inlined_call_operand.vmem [shape: bf16[2,3,5120], index: 0, kind: input, shape index: {}]   ;;  %s10650_s1 = inlined_call_operand.vmem [shape: bf16[16,27], index: 1, kind: input, shape index: {}]   ;;  %s10651_s2 = inlined_call_operand.vmem [shape: f32[58,1], index: 2, kind: input, shape index: {}]   ;;  %s10652_s3 = inlined_call_operand.vmem [shape: f32[32,16], index: 3, kind: input, shape index: {}]   ;;  %s10653_s4 = inlined_call_operand.hbm [shape: f32[10,32], index: 4, kind: input, shape index: {}]   ;;  %s10654_s5 = inlined_call_operand.hbm [shape: f32[5120,4], index: 5, kind: input, shape index: {}]   ;;  %s10655_s6 = inlined_call_operand.vmem [shape: f32[2,10,4], index: 6, kind: output, shape index: {}]  }
   0x1   :  { %12 = vsyncpa [#allocation6], 0  ;;  %s8102_s21 = smov 0  }
   0x2 LB: > { %s8108_s22 = sadd.s32 4294967295, %s8051_s21   ;;  %p6315_p0 = scmp.ge.s32.totalorder %s8051_s21, 1  ;;  %s8051_s21 = sphi %s8102_s21, %s18_s21  }
   0x3   : > { %p180_p1 = scmp.lt.s32.totalorder %s8051_s21, 3  ;;  %s8053_s23 = smov [#allocation3]  }
   0x4   : > { %s201_s24 = sshll.u32 %s8053_s23, 4  ;;  %p7164_p3 = scmp.eq.s32.totalorder %s8108_s22, 0  ;;  %s202_s24 = int_to_ptr.vmem [resolvable:$true] %s201_s24 }
   0x5   : > { %p8112_p2 = pnand %p6315_p0, %p180_p1  ;;  %s8054_s26 = smov [#allocation5]  }
   0x6   : > { %s214_s27 = sshll.u32 %s8054_s26, 4  ;;  %s7996_s29 = scalar_lea.vmem %s202_s24, 256  ;;  %s215_s27 = int_to_ptr.vmem [resolvable:$true] %s214_s27 }
   0x7   : > { %p7157_p4 = pneg %p8112_p2  ;;  %p7997_p7 = scmp.ne.s32.totalorder %s202_s24, %s7996_s29 }
   0x8   : > { %p8004_p10 = scmp.lt.s32.totalorder %s202_s24, %s202_s24  ;;  %p8005_p11 = scmp.lt.s32.totalorder %s7996_s29, %s7996_s29 }
   0x9   : > { %p8121_p5 = pnand %p7164_p3, %p7157_p4 }
   0xa   : > { %p8006_p12 = por %p8005_p11, %p8004_p10 }
   0xb   : > { %p7987_p6 = pneg %p8121_p5 }
   0xd   : > { %p7999_p8 = pnand %p7997_p7, %p7987_p6 }
   0xf   : > { %p8000_p9 = pneg %p7999_p8 }
  0x11   : > { %p8007_p13 = pnand %p8006_p12, %p8000_p9 }
  0x13   : > { %8010 = shalt.err (!%p8007_p13)
}
  0x14   : > { %s8055_s30 = smov 128   ;;  %s8056_s7 = smov 8  }
  0x15   : > { %7160 = dma.hbm_to_vmem [thread:$0]  (!%p8121_p5), %s10653_s4, 256, %s202_s24, [#allocation4], %s8055_s30, %s8055_s30, %s8056_s7  }
  0x16   : > { %s8022_s10 = scalar_lea.vmem %s215_s27, 81920  ;;  %p8030_p7 = scmp.lt.s32.totalorder %s215_s27, %s215_s27 }
  0x17   : > { %p8023_p0 = scmp.ne.s32.totalorder %s215_s27, %s8022_s10  ;;  %p8031_p8 = scmp.lt.s32.totalorder %s8022_s10, %s8022_s10 }
  0x19   : > { %p8025_p1 = pnand %p8023_p0, %p7987_p6  ;;  %p8032_p10 = por %p8031_p8, %p8030_p7 }
  0x1b   : > { %p8026_p4 = pneg %p8025_p1 }
  0x1d   : > { %p8033_p9 = pnand %p8032_p10, %p8026_p4 }
  0x1f   : > { %8036 = shalt.err (!%p8033_p9)
}
  0x20   : > { %7163 = dma.hbm_to_vmem [thread:$0]  (!%p8121_p5), %s10654_s5, 81920, %s215_s27, [#allocation6], %s8055_s30, %s8055_s30, %s8056_s7  }
  0x21   : > { %238 = sbr.rel (%p8112_p2) target bundleno = 1478 (0x5c6), region = 44 }
  0x26   : > { %8042 = dma.done.wait (%p7164_p3), [#allocation4], 256  }
  0x27   : > { %8044 = vsyncadd (%p7164_p3), [#allocation4], 4294967040 }
  0x28   : > { %8046 = dma.done.wait (%p7164_p3), [#allocation6], 81920  }
  0x29   : > { %8048 = vsyncadd (%p7164_p3), [#allocation6], 4294885376  ;;  %p272_p6 = scmp.lt.s32.totalorder %s8108_s22, 1  ;;  %s8057_s17 = smov 94   ;;  %v8065_v42 = vmov 0   ;;  %v453_v56 = vlaneseq  ;;  %vm2806_vm4 = vcmask 1044480  }
  0x2a   : > { %s8058_s18 = smov 127   ;;  %s8059_s19 = smov 95   ;;  %2962 = vmatprep.mubr.bf16.mxu0 %v8065_v42  ;;  %3005 = vmatprep.mubr.bf16.mxu1 %v8065_v42  ;;  %vm2807_vm7 = vcmask 1045504   ;;  %vm2802_vm10 = vcmask 220160   ;;  %vm6038_vm11 = vcmask 130048   ;;  %vm6150_vm12 = vcmask 261120  }
  0x2b   : > { %s10699_s22 = smov (!%p272_p6, %s8108_s22), 1  ;;  %s8060_s20 = smov 93   ;;  %7980 = vset.pattern.permute.xlu0 %v8065_v42  ;;  %7981 = vset.pattern.permute.xlu1 %v8065_v42  ;;  %v8331_v60 = vand.u32 127, %v453_v56  ;;  %vm6234_vm13 = vcmask 25600   ;;  %vm6232_vm14 = vcmask 31744  }
  0x2c   : > { %s7148_s13 = smul.u32 80, %s10699_s22  ;;  %s8061_s23 = smov 33  }
  0x2d   : > { %s8062_s24 = smov 34   ;;  %s8063_s25 = smov 1   ;;  %vm2181_vm0 = vcmp.lt.s32.totalorder %v8331_v60, 94  ;;  %vm1579_vm1 = vcmp.lt.s32.totalorder %v8331_v60, 127  ;;  %vm1900_vm2 = vcmp.lt.s32.totalorder %v8331_v60, 95  ;;  %vm2462_vm3 = vcmp.lt.s32.totalorder %v8331_v60, 93 }
  0x2e   : > { %s8161_s16 = scalar_lea.vmem %s10649_s0, %s7148_s13  ;;  %s8064_s26 = smov 35   ;;  %vm897_vm5 = vcmp.lt.s32.totalorder %v8331_v60, 33  ;;  %vm616_vm6 = vcmp.lt.s32.totalorder %v8331_v60, 34  ;;  %vm1218_vm8 = vcmp.lt.s32.totalorder %v8331_v60, 1  ;;  %vm455_vm9 = vcmp.lt.s32.totalorder %v8331_v60, 35 }
  0x2f   : > { %v283_v0 = vld [vmem:[%s8161_s16] sm:$0xff]  ;;  %v284_v1 = vld [vmem:[%s8161_s16 + $0x8] sm:$0xff]  ;;  %v285_v7 = vld [vmem:[%s8161_s16 + $0x10] sm:$0xff]  ;;  %s6354_s11 = sshll.u32 %s10699_s22, 4 }
  0x30   : > { %v8166_v2 = vld [vmem:[%s8161_s16 + $0x48] sm:$0xff]  ;;  %v293_v3 = vunpack.c.l.bf16 %v283_v0  ;;  %v294_v4 = vunpack.c.h.bf16 %v283_v0  ;;  %v8168_v5 = vunpack.c.l.bf16 %v284_v1  ;;  %v286_v8 = vld [vmem:[%s8161_s16 + $0x18] sm:$0xff]  ;;  %v8175_v9 = vunpack.c.h.bf16 %v284_v1  ;;  %v287_v18 = vld [vmem:[%s8161_s16 + $0x20] sm:$0xff]  ;;  %s281_s14 = scalar_lea.vmem %s10655_s6, %s6354_s11 }
  0x31   : > { %v8171_v6 = vunpack.c.h.bf16 %v8166_v2  ;;  %v8177_v10 = vunpack.c.l.bf16 %v285_v7  ;;  %v8179_v11 = vunpack.c.h.bf16 %v285_v7  ;;  %v8181_v12 = vunpack.c.l.bf16 %v286_v8  ;;  %v288_v23 = vld [vmem:[%s8161_s16 + $0x28] sm:$0xff]  ;;  %v289_v37 = vld [vmem:[%s8161_s16 + $0x30] sm:$0xff]  ;;  %v290_v49 = vld [vmem:[%s8161_s16 + $0x38] sm:$0xff] }
  0x32   : > { %v333_v13 = vcombine.high %v293_v3, %v293_v3  ;;  %1460 = vst [vmem:[#allocation2 + $0x280] sm:$0x70] %v293_v3  ;;  %1462 = vst [vmem:[#allocation2 + $0x8] sm:$0x70] %v294_v4  ;;  %v334_v14 = vcombine.high %v294_v4, %v294_v4  ;;  %v8191_v17 = vunpack.c.h.bf16 %v286_v8  ;;  %v8199_v19 = vcombine.high %v8168_v5, %v8168_v5 }
  0x33   : > { %1464 = vst [vmem:[#allocation2 + $0x300] sm:$0x70] %v8168_v5  ;;  %1498 = vst [vmem:[#allocation2 + $0x190] sm:$0x70] %v8171_v6  ;;  %v8201_v20 = vunpack.c.l.bf16 %v287_v18  ;;  %v8210_v22 = vunpack.c.h.bf16 %v287_v18  ;;  %v8216_v24 = vunpack.c.l.bf16 %v288_v23  ;;  %v8222_v26 = vcombine.high %v8171_v6, %v8171_v6 }
  0x34   : > { %1466 = vst [vmem:[#allocation2 + $0x218] sm:$0x70] %v8175_v9  ;;  %1468 = vst [vmem:[#allocation2 + $0x1f0] sm:$0x70] %v8177_v10  ;;  %v7200_v15 = vpack.i.bf16 %v294_v4, %v333_v13  ;;  %v7205_v16 = vpack.i.bf16 %v334_v14, %v293_v3  ;;  %v7225_v21 = vpack.i.bf16 %v8199_v19, %v8168_v5  ;;  %v8241_v33 = vunpack.c.h.bf16 %v288_v23 }
  0x35   : > { %1470 = vst [vmem:[#allocation2 + $0x1f8] sm:$0x70] %v8179_v11  ;;  %1472 = vst [vmem:[#allocation2 + $0x258] sm:$0x70] %v8181_v12  ;;  %v7255_v25 = vpack.i.bf16 %v333_v13, %v293_v3  ;;  %v7265_v27 = vpack.i.bf16 %v294_v4, %v8222_v26  ;;  %v1419_v28 = vcombine.low %v293_v3, %v293_v3  ;;  %v8253_v38 = vunpack.c.l.bf16 %v289_v37 }
  0x36   : > { %7201 = vrot.lane.b32.xlu1 %v7200_v15, %s8057_s17  ;;  %7191 = vrot.lane.b32.xlu0 %v7200_v15, %s8058_s18  ;;  %1474 = vst [vmem:[#allocation2 + $0x2c0] sm:$0x70] %v8191_v17  ;;  %1476 = vst [vmem:[#allocation2 + $0xf8] sm:$0x70] %v8201_v20  ;;  %v1420_v29 = vcombine.low %v294_v4, %v294_v4  ;;  %v7285_v30 = vpack.i.bf16 %v8168_v5, %v334_v14  ;;  %v8260_v39 = vunpack.c.h.bf16 %v289_v37 }
  0x37   : > { %1478 = vst [vmem:[#allocation2 + $0x4c0] sm:$0x70] %v8210_v22  ;;  %1480 = vst [vmem:[#allocation2 + $0x350] sm:$0x70] %v8216_v24  ;;  %v1421_v31 = vcombine.low %v8168_v5, %v8168_v5  ;;  %v336_v32 = vcombine.high %v8175_v9, %v8175_v9  ;;  %v337_v35 = vcombine.high %v8177_v10, %v8177_v10  ;;  %v8298_v50 = vunpack.c.l.bf16 %v290_v49  ;;  %v8341_v5 = vld [vmem:[%s8161_s16 + $0x40] sm:$0xff] }
  0x38   : > { %1459 = vst [vmem:[#allocation2 + $0x3c8] sm:$0x70] %v1419_v28  ;;  %1461 = vst [vmem:[#allocation2 + $0x3b8] sm:$0x70] %v1420_v29  ;;  %v7355_v40 = vpack.i.bf16 %v8175_v9, %v8199_v19  ;;  %v1422_v41 = vcombine.low %v8175_v9, %v8175_v9  ;;  %v338_v44 = vcombine.high %v8179_v11, %v8179_v11  ;;  %v8329_v59 = vunpack.c.h.bf16 %v290_v49 }
  0x39   : > { %1463 = vst [vmem:[#allocation2 + $0x48] sm:$0x70] %v1421_v31  ;;  %v7315_v34 = vpack.i.bf16 %v336_v32, %v8175_v9  ;;  %1482 = vst [vmem:[#allocation2 + $0x1e0] sm:$0x70] %v8241_v33  ;;  %v7325_v36 = vpack.i.bf16 %v337_v35, %v8177_v10  ;;  %v7375_v43 = vpack.i.bf16 %v8177_v10, %v336_v32  ;;  %v8346_v7 = vunpack.c.l.bf16 %v8341_v5 }
  0x3a   : > { %7206 = vrot.lane.b32.xlu1 %v7205_v16, %s8058_s18  ;;  %7196 = vrot.lane.b32.xlu0 %v7200_v15, %s8059_s19  ;;  %1484 = vst [vmem:[#allocation2 + $0x3a0] sm:$0x70] %v8253_v38  ;;  %1486 = vst [vmem:[#allocation2 + $0x400] sm:$0x70] %v8260_v39  ;;  %v1423_v45 = vcombine.low %v8177_v10, %v8177_v10  ;;  %v7395_v46 = vpack.i.bf16 %v338_v44, %v8179_v11 }
  0x3b   : > { %1465 = vst [vmem:[#allocation2 + $0x4a8] sm:$0x70] %v1422_v41  ;;  %v8289_v47 = vcombine.high %v8181_v12, %v8181_v12  ;;  %1488 = vst [vmem:[#allocation2 + $0x348] sm:$0x70] %v8298_v50  ;;  %v7435_v51 = vpack.i.bf16 %v8179_v11, %v337_v35  ;;  %v1424_v52 = vcombine.low %v8179_v11, %v8179_v11 }
  0x3c   : > { %1467 = vst [vmem:[#allocation2 + $0x168] sm:$0x70] %v1423_v45  ;;  %v7455_v53 = vpack.i.bf16 %v8181_v12, %v338_v44  ;;  %v8317_v54 = vcombine.high %v8191_v17, %v8191_v17  ;;  %v1425_v55 = vcombine.low %v8181_v12, %v8181_v12  ;;  %v8327_v58 = vcombine.high %v8201_v20, %v8201_v20 }
  0x3d   : > { %v7405_v48 = vpack.i.bf16 %v8289_v47, %v8181_v12  ;;  %1469 = vst [vmem:[#allocation2 + $0x10] sm:$0x70] %v1424_v52  ;;  %1490 = vst [vmem:[#allocation2 + $0x460] sm:$0x70] %v8329_v59  ;;  %v1426_v56 = vcombine.low %v8191_v17, %v8191_v17 }
  0x3e   : > { %7216 = vrot.lane.b32.xlu1 %v7205_v16, %s8057_s17  ;;  %7211 = vrot.lane.b32.xlu0 %v7205_v16, %s8059_s19  ;;  %1471 = vst [vmem:[#allocation2 + $0x2e8] sm:$0x70] %v1425_v55  ;;  %v7475_v57 = vpack.i.bf16 %v8317_v54, %v8191_v17  ;;  %v7485_v61 = vpack.i.bf16 %v8327_v58, %v8201_v20  ;;  %1492 = vst [vmem:[#allocation2 + $0x1d8] sm:$0x70] %v8346_v7 }
  0x3f   : > { %1473 = vst [vmem:[#allocation2 + $0x260] sm:$0x70] %v1426_v56 }
  0x42   : > { %7226 = vrot.lane.b32.xlu1 %v7225_v21, %s8059_s19  ;;  %7221 = vrot.lane.b32.xlu0 %v7225_v21, %s8058_s18 }
  0x46   : > { %7236 = vrot.lane.b32.xlu1 %v7200_v15, %s8060_s20  ;;  %7231 = vrot.lane.b32.xlu0 %v7225_v21, %s8057_s17 }
  0x4a   : > { %7246 = vrot.lane.b32.xlu1 %v7225_v21, %s8060_s20  ;;  %7241 = vrot.lane.b32.xlu0 %v7205_v16, %s8060_s20 }
  0x4e   : > { %7256 = vrot.lane.b32.xlu1 %v7255_v25, %s8061_s23  ;;  %7251 = vrot.lane.b32.xlu0 %v7255_v25, %s8062_s24 }
  0x52   : > { %7266 = vrot.lane.b32.xlu1 %v7265_v27, %s8062_s24  ;;  %7261 = vrot.lane.b32.xlu0 %v7255_v25, %s8063_s25 }
  0x56   : > { %7276 = vrot.lane.b32.xlu1 %v7265_v27, %s8063_s25  ;;  %7271 = vrot.lane.b32.xlu0 %v7265_v27, %s8061_s23 }
  0x5a   : > { %7286 = vrot.lane.b32.xlu1 %v7285_v30, %s8062_s24  ;;  %7281 = vrot.lane.b32.xlu0 %v7255_v25, %s8064_s26 }
  0x5e   : > { %7296 = vrot.lane.b32.xlu1 %v7285_v30, %s8063_s25  ;;  %7291 = vrot.lane.b32.xlu0 %v7285_v30, %s8061_s23 }
  0x62   : > { %7306 = vrot.lane.b32.xlu1 %v7285_v30, %s8064_s26  ;;  %7301 = vrot.lane.b32.xlu0 %v7265_v27, %s8064_s26 }
  0x66   : > { %7316 = vrot.lane.b32.xlu1 %v7315_v34, %s8059_s19  ;;  %7311 = vrot.lane.b32.xlu0 %v7315_v34, %s8058_s18 }
  0x6a   : > { %7326 = vrot.lane.b32.xlu1 %v7325_v36, %s8058_s18  ;;  %7321 = vrot.lane.b32.xlu0 %v7315_v34, %s8057_s17 }
  0x6e   : > { %7336 = vrot.lane.b32.xlu1 %v7325_v36, %s8057_s17  ;;  %7331 = vrot.lane.b32.xlu0 %v7325_v36, %s8059_s19 }
  0x72   : > { %7346 = vrot.lane.b32.xlu1 %v7325_v36, %s8060_s20  ;;  %7341 = vrot.lane.b32.xlu0 %v7315_v34, %s8060_s20  ;;  %v7515_v36 = vpack.i.bf16 %v8191_v17, %v8289_v47 }
  0x76   : > { %7356 = vrot.lane.b32.xlu1 %v7355_v40, %s8061_s23  ;;  %7351 = vrot.lane.b32.xlu0 %v7355_v40, %s8062_s24 }
  0x7a   : > { %7366 = vrot.lane.b32.xlu1 %v7355_v40, %s8064_s26  ;;  %7361 = vrot.lane.b32.xlu0 %v7355_v40, %s8063_s25 }
  0x7e   : > { %7376 = vrot.lane.b32.xlu1 %v7375_v43, %s8061_s23  ;;  %7371 = vrot.lane.b32.xlu0 %v7375_v43, %s8062_s24 }
  0x82   : > { %7386 = vrot.lane.b32.xlu1 %v7375_v43, %s8064_s26  ;;  %7381 = vrot.lane.b32.xlu0 %v7375_v43, %s8063_s25 }
  0x86   : > { %7396 = vrot.lane.b32.xlu1 %v7395_v46, %s8059_s19  ;;  %7391 = vrot.lane.b32.xlu0 %v7395_v46, %s8058_s18 }
  0x8a   : > { %7406 = vrot.lane.b32.xlu1 %v7405_v48, %s8058_s18  ;;  %7401 = vrot.lane.b32.xlu0 %v7395_v46, %s8057_s17 }
  0x8e   : > { %7416 = vrot.lane.b32.xlu1 %v7405_v48, %s8057_s17  ;;  %7411 = vrot.lane.b32.xlu0 %v7405_v48, %s8059_s19 }
  0x92   : > { %7426 = vrot.lane.b32.xlu1 %v7405_v48, %s8060_s20  ;;  %7421 = vrot.lane.b32.xlu0 %v7395_v46, %s8060_s20 }
  0x96   : > { %7436 = vrot.lane.b32.xlu1 %v7435_v51, %s8061_s23  ;;  %7431 = vrot.lane.b32.xlu0 %v7435_v51, %s8062_s24 }
  0x9a   : > { %7446 = vrot.lane.b32.xlu1 %v7435_v51, %s8064_s26  ;;  %7441 = vrot.lane.b32.xlu0 %v7435_v51, %s8063_s25 }
  0x9e   : > { %7456 = vrot.lane.b32.xlu1 %v7455_v53, %s8061_s23  ;;  %7451 = vrot.lane.b32.xlu0 %v7455_v53, %s8062_s24 }
  0xa2   : > { %7466 = vrot.lane.b32.xlu1 %v7455_v53, %s8064_s26  ;;  %7461 = vrot.lane.b32.xlu0 %v7455_v53, %s8063_s25 }
  0xa6   : > { %7476 = vrot.lane.b32.xlu1 %v7475_v57, %s8059_s19  ;;  %7471 = vrot.lane.b32.xlu0 %v7475_v57, %s8058_s18 }
  0xa8   : > { %v7202_v62 = vpop.permute.xlu1 %7201  ;;  %v7192_v63 = vpop.permute.xlu0 %7191 }
  0xa9   : > { %v7204_v0 = vunpack.i.h.bf16 %v7202_v62  ;;  %v7203_v1 = vunpack.i.l.bf16 %v7202_v62  ;;  %v7194_v3 = vunpack.i.h.bf16 %v7192_v63  ;;  %v7193_v4 = vunpack.i.l.bf16 %v7192_v63 }
  0xaa   : > { %7486 = vrot.lane.b32.xlu1 %v7485_v61, %s8058_s18  ;;  %7481 = vrot.lane.b32.xlu0 %v7475_v57, %s8057_s17 }
  0xab   : > { %v2219_v8 = vsel %vm2181_vm0, %v7203_v1, %v7204_v0  ;;  %v1617_v9 = vsel %vm1579_vm1, %v7193_v4, %v7194_v3 }
  0xac   : > { %v2263_v10 = vrot.slane %v2219_v8, 3  ;;  %v1661_v11 = vrot.slane %v1617_v9, 1  ;;  %v8352_v12 = vpop.permute.xlu1 %7206  ;;  %v7197_v13 = vpop.permute.xlu0 %7196 }
  0xad   : > { %v7209_v14 = vunpack.i.h.bf16 %v8352_v12  ;;  %v10663_v15 = vunpack.i.l.bf16 %v8352_v12  ;;  %v7199_v16 = vunpack.i.h.bf16 %v7197_v13  ;;  %v7198_v18 = vunpack.i.l.bf16 %v7197_v13 }
  0xae   : > { %2343 = vst [vmem:[#allocation2 + $0x338] sm:$0xe0] %v2263_v10  ;;  %1741 = vst [vmem:[#allocation2 + $0x338] ss:$-180 sps:$4 sm:$0x83] %v1661_v11   ;;  %7496 = vrot.lane.b32.xlu1 %v7485_v61, %s8057_s17  ;;  %7491 = vrot.lane.b32.xlu0 %v7485_v61, %s8059_s19 }
  0xaf   : > { %v1616_v19 = vsel %vm1579_vm1, %v7194_v3, %v7209_v14  ;;  %v1618_v21 = vsel %vm1579_vm1, %v10663_v15, %v7193_v4  ;;  %v1938_v23 = vsel %vm1900_vm2, %v7198_v18, %v7199_v16 }
  0xb0   : > { %v1660_v25 = vrot.slane %v1618_v21, 1  ;;  %v1662_v27 = vrot.slane %v1616_v19, 1  ;;  %v1982_v28 = vrot.slane %v1938_v23, 6  ;;  %v8368_v29 = vpop.permute.xlu1 %7216  ;;  %v8370_v30 = vpop.permute.xlu0 %7211 }
  0xb1   : > { %v7219_v31 = vunpack.i.h.bf16 %v8368_v29  ;;  %v10662_v32 = vunpack.i.l.bf16 %v8368_v29  ;;  %v7214_v34 = vunpack.i.h.bf16 %v8370_v30  ;;  %v10661_v35 = vunpack.i.l.bf16 %v8370_v30 }
  0xb2   : > { %1740 = vst [vmem:[#allocation2 + $0x418] ss:$-76 sps:$4 sm:$0x83] %v1660_v25   ;;  %1742 = vst [vmem:[#allocation2 + $0x358] ss:$100 sps:$4 sm:$0x83] %v1662_v27   ;;  %7506 = vrot.lane.b32.xlu1 %v7485_v61, %s8060_s20  ;;  %7501 = vrot.lane.b32.xlu0 %v7475_v57, %s8060_s20 }
  0xb3   : > { %2062 = vst [vmem:[#allocation2 + $0x338] sm:$0x1c] %v1982_v28  ;;  %v2218_v37 = vsel %vm2181_vm0, %v7204_v0, %v7219_v31  ;;  %v2220_v40 = vsel %vm2181_vm0, %v10662_v32, %v7203_v1  ;;  %v1937_v41 = vsel %vm1900_vm2, %v7199_v16, %v7214_v34  ;;  %v1939_v43 = vsel %vm1900_vm2, %v10661_v35, %v7198_v18 }
  0xb4   : > { %v2262_v44 = vrot.slane %v2220_v40, 3  ;;  %v2264_v45 = vrot.slane %v2218_v37, 3  ;;  %v1981_v46 = vrot.slane %v1939_v43, 6  ;;  %v1983_v47 = vrot.slane %v1937_v41, 6  ;;  %v8392_v48 = vpop.permute.xlu1 %7226  ;;  %v8394_v49 = vpop.permute.xlu0 %7221 }
  0xb5   : > { %v7229_v51 = vunpack.i.h.bf16 %v8392_v48  ;;  %v7228_v52 = vunpack.i.l.bf16 %v8392_v48  ;;  %v7224_v53 = vunpack.i.h.bf16 %v8394_v49  ;;  %v7223_v55 = vunpack.i.l.bf16 %v8394_v49 }
  0xb6   : > { %2342 = vst [vmem:[#allocation2 + $0x418] sm:$0xe0] %v2262_v44  ;;  %2344 = vst [vmem:[#allocation2 + $0x358] sm:$0xe0] %v2264_v45  ;;  %7516 = vrot.lane.b32.xlu1 %v7515_v36, %s8061_s23  ;;  %7511 = vrot.lane.b32.xlu0 %v7515_v36, %s8062_s24  ;;  %v1427_v37 = vcombine.low %v8201_v20, %v8201_v20 }
  0xb7   : > { %2061 = vst [vmem:[#allocation2 + $0x418] sm:$0x1c] %v1981_v46  ;;  %2063 = vst [vmem:[#allocation2 + $0x358] sm:$0x1c] %v1983_v47  ;;  %v1935_v57 = vsel %vm1900_vm2, %v7228_v52, %v7229_v51  ;;  %v1936_v61 = vsel %vm1900_vm2, %v7214_v34, %v7228_v52  ;;  %v1614_v62 = vsel %vm1579_vm1, %v7223_v55, %v7224_v53  ;;  %v8066_v46 = vmov 65535  }
  0xb8   : > { %v1615_v63 = vsel %vm1579_vm1, %v7209_v14, %v7223_v55  ;;  %v1984_v0 = vrot.slane %v1936_v61, 6  ;;  %v1985_v1 = vrot.slane %v1935_v57, 6  ;;  %v1664_v17 = vrot.slane %v1614_v62, 1  ;;  %v7237_v4 = vpop.permute.xlu1 %7236  ;;  %v8417_v8 = vpop.permute.xlu0 %7231  ;;  %1475 = vst [vmem:[#allocation2 + $0x140] sm:$0x70] %v1427_v37 }
  0xb9   : > { %v1663_v3 = vrot.slane %v1615_v63, 1  ;;  %v7239_v9 = vunpack.i.h.bf16 %v7237_v4  ;;  %v7238_v10 = vunpack.i.l.bf16 %v7237_v4  ;;  %v7234_v11 = vunpack.i.h.bf16 %v8417_v8 }
  0xba   : > { %v7233_v13 = vunpack.i.l.bf16 %v8417_v8  ;;  %2064 = vst [vmem:[#allocation2 + $0x158] sm:$0x1c] %v1984_v0  ;;  %2065 = vst [vmem:[#allocation2 + $0x88] sm:$0x1c] %v1985_v1  ;;  %7526 = vrot.lane.b32.xlu1 %v7515_v36, %s8064_s26  ;;  %7521 = vrot.lane.b32.xlu0 %v7515_v36, %s8063_s25  ;;  %v7535_v14 = vpack.i.bf16 %v8201_v20, %v8317_v54  ;;  %v2808_v47 = vsel %vm2806_vm4, 4294967295, %v8066_v46  ;;  %v8480_v63 = vunpack.c.h.bf16 %v8341_v5 }
  0xbb   : > { %1743 = vst [vmem:[#allocation2 + $0x158] ss:$-332 sps:$4 sm:$0x83] %v1663_v3   ;;  %1744 = vst [vmem:[#allocation2 + $0x88] ss:$-60 sps:$4 sm:$0x83] %v1664_v17   ;;  %v2500_v16 = vsel %vm2462_vm3, %v7238_v10, %v7239_v9  ;;  %v8468_v52 = vcombine.high %v8216_v24, %v8216_v24 }
  0xbc   : > { %v2216_v18 = vsel %vm2181_vm0, %v7233_v13, %v7234_v11  ;;  %v2217_v19 = vsel %vm2181_vm0, %v7219_v31, %v7233_v13  ;;  %2504 = vst [vmem:[#allocation2 + $0x428] sm:$0x7] %v2500_v16  ;;  %v8433_v25 = vpop.permute.xlu1 %7246  ;;  %v8435_v27 = vpop.permute.xlu0 %7241  ;;  %v8446_v31 = vcombine.high %v8210_v22, %v8210_v22  ;;  %v2626_v3 = vld [vmem:[#allocation2 + $0x338] sm:$0xff]  ;;  %v8491_v4 = vsel %vm2807_vm7, %v2808_v47, 0  ;;  %1494 = vst [vmem:[#allocation2 + $0x50] sm:$0x70] %v8480_v63 }
  0xbd   : > { %v2265_v21 = vrot.slane %v2217_v19, 3  ;;  %v2266_v23 = vrot.slane %v2216_v18, 3  ;;  %v7249_v54 = vunpack.i.h.bf16 %v8433_v25  ;;  %v7248_v28 = vunpack.i.l.bf16 %v8433_v25 }
  0xbe   : > { %v7244_v34 = vunpack.i.h.bf16 %v8435_v27  ;;  %v10660_v36 = vunpack.i.l.bf16 %v8435_v27  ;;  %7536 = vrot.lane.b32.xlu1 %v7535_v14, %s8061_s23  ;;  %7531 = vrot.lane.b32.xlu0 %v7535_v14, %s8062_s24  ;;  %v8477_v62 = vpack.i.bf16 %v8446_v31, %v8210_v22  ;;  %v8497_v16 = vpack.i.bf16 %v8468_v52, %v8216_v24 }
  0xbf   : > { %2345 = vst [vmem:[#allocation2 + $0x158] sm:$0xe0] %v2265_v21  ;;  %2346 = vst [vmem:[#allocation2 + $0x88] sm:$0xe0] %v2266_v23  ;;  %v2497_v40 = vsel %vm2462_vm3, %v7248_v28, %v7249_v54  ;;  %v8742_v25 = vpack.i.bf16 %v8241_v33, %v8468_v52 }
  0xc0   : > { %v2498_v41 = vsel %vm2462_vm3, %v7244_v34, %v7248_v28  ;;  %v2499_v43 = vsel %vm2462_vm3, %v7239_v9, %v7244_v34  ;;  %v2501_v44 = vsel %vm2462_vm3, %v10660_v36, %v7238_v10  ;;  %2507 = vst [vmem:[#allocation2 + $0x4b8] sm:$0x7] %v2497_v40  ;;  %v8462_v20 = vpop.permute.xlu1 %7256  ;;  %v7252_v45 = vpop.permute.xlu0 %7251  ;;  %v2625_v34 = vld [vmem:[#allocation2 + $0x418] sm:$0xff] }
  0xc1   : > { %2505 = vst [vmem:[#allocation2 + $0x268] sm:$0x7] %v2499_v43  ;;  %2506 = vst [vmem:[#allocation2 + $0x180] sm:$0x7] %v2498_v41  ;;  %v7259_v55 = vunpack.i.h.bf16 %v8462_v20  ;;  %v7258_v56 = vunpack.i.l.bf16 %v8462_v20  ;;  %v7254_v57 = vunpack.i.h.bf16 %v7252_v45  ;;  %v7253_v61 = vunpack.i.l.bf16 %v7252_v45 }
  0xc2   : > { %2503 = vst [vmem:[#allocation2 + $0xa8] sm:$0x7] %v2501_v44  ;;  %7546 = vrot.lane.b32.xlu1 %v7535_v14, %s8064_s26  ;;  %7541 = vrot.lane.b32.xlu0 %v7535_v14, %s8063_s25 }
  0xc3   : > { %v936_v0 = vsel %vm897_vm5, %v7258_v56, %v7259_v55  ;;  %v655_v1 = vsel %vm616_vm6, %v7253_v61, %v7254_v57  ;;  %v2666_v17 = vld [vmem:[#allocation2 + $0x428] sm:$0x7] }
  0xc4   : > { %v979_v9 = vrot.slane %v936_v0, 2  ;;  %v698_v10 = vrot.slane %v655_v1, 5  ;;  %v8493_v13 = vpop.permute.xlu1 %7266  ;;  %v7262_v5 = vpop.permute.xlu0 %7261  ;;  %v2746_v14 = vpack.c.bf16 %v2666_v17, %v2626_v3 }
  0xc5   : > { %v7269_v18 = vunpack.i.h.bf16 %v8493_v13  ;;  %v10658_v19 = vunpack.i.l.bf16 %v8493_v13  ;;  %v7264_v21 = vunpack.i.h.bf16 %v7262_v5  ;;  %v7263_v23 = vunpack.i.l.bf16 %v7262_v5 }
  0xc6   : > { %1059 = vst [vmem:[#allocation2 + $0x280] ss:$308 sps:$4 sm:$0xc1] %v979_v9   ;;  %778 = vst [vmem:[#allocation2 + $0x3b0] sm:$0x38] %v698_v10  ;;  %7556 = vrot.lane.b32.xlu1 %v8477_v62, %s8059_s19  ;;  %7551 = vrot.lane.b32.xlu0 %v8477_v62, %s8058_s18  ;;  %v2814_v28 = vand.u32 %v8491_v4, %v2746_v14  ;;  %v2628_v5 = vld [vmem:[#allocation2 + $0x158] sm:$0xff] }
  0xc7   : > { %v654_v37 = vsel %vm616_vm6, %v7254_v57, %v7269_v18  ;;  %v656_v40 = vsel %vm616_vm6, %v10658_v19, %v7253_v61  ;;  %v1257_v41 = vsel %vm1218_vm8, %v7263_v23, %v7264_v21  ;;  %v2627_v14 = vld [vmem:[#allocation2 + $0x358] sm:$0xff] }
  0xc8   : > { %v2668_v44 = vld [vmem:[#allocation2 + $0x180] sm:$0x7]  ;;  %v2667_v45 = vld [vmem:[#allocation2 + $0x268] sm:$0x7]  ;;  %v697_v46 = vrot.slane %v656_v40, 5  ;;  %v699_v47 = vrot.slane %v654_v37, 5  ;;  %v8518_v1 = vpop.permute.xlu1 %7276  ;;  %v8520_v3 = vpop.permute.xlu0 %7271  ;;  %2942 = vmatprep.subr.bf16.mxu0 %v2814_v28  ;;  %v8532_v40 = vunpack.c.l.bf16 %v8166_v2 }
  0xc9   : > { %v2665_v43 = vld [vmem:[#allocation2 + $0xa8] sm:$0x7]  ;;  %v1300_v0 = vrot.slane %v1257_v41, 7  ;;  %v7279_v17 = vunpack.i.h.bf16 %v8518_v1  ;;  %v10656_v9 = vunpack.i.l.bf16 %v8518_v1  ;;  %v7274_v61 = vunpack.i.h.bf16 %v8520_v3 }
  0xca   : > { %v2745_v57 = vpack.c.bf16 %v2665_v43, %v2625_v34  ;;  %v10659_v10 = vunpack.i.l.bf16 %v8520_v3  ;;  %777 = vst [vmem:[#allocation2 + $0x2b0] sm:$0x38] %v697_v46  ;;  %779 = vst [vmem:[#allocation2 + $0x4d8] sm:$0x38] %v699_v47  ;;  %7566 = vrot.lane.b32.xlu1 %v8497_v16, %s8058_s18  ;;  %7561 = vrot.lane.b32.xlu0 %v8477_v62, %s8057_s17  ;;  %v2748_v34 = vpack.c.bf16 %v2668_v44, %v2628_v5 }
  0xcb   : > { %1380 = vst [vmem:[#allocation2 + $0x280] sm:$0xe] %v1300_v0  ;;  %v2747_v37 = vpack.c.bf16 %v2667_v45, %v2627_v14  ;;  %v1256_v41 = vsel %vm1218_vm8, %v7264_v21, %v7279_v17  ;;  %v1258_v43 = vsel %vm1218_vm8, %v10656_v9, %v7263_v23  ;;  %v935_v46 = vsel %vm897_vm5, %v7259_v55, %v7274_v61 }
  0xcc   : > { %v2811_v28 = vand.u32 %v8491_v4, %v2745_v57  ;;  %v937_v2 = vsel %vm897_vm5, %v10659_v10, %v7258_v56  ;;  %v1299_v44 = vrot.slane %v1258_v43, 7  ;;  %v1301_v45 = vrot.slane %v1256_v41, 7  ;;  %v8550_v0 = vpop.permute.xlu1 %7286  ;;  %v7282_v57 = vpop.permute.xlu0 %7281  ;;  %1496 = vst [vmem:[#allocation2 + $0x150] sm:$0x70] %v8532_v40 }
  0xcd   : > { %v980_v21 = vrot.slane %v935_v46, 2  ;;  %v978_v47 = vrot.slane %v937_v2, 2  ;;  %v7289_v23 = vunpack.i.h.bf16 %v8550_v0  ;;  %v7288_v55 = vunpack.i.l.bf16 %v8550_v0 }
  0xce   : > { %2943 = vmatpush1.bf16.msra.mxu0 %v2811_v28  ;;  %v7284_v20 = vunpack.i.h.bf16 %v7282_v57  ;;  %v7283_v5 = vunpack.i.l.bf16 %v7282_v57  ;;  %1379 = vst [vmem:[#allocation2 + $0x3c8] sm:$0xe] %v1299_v44  ;;  %1381 = vst [vmem:[#allocation2 + $0x3b8] sm:$0xe] %v1301_v45  ;;  %v2820_v56 = vand.u32 %v8491_v4, %v2748_v34  ;;  %v2817_v14 = vand.u32 %v8491_v4, %v2747_v37 }
  0xcf   : > { %1060 = vst [vmem:[#allocation2 + $0x3b8] ss:$292 sps:$4 sm:$0xc1] %v980_v21   ;;  %1058 = vst [vmem:[#allocation2 + $0x3c8] ss:$-276 sps:$4 sm:$0xc1] %v978_v47   ;;  %7576 = vrot.lane.b32.xlu1 %v8497_v16, %s8057_s17  ;;  %7571 = vrot.lane.b32.xlu0 %v8497_v16, %s8059_s19  ;;  %v652_v28 = vsel %vm616_vm6, %v7288_v55, %v7289_v23  ;;  %v653_v41 = vsel %vm616_vm6, %v7269_v18, %v7288_v55 }
  0xd0   : > { %v494_v34 = vsel %vm455_vm9, %v7283_v5, %v7284_v20  ;;  %v700_v37 = vrot.slane %v653_v41, 5  ;;  %v701_v43 = vrot.slane %v652_v28, 5  ;;  %2985 = vmatprep.subr.bf16.mxu1 %v2820_v56  ;;  %v8571_v46 = vpop.permute.xlu1 %7296  ;;  %v8573_v2 = vpop.permute.xlu0 %7291  ;;  %v7595_v47 = vpack.i.bf16 %v8210_v22, %v8327_v58 }
  0xd1   : > { %497 = vst [vmem:[#allocation2 + $0x3b0] sm:$0x7] %v494_v34  ;;  %2986 = vmatpush1.bf16.msra.mxu1 %v2817_v14  ;;  %v7299_v44 = vunpack.i.h.bf16 %v8571_v46  ;;  %v7298_v45 = vunpack.i.l.bf16 %v8571_v46  ;;  %v7294_v21 = vunpack.i.h.bf16 %v8573_v2  ;;  %v7293_v18 = vunpack.i.l.bf16 %v8573_v2 }
  0xd2   : > { %780 = vst [vmem:[#allocation2 + $0x18] sm:$0x38] %v700_v37  ;;  %781 = vst [vmem:[#allocation2 + $0x450] sm:$0x38] %v701_v43  ;;  %v8587_v57 = vcombine.high %v8241_v33, %v8241_v33 }
  0xd3   : > { %7586 = vrot.lane.b32.xlu1 %v8497_v16, %s8060_s20  ;;  %7581 = vrot.lane.b32.xlu0 %v8477_v62, %s8060_s20  ;;  %v1254_v55 = vsel %vm1218_vm8, %v7298_v45, %v7299_v44  ;;  %v1255_v56 = vsel %vm1218_vm8, %v7279_v17, %v7298_v45  ;;  %v933_v62 = vsel %vm897_vm5, %v7293_v18, %v7294_v21 }
  0xd4   : > { %v934_v58 = vsel %vm897_vm5, %v7274_v61, %v7293_v18  ;;  %v1302_v16 = vrot.slane %v1255_v56, 7  ;;  %v1303_v14 = vrot.slane %v1254_v55, 7  ;;  %v982_v41 = vrot.slane %v933_v62, 2  ;;  %v8601_v34 = vpop.permute.xlu1 %7306  ;;  %v8603_v37 = vpop.permute.xlu0 %7301 }
  0xd5   : > { %v981_v28 = vrot.slane %v934_v58, 2  ;;  %v7309_v43 = vunpack.i.h.bf16 %v8601_v34  ;;  %v7308_v17 = vunpack.i.l.bf16 %v8601_v34  ;;  %v7304_v45 = vunpack.i.h.bf16 %v8603_v37 }
  0xd6   : > { %v10657_v9 = vunpack.i.l.bf16 %v8603_v37  ;;  %1382 = vst [vmem:[#allocation2 + $0x8] sm:$0xe] %v1302_v16  ;;  %1383 = vst [vmem:[#allocation2 + $0x48] sm:$0xe] %v1303_v14  ;;  %v8613_v61 = vpack.i.bf16 %v8216_v24, %v8446_v31  ;;  %v2586_v16 = vld [vmem:[#allocation2 + $0x280] sm:$0xff]  ;;  %v2587_v32 = vld [vmem:[#allocation2 + $0x3b8] sm:$0xff] }
  0xd7   : > { %1061 = vst [vmem:[#allocation2 + $0x8] ss:$20 sps:$4 sm:$0xc1] %v981_v28   ;;  %1062 = vst [vmem:[#allocation2 + $0x48] ss:$1036 sps:$4 sm:$0xc1] %v982_v41   ;;  %7596 = vrot.lane.b32.xlu1 %v7595_v47, %s8061_s23  ;;  %7591 = vrot.lane.b32.xlu0 %v7595_v47, %s8062_s24  ;;  %v491_v18 = vsel %vm455_vm9, %v7308_v17, %v7309_v43  ;;  %v492_v55 = vsel %vm455_vm9, %v7304_v45, %v7308_v17 }
  0xd8   : > { %v493_v56 = vsel %vm455_vm9, %v7284_v20, %v7304_v45  ;;  %v495_v62 = vsel %vm455_vm9, %v10657_v9, %v7283_v5  ;;  %v2546_v58 = vld [vmem:[#allocation2 + $0x3b0] sm:$0xff]  ;;  %500 = vst [vmem:[#allocation2 + $0x450] sm:$0x7] %v491_v18  ;;  %499 = vst [vmem:[#allocation2 + $0x18] sm:$0x7] %v492_v55  ;;  %v8627_v31 = vpop.permute.xlu1 %7316  ;;  %v7312_v14 = vpop.permute.xlu0 %7311  ;;  %v8631_v41 = vpack.i.bf16 %v8587_v57, %v8241_v33 }
  0xd9   : > { %496 = vst [vmem:[#allocation2 + $0x2b0] sm:$0x7] %v495_v62  ;;  %498 = vst [vmem:[#allocation2 + $0x4d8] sm:$0x7] %v493_v56  ;;  %v2706_v28 = vpack.c.bf16 %v2586_v16, %v2546_v58  ;;  %v1428_v20 = vcombine.low %v8210_v22, %v8210_v22  ;;  %v7319_v17 = vunpack.i.h.bf16 %v8627_v31  ;;  %v7318_v5 = vunpack.i.l.bf16 %v8627_v31 }
  0xda   : > { %v7314_v45 = vunpack.i.h.bf16 %v7312_v14  ;;  %v7313_v18 = vunpack.i.l.bf16 %v7312_v14  ;;  %v8641_v55 = vcombine.high %v8253_v38, %v8253_v38 }
  0xdb   : > { %7606 = vrot.lane.b32.xlu1 %v7595_v47, %s8064_s26  ;;  %7601 = vrot.lane.b32.xlu0 %v7595_v47, %s8063_s25  ;;  %1477 = vst [vmem:[#allocation2 + $0x70] sm:$0x70] %v1428_v20  ;;  %v1933_v22 = vsel %vm1900_vm2, %v7318_v5, %v7319_v17  ;;  %v1934_v56 = vsel %vm1900_vm2, %v7229_v51, %v7318_v5 }
  0xdc   : > { %v1612_v62 = vsel %vm1579_vm1, %v7313_v18, %v7314_v45  ;;  %v1613_v47 = vsel %vm1579_vm1, %v7224_v53, %v7313_v18  ;;  %2944 = vmatprep.subr.bf16.mxu0 %v2706_v28  ;;  %v1986_v58 = vrot.slane %v1934_v56, 6  ;;  %v1987_v16 = vrot.slane %v1933_v22, 6  ;;  %v8657_v9 = vpop.permute.xlu1 %7326  ;;  %v7322_v19 = vpop.permute.xlu0 %7321 }
  0xdd   : > { %v1665_v14 = vrot.slane %v1613_v47, 1  ;;  %v1666_v20 = vrot.slane %v1612_v62, 1  ;;  %v7329_v48 = vunpack.i.h.bf16 %v8657_v9  ;;  %v7328_v51 = vunpack.i.l.bf16 %v8657_v9 }
  0xde   : > { %v7324_v5 = vunpack.i.h.bf16 %v7322_v19  ;;  %v7323_v10 = vunpack.i.l.bf16 %v7322_v19  ;;  %2066 = vst [vmem:[#allocation2 + $0x448] sm:$0x1c] %v1986_v58  ;;  %2067 = vst [vmem:[#allocation2] sm:$0x1c] %v1987_v16  ;;  %v8667_v49 = vpack.i.bf16 %v8641_v55, %v8253_v38  ;;  %v8906_v9 = vcombine.high %v8298_v50, %v8298_v50 }
  0xdf   : > { %1745 = vst [vmem:[#allocation2 + $0x448] ss:$-324 sps:$4 sm:$0x83] %v1665_v14   ;;  %1746 = vst [vmem:[#allocation2] ss:$1196 sps:$4 sm:$0x83] %v1666_v20   ;;  %7616 = vrot.lane.b32.xlu1 %v8613_v61, %s8061_s23  ;;  %7611 = vrot.lane.b32.xlu0 %v8613_v61, %s8062_s24  ;;  %v1610_v53 = vsel %vm1579_vm1, %v7328_v51, %v7329_v48  ;;  %v1611_v19 = vsel %vm1579_vm1, %v7314_v45, %v7328_v51 }
  0xe0   : > { %v2214_v28 = vsel %vm2181_vm0, %v7323_v10, %v7324_v5  ;;  %v2215_v18 = vsel %vm2181_vm0, %v7234_v11, %v7323_v10  ;;  %v2545_v22 = vld [vmem:[#allocation2 + $0x2b0] sm:$0xff]  ;;  %v2548_v56 = vld [vmem:[#allocation2 + $0x18] sm:$0xff]  ;;  %v1667_v47 = vrot.slane %v1611_v19, 1  ;;  %v1668_v58 = vrot.slane %v1610_v53, 1  ;;  %v8681_v20 = vpop.permute.xlu1 %7336  ;;  %v8683_v36 = vpop.permute.xlu0 %7331  ;;  %v2585_v11 = vld [vmem:[#allocation2 + $0x3c8] sm:$0xff] }
  0xe1   : > { %v2547_v62 = vld [vmem:[#allocation2 + $0x4d8] sm:$0xff]  ;;  %v2267_v16 = vrot.slane %v2215_v18, 3  ;;  %v2268_v14 = vrot.slane %v2214_v28, 3  ;;  %v7339_v45 = vunpack.i.h.bf16 %v8681_v20  ;;  %v7338_v51 = vunpack.i.l.bf16 %v8681_v20  ;;  %v2588_v10 = vld [vmem:[#allocation2 + $0x8] sm:$0xff] }
  0xe2   : > { %v7334_v8 = vunpack.i.h.bf16 %v8683_v36  ;;  %v7333_v35 = vunpack.i.l.bf16 %v8683_v36  ;;  %1747 = vst [vmem:[#allocation2 + $0x2d0] ss:$-180 sps:$4 sm:$0x83] %v1667_v47   ;;  %1748 = vst [vmem:[#allocation2 + $0x278] ss:$-268 sps:$4 sm:$0x83] %v1668_v58   ;;  %v2705_v53 = vpack.c.bf16 %v2585_v11, %v2545_v22  ;;  %v2708_v19 = vpack.c.bf16 %v2588_v10, %v2548_v56 }
  0xe3   : > { %2347 = vst [vmem:[#allocation2 + $0x448] sm:$0xe0] %v2267_v16  ;;  %2348 = vst [vmem:[#allocation2] sm:$0xe0] %v2268_v14  ;;  %7626 = vrot.lane.b32.xlu1 %v8631_v41, %s8058_s18  ;;  %7621 = vrot.lane.b32.xlu0 %v8613_v61, %s8063_s25  ;;  %v2707_v28 = vpack.c.bf16 %v2587_v32, %v2547_v62  ;;  %v2212_v18 = vsel %vm2181_vm0, %v7338_v51, %v7339_v45  ;;  %v8710_v32 = vld [vmem:[%s10650_s1] sm:$0xff]  }
  0xe4   : > { %v2213_v47 = vsel %vm2181_vm0, %v7324_v5, %v7338_v51  ;;  %v1931_v58 = vsel %vm1900_vm2, %v7333_v35, %v7334_v8  ;;  %v1932_v22 = vsel %vm1900_vm2, %v7319_v17, %v7333_v35  ;;  %v2270_v62 = vrot.slane %v2212_v18, 3  ;;  %2945 = vmatpush1.bf16.msra.mxu0 %v2705_v53  ;;  %2987 = vmatprep.subr.bf16.mxu1 %v2708_v19  ;;  %v8712_v5 = vpop.permute.xlu1 %7346  ;;  %v7342_v51 = vpop.permute.xlu0 %7341  ;;  %v2669_v18 = vld [vmem:[#allocation2 + $0x4b8] sm:$0x7] }
  0xe5   : > { %v2269_v56 = vrot.slane %v2213_v47, 3  ;;  %v1988_v16 = vrot.slane %v1932_v22, 6  ;;  %v1989_v14 = vrot.slane %v1931_v58, 6  ;;  %2988 = vmatpush1.bf16.msra.mxu1 %v2707_v28  ;;  %v10664_v31 = vunpack.i.h.bf16 %v8712_v5 }
  0xe6   : > { %v7348_v11 = vunpack.i.l.bf16 %v8712_v5  ;;  %v7344_v35 = vunpack.i.h.bf16 %v7342_v51  ;;  %v7343_v17 = vunpack.i.l.bf16 %v7342_v51  ;;  %2350 = vst [vmem:[#allocation2 + $0x278] sm:$0xe0] %v2270_v62 }
  0xe7   : > { %2349 = vst [vmem:[#allocation2 + $0x2d0] sm:$0xe0] %v2269_v56  ;;  %2068 = vst [vmem:[#allocation2 + $0x2d0] sm:$0x1c] %v1988_v16  ;;  %7636 = vrot.lane.b32.xlu1 %v8631_v41, %s8057_s17  ;;  %7631 = vrot.lane.b32.xlu0 %v8631_v41, %s8059_s19  ;;  %v2629_v16 = vld [vmem:[#allocation2 + $0x88] sm:$0xff] }
  0xe8   : > { %2069 = vst [vmem:[#allocation2 + $0x278] sm:$0x1c] %v1989_v14  ;;  %v2493_v10 = vsel %vm2462_vm3, %v7348_v11, %v10664_v31  ;;  %v2494_v53 = vsel %vm2462_vm3, %v7344_v35, %v7348_v11  ;;  %v2495_v19 = vsel %vm2462_vm3, %v7343_v17, %v7344_v35  ;;  %v2496_v28 = vsel %vm2462_vm3, %v7249_v54, %v7343_v17  ;;  %v8734_v47 = vpop.permute.xlu1 %7356  ;;  %v8736_v58 = vpop.permute.xlu0 %7351 }
  0xe9   : > { %6326 = vmatmul.mubr.msk.bf16.vlgmr.msra.gmra.mxu0 %vm2802_vm10, %v8710_v32  ;;  %2511 = vst [vmem:[#allocation2 + $0x3f0] sm:$0x7] %v2493_v10  ;;  %2510 = vst [vmem:[#allocation2 + $0x2f0] sm:$0x7] %v2494_v53  ;;  %6327 = vmatmul.mubr.msk.bf16.vlgmr.msra.gmra.mxu1 %vm2802_vm10, %v8710_v32  ;;  %v7359_v54 = vunpack.i.h.bf16 %v8734_v47  ;;  %v7358_v22 = vunpack.i.l.bf16 %v8734_v47  ;;  %v7354_v56 = vunpack.i.h.bf16 %v8736_v58  ;;  %v7353_v62 = vunpack.i.l.bf16 %v8736_v58 }
  0xea   : > { %2508 = vst [vmem:[#allocation2 + $0x178] sm:$0x7] %v2496_v28  ;;  %2509 = vst [vmem:[#allocation2 + $0x1e8] sm:$0x7] %v2495_v19  ;;  %3048 = vmatprep.mubr.bf16.mxu0 %v8065_v42  ;;  %3091 = vmatprep.mubr.bf16.mxu1 %v8065_v42  ;;  %v2749_v52 = vpack.c.bf16 %v2669_v18, %v2629_v16  ;;  %v1429_v14 = vcombine.low %v8216_v24, %v8216_v24 }
  0xeb   : > { %7646 = vrot.lane.b32.xlu1 %v8667_v49, %s8058_s18  ;;  %7641 = vrot.lane.b32.xlu0 %v8613_v61, %s8064_s26  ;;  %v931_v51 = vsel %vm897_vm5, %v7358_v22, %v7359_v54  ;;  %v932_v11 = vsel %vm897_vm5, %v7294_v21, %v7358_v22  ;;  %v650_v35 = vsel %vm616_vm6, %v7353_v62, %v7354_v56 }
  0xec   : > { %v651_v24 = vsel %vm616_vm6, %v7289_v23, %v7353_v62  ;;  %v983_v61 = vrot.slane %v932_v11, 2  ;;  %v984_v17 = vrot.slane %v931_v51, 2  ;;  %v703_v53 = vrot.slane %v650_v35, 5  ;;  %v8772_v19 = vpop.permute.xlu1 %7366  ;;  %v8774_v2 = vpop.permute.xlu0 %7361  ;;  %1479 = vst [vmem:[#allocation2 + $0x40] sm:$0x70] %v1429_v14  ;;  %v2630_v23 = vld [vmem:[#allocation2 + $0x448] sm:$0xff] }
  0xed   : > { %v702_v10 = vrot.slane %v651_v24, 5  ;;  %v7369_v21 = vunpack.i.h.bf16 %v8772_v19  ;;  %v7368_v28 = vunpack.i.l.bf16 %v8772_v19  ;;  %v7364_v18 = vunpack.i.h.bf16 %v8774_v2 }
  0xee   : > { %v7363_v0 = vunpack.i.l.bf16 %v8774_v2  ;;  %1063 = vst [vmem:[#allocation2 + $0x300] ss:$44 sps:$4 sm:$0xc1] %v983_v61   ;;  %1064 = vst [vmem:[#allocation2 + $0x4a8] ss:$-100 sps:$4 sm:$0xc1] %v984_v17   ;;  %v2823_v62 = vand.u32 %v8491_v4, %v2749_v52  ;;  %v8787_v16 = vcombine.high %v8260_v39, %v8260_v39 }
  0xef   : > { %782 = vst [vmem:[#allocation2 + $0x328] sm:$0x38] %v702_v10  ;;  %783 = vst [vmem:[#allocation2 + $0x440] sm:$0x38] %v703_v53  ;;  %7656 = vrot.lane.b32.xlu1 %v8667_v49, %s8057_s17  ;;  %7651 = vrot.lane.b32.xlu0 %v8667_v49, %s8059_s19  ;;  %v2632_v22 = vld [vmem:[#allocation2 + $0x2d0] sm:$0xff]  ;;  %v489_v14 = vsel %vm455_vm9, %v7368_v28, %v7369_v21  ;;  %v490_v51 = vsel %vm455_vm9, %v7309_v43, %v7368_v28 }
  0xf0   : > { %v1252_v11 = vsel %vm1218_vm8, %v7363_v0, %v7364_v18  ;;  %v1253_v52 = vsel %vm1218_vm8, %v7299_v44, %v7363_v0  ;;  %v2672_v24 = vld [vmem:[#allocation2 + $0x2f0] sm:$0x7]  ;;  %501 = vst [vmem:[#allocation2 + $0x328] sm:$0x7] %v490_v51  ;;  %502 = vst [vmem:[#allocation2 + $0x440] sm:$0x7] %v489_v14  ;;  %v8805_v10 = vpop.permute.xlu1 %7376  ;;  %v8807_v43 = vpop.permute.xlu0 %7371 }
  0xf1   : > { %v2670_v35 = vld [vmem:[#allocation2 + $0x178] sm:$0x7]  ;;  %v2671_v61 = vld [vmem:[#allocation2 + $0x1e8] sm:$0x7]  ;;  %v1304_v17 = vrot.slane %v1253_v52, 7  ;;  %v1305_v34 = vrot.slane %v1252_v11, 7  ;;  %v2752_v28 = vpack.c.bf16 %v2672_v24, %v2632_v22  ;;  %v7379_v15 = vunpack.i.h.bf16 %v8805_v10 }
  0xf2   : > { %v2750_v53 = vpack.c.bf16 %v2670_v35, %v2630_v23  ;;  %v7378_v46 = vunpack.i.l.bf16 %v8805_v10  ;;  %v7374_v31 = vunpack.i.h.bf16 %v8807_v43  ;;  %v7373_v44 = vunpack.i.l.bf16 %v8807_v43  ;;  %v2631_v0 = vld [vmem:[#allocation2] sm:$0xff] }
  0xf3   : > { %1384 = vst [vmem:[#allocation2 + $0x300] sm:$0xe] %v1304_v17  ;;  %1385 = vst [vmem:[#allocation2 + $0x4a8] sm:$0xe] %v1305_v34  ;;  %7666 = vrot.lane.b32.xlu1 %v8667_v49, %s8060_s20  ;;  %7661 = vrot.lane.b32.xlu0 %v8631_v41, %s8060_s20  ;;  %v2832_v22 = vand.u32 %v8491_v4, %v2752_v28  ;;  %v2751_v14 = vpack.c.bf16 %v2671_v61, %v2631_v0  ;;  %v2549_v0 = vld [vmem:[#allocation2 + $0x450] sm:$0xff] }
  0xf4   : > { %v2826_v23 = vand.u32 %v8491_v4, %v2750_v53  ;;  %v929_v51 = vsel %vm897_vm5, %v7378_v46, %v7379_v15  ;;  %v930_v11 = vsel %vm897_vm5, %v7359_v54, %v7378_v46  ;;  %v648_v41 = vsel %vm616_vm6, %v7373_v44, %v7374_v31  ;;  %v8835_v17 = vpop.permute.xlu1 %7386  ;;  %v8837_v47 = vpop.permute.xlu0 %7381 }
  0xf5   : > { %v649_v49 = vsel %vm616_vm6, %v7354_v56, %v7373_v44  ;;  %v985_v52 = vrot.slane %v930_v11, 2  ;;  %v986_v35 = vrot.slane %v929_v51, 2  ;;  %v705_v61 = vrot.slane %v648_v41, 5  ;;  %3071 = vmatprep.subr.bf16.mxu1 %v2832_v22 }
  0xf6   : > { %v704_v24 = vrot.slane %v649_v49, 5  ;;  %3028 = vmatprep.subr.bf16.mxu0 %v2826_v23  ;;  %v7389_v54 = vunpack.i.h.bf16 %v8835_v17  ;;  %v7388_v34 = vunpack.i.l.bf16 %v8835_v17  ;;  %v7384_v53 = vunpack.i.h.bf16 %v8837_v47 }
  0xf7   : > { %v7383_v58 = vunpack.i.l.bf16 %v8837_v47  ;;  %3029 = vmatpush1.bf16.msra.mxu0 %v2823_v62  ;;  %1065 = vst [vmem:[#allocation2 + $0x218] ss:$356 sps:$4 sm:$0xc1] %v985_v52   ;;  %1066 = vst [vmem:[#allocation2 + $0x168] ss:$-92 sps:$4 sm:$0xc1] %v986_v35   ;;  %v2829_v56 = vand.u32 %v8491_v4, %v2751_v14  ;;  %7676 = vrot.lane.b32.xlu1 %v8742_v25, %s8061_s23  ;;  %v8850_v28 = vpack.i.bf16 %v8253_v38, %v8587_v57 }
  0xf8   : > { %784 = vst [vmem:[#allocation2 + $0x378] sm:$0x38] %v704_v24  ;;  %785 = vst [vmem:[#allocation2 + $0x108] sm:$0x38] %v705_v61  ;;  %7671 = vrot.lane.b32.xlu0 %v8742_v25, %s8062_s24  ;;  %v487_v62 = vsel %vm455_vm9, %v7388_v34, %v7389_v54  ;;  %v488_v46 = vsel %vm455_vm9, %v7369_v21, %v7388_v34  ;;  %v8868_v19 = vpop.permute.xlu1 %7396  ;;  %v7392_v14 = vpop.permute.xlu0 %7391  ;;  %v8872_v21 = vpack.i.bf16 %v8787_v16, %v8260_v39  ;;  %v2589_v52 = vld [vmem:[#allocation2 + $0x48] sm:$0xff] }
  0xf9   : > { %v1250_v44 = vsel %vm1218_vm8, %v7383_v58, %v7384_v53  ;;  %v1251_v57 = vsel %vm1218_vm8, %v7364_v18, %v7383_v58  ;;  %503 = vst [vmem:[#allocation2 + $0x378] sm:$0x7] %v488_v46  ;;  %504 = vst [vmem:[#allocation2 + $0x108] sm:$0x7] %v487_v62  ;;  %3072 = vmatpush1.bf16.msra.mxu1 %v2829_v56  ;;  %v7399_v51 = vunpack.i.h.bf16 %v8868_v19  ;;  %v7398_v2 = vunpack.i.l.bf16 %v8868_v19  ;;  %v2550_v18 = vld [vmem:[#allocation2 + $0x328] sm:$0xff] }
  0xfa   : > { %v1306_v23 = vrot.slane %v1251_v57, 7  ;;  %v1307_v22 = vrot.slane %v1250_v44, 7  ;;  %v7394_v11 = vunpack.i.h.bf16 %v7392_v14  ;;  %v7393_v41 = vunpack.i.l.bf16 %v7392_v14  ;;  %v2590_v49 = vld [vmem:[#allocation2 + $0x300] sm:$0xff] }
  0xfb   : > { %7686 = vrot.lane.b32.xlu1 %v8742_v25, %s8064_s26  ;;  %v2710_v35 = vpack.c.bf16 %v2590_v49, %v2550_v18  ;;  %v2709_v24 = vpack.c.bf16 %v2589_v52, %v2549_v0  ;;  %v1430_v61 = vcombine.low %v8241_v33, %v8241_v33  ;;  %v1929_v34 = vsel %vm1900_vm2, %v7398_v2, %v7399_v51  ;;  %v2591_v18 = vld [vmem:[#allocation2 + $0x4a8] sm:$0xff] }
  0xfc   : > { %1386 = vst [vmem:[#allocation2 + $0x218] sm:$0xe] %v1306_v23  ;;  %1387 = vst [vmem:[#allocation2 + $0x168] sm:$0xe] %v1307_v22  ;;  %7681 = vrot.lane.b32.xlu0 %v8742_v25, %s8063_s25  ;;  %v1930_v58 = vsel %vm1900_vm2, %v7334_v8, %v7398_v2  ;;  %v1608_v56 = vsel %vm1579_vm1, %v7393_v41, %v7394_v11  ;;  %v1609_v25 = vsel %vm1579_vm1, %v7329_v48, %v7393_v41  ;;  %v8896_v57 = vpop.permute.xlu1 %7406  ;;  %v7402_v0 = vpop.permute.xlu0 %7401 }
  0xfd   : > { %v1990_v62 = vrot.slane %v1930_v58, 6  ;;  %v1991_v33 = vrot.slane %v1929_v34, 6  ;;  %v1669_v46 = vrot.slane %v1609_v25, 1  ;;  %v1670_v44 = vrot.slane %v1608_v56, 1  ;;  %3030 = vmatprep.subr.bf16.mxu0 %v2710_v35  ;;  %1481 = vst [vmem:[#allocation2 + $0x250] sm:$0x70] %v1430_v61 }
  0xfe   : > { %v7409_v36 = vunpack.i.h.bf16 %v8896_v57  ;;  %v7408_v8 = vunpack.i.l.bf16 %v8896_v57  ;;  %v7404_v23 = vunpack.i.h.bf16 %v7402_v0  ;;  %v7403_v22 = vunpack.i.l.bf16 %v7402_v0  ;;  %3031 = vmatpush1.bf16.msra.mxu0 %v2709_v24 }
  0xff   : > { %2070 = vst [vmem:[#allocation2 + $0x478] sm:$0x1c] %v1990_v62  ;;  %2071 = vst [vmem:[#allocation2 + $0x90] sm:$0x1c] %v1991_v33  ;;  %7696 = vrot.lane.b32.xlu1 %v8850_v28, %s8061_s23  ;;  %v2551_v62 = vld [vmem:[#allocation2 + $0x440] sm:$0xff]  ;;  %v8961_v19 = vpack.i.bf16 %v8906_v9, %v8298_v50  ;;  %v9136_v57 = vcombine.high %v8346_v7, %v8346_v7 }
 0x100   : > { %1749 = vst [vmem:[#allocation2 + $0x478] ss:$-644 sps:$4 sm:$0x83] %v1669_v46   ;;  %1750 = vst [vmem:[#allocation2 + $0x90] ss:$-124 sps:$4 sm:$0x83] %v1670_v44   ;;  %7691 = vrot.lane.b32.xlu0 %v8850_v28, %s8062_s24  ;;  %v1606_v48 = vsel %vm1579_vm1, %v7408_v8, %v7409_v36  ;;  %v1607_v14 = vsel %vm1579_vm1, %v7394_v11, %v7408_v8  ;;  %v2210_v2 = vsel %vm2181_vm0, %v7403_v22, %v7404_v23  ;;  %v8920_v61 = vpop.permute.xlu1 %7416  ;;  %v8922_v34 = vpop.permute.xlu0 %7411 }
 0x101   : > { %v2211_v41 = vsel %vm2181_vm0, %v7339_v45, %v7403_v22  ;;  %v1671_v49 = vrot.slane %v1607_v14, 1  ;;  %v1672_v52 = vrot.slane %v1606_v48, 1  ;;  %v2272_v24 = vrot.slane %v2210_v2, 3  ;;  %6328 = vmatmul.mubr.msk.bf16.vlgmr.msra.gmra.mxu0 %vm2802_vm10, %v8710_v32  ;;  %v2552_v56 = vld [vmem:[#allocation2 + $0x378] sm:$0xff] }
 0x102   : > { %v2271_v35 = vrot.slane %v2211_v41, 3  ;;  %v7419_v11 = vunpack.i.h.bf16 %v8920_v61  ;;  %v7418_v58 = vunpack.i.l.bf16 %v8920_v61  ;;  %v7414_v20 = vunpack.i.h.bf16 %v8922_v34  ;;  %3134 = vmatprep.mubr.bf16.mxu0 %v8065_v42 }
 0x103   : > { %v7413_v45 = vunpack.i.l.bf16 %v8922_v34  ;;  %v2592_v25 = vld [vmem:[#allocation2 + $0x218] sm:$0xff]  ;;  %1751 = vst [vmem:[#allocation2 + $0x138] ss:$196 sps:$4 sm:$0x83] %v1671_v49   ;;  %2352 = vst [vmem:[#allocation2 + $0x90] sm:$0xe0] %v2272_v24  ;;  %7706 = vrot.lane.b32.xlu1 %v8872_v21, %s8058_s18  ;;  %v2711_v46 = vpack.c.bf16 %v2591_v18, %v2551_v62  ;;  %v1431_v44 = vcombine.low %v8253_v38, %v8253_v38 }
 0x104   : > { %1752 = vst [vmem:[#allocation2 + $0x438] ss:$-332 sps:$4 sm:$0x83] %v1672_v52   ;;  %2351 = vst [vmem:[#allocation2 + $0x478] sm:$0xe0] %v2271_v35  ;;  %7701 = vrot.lane.b32.xlu0 %v8850_v28, %s8063_s25  ;;  %v2712_v33 = vpack.c.bf16 %v2592_v25, %v2552_v56  ;;  %v2208_v0 = vsel %vm2181_vm0, %v7418_v58, %v7419_v11  ;;  %v2209_v8 = vsel %vm2181_vm0, %v7404_v23, %v7418_v58  ;;  %v8951_v18 = vpop.permute.xlu1 %7426  ;;  %v7422_v49 = vpop.permute.xlu0 %7421 }
 0x105   : > { %v1927_v22 = vsel %vm1900_vm2, %v7413_v45, %v7414_v20  ;;  %v1928_v48 = vsel %vm1900_vm2, %v7399_v51, %v7413_v45  ;;  %v2273_v14 = vrot.slane %v2209_v8, 3  ;;  %v2274_v38 = vrot.slane %v2208_v0, 3  ;;  %1483 = vst [vmem:[#allocation2 + $0x318] sm:$0x70] %v1431_v44  ;;  %v2673_v62 = vld [vmem:[#allocation2 + $0x3f0] sm:$0x7] }
 0x106   : > { %v1992_v2 = vrot.slane %v1928_v48, 6  ;;  %v1993_v41 = vrot.slane %v1927_v22, 6  ;;  %3073 = vmatprep.subr.bf16.mxu1 %v2712_v33  ;;  %v7429_v23 = vunpack.i.h.bf16 %v8951_v18  ;;  %v7428_v52 = vunpack.i.l.bf16 %v8951_v18  ;;  %v2633_v48 = vld [vmem:[#allocation2 + $0x278] sm:$0xff] }
 0x107   : > { %v7424_v35 = vunpack.i.h.bf16 %v7422_v49  ;;  %v7423_v24 = vunpack.i.l.bf16 %v7422_v49  ;;  %3074 = vmatpush1.bf16.msra.mxu1 %v2711_v46  ;;  %2353 = vst [vmem:[#allocation2 + $0x138] sm:$0xe0] %v2273_v14  ;;  %2354 = vst [vmem:[#allocation2 + $0x438] sm:$0xe0] %v2274_v38  ;;  %7716 = vrot.lane.b32.xlu1 %v8872_v21, %s8057_s17  ;;  %v10667_v56 = vunpack.i.h.bf16 %v8712_v5  ;;  %v8983_v44 = vpack.i.bf16 %v8260_v39, %v8641_v55 }
 0x108   : > { %2072 = vst [vmem:[#allocation2 + $0x138] sm:$0x1c] %v1992_v2  ;;  %2073 = vst [vmem:[#allocation2 + $0x438] sm:$0x1c] %v1993_v41  ;;  %7711 = vrot.lane.b32.xlu0 %v8872_v21, %s8059_s19  ;;  %v2489_v51 = vsel %vm2462_vm3, %v7428_v52, %v7429_v23  ;;  %v8975_v33 = vpop.permute.xlu1 %7436  ;;  %v8977_v46 = vpop.permute.xlu0 %7431  ;;  %v2753_v14 = vpack.c.bf16 %v2673_v62, %v2633_v48 }
 0x109   : > { %v2490_v58 = vsel %vm2462_vm3, %v7424_v35, %v7428_v52  ;;  %v2491_v45 = vsel %vm2462_vm3, %v7423_v24, %v7424_v35  ;;  %v2492_v25 = vsel %vm2462_vm3, %v10667_v56, %v7423_v24  ;;  %2515 = vst [vmem:[#allocation2 + $0xf0] sm:$0x7] %v2489_v51  ;;  %v7439_v5 = vunpack.i.h.bf16 %v8975_v33 }
 0x10a   : > { %2514 = vst [vmem:[#allocation2 + $0x1b8] sm:$0x7] %v2490_v58  ;;  %2512 = vst [vmem:[#allocation2 + $0x170] sm:$0x7] %v2492_v25  ;;  %6329 = vmatmul.mubr.msk.bf16.vlgmr.msra.gmra.mxu1 %vm2802_vm10, %v8710_v32  ;;  %v7438_v0 = vunpack.i.l.bf16 %v8975_v33  ;;  %v7434_v8 = vunpack.i.h.bf16 %v8977_v46  ;;  %v7433_v22 = vunpack.i.l.bf16 %v8977_v46  ;;  %v2835_v56 = vand.u32 %v8491_v4, %v2753_v14 }
 0x10b   : > { %2513 = vst [vmem:[#allocation2 + $0x198] sm:$0x7] %v2491_v45  ;;  %3177 = vmatprep.mubr.bf16.mxu1 %v8065_v42  ;;  %7726 = vrot.lane.b32.xlu1 %v8961_v19, %s8058_s18  ;;  %v9021_v25 = vcombine.high %v8329_v59, %v8329_v59 }
 0x10c   : > { %7721 = vrot.lane.b32.xlu0 %v8850_v28, %s8064_s26  ;;  %v927_v55 = vsel %vm897_vm5, %v7438_v0, %v7439_v5  ;;  %v928_v38 = vsel %vm897_vm5, %v7379_v15, %v7438_v0  ;;  %v646_v2 = vsel %vm616_vm6, %v7433_v22, %v7434_v8  ;;  %v647_v41 = vsel %vm616_vm6, %v7374_v31, %v7433_v22  ;;  %v9006_v24 = vpop.permute.xlu1 %7446  ;;  %v9008_v51 = vpop.permute.xlu0 %7441  ;;  %v2634_v31 = vld [vmem:[#allocation2 + $0x478] sm:$0xff] }
 0x10d   : > { %v987_v49 = vrot.slane %v928_v38, 2  ;;  %v988_v52 = vrot.slane %v927_v55, 2  ;;  %v706_v28 = vrot.slane %v647_v41, 5  ;;  %v707_v35 = vrot.slane %v646_v2, 5 }
 0x10e   : > { %v7449_v10 = vunpack.i.h.bf16 %v9006_v24  ;;  %v7448_v15 = vunpack.i.l.bf16 %v9006_v24  ;;  %v7444_v58 = vunpack.i.h.bf16 %v9008_v51  ;;  %v7443_v45 = vunpack.i.l.bf16 %v9008_v51 }
 0x10f   : > { %1067 = vst [vmem:[#allocation2 + $0x1f0] ss:$668 sps:$4 sm:$0xc1] %v987_v49   ;;  %1068 = vst [vmem:[#allocation2 + $0x10] ss:$772 sps:$4 sm:$0xc1] %v988_v52   ;;  %7736 = vrot.lane.b32.xlu1 %v8961_v19, %s8057_s17 }
 0x110   : > { %786 = vst [vmem:[#allocation2 + $0x488] sm:$0x38] %v706_v28  ;;  %787 = vst [vmem:[#allocation2 + $0x310] sm:$0x38] %v707_v35  ;;  %7731 = vrot.lane.b32.xlu0 %v8961_v19, %s8059_s19  ;;  %v2636_v43 = vld [vmem:[#allocation2 + $0x138] sm:$0xff]  ;;  %v485_v62 = vsel %vm455_vm9, %v7448_v15, %v7449_v10  ;;  %v486_v33 = vsel %vm455_vm9, %v7389_v54, %v7448_v15  ;;  %v1248_v46 = vsel %vm1218_vm8, %v7443_v45, %v7444_v58  ;;  %v9039_v38 = vpop.permute.xlu1 %7456  ;;  %v9041_v54 = vpop.permute.xlu0 %7451  ;;  %v2635_v28 = vld [vmem:[#allocation2 + $0x90] sm:$0xff] }
 0x111   : > { %v1249_v0 = vsel %vm1218_vm8, %v7384_v53, %v7443_v45  ;;  %v2674_v22 = vld [vmem:[#allocation2 + $0x170] sm:$0x7]  ;;  %v2676_v48 = vld [vmem:[#allocation2 + $0x1b8] sm:$0x7]  ;;  %505 = vst [vmem:[#allocation2 + $0x488] sm:$0x7] %v486_v33  ;;  %v7459_v49 = vunpack.i.h.bf16 %v9039_v38  ;;  %v7458_v47 = vunpack.i.l.bf16 %v9039_v38  ;;  %v7454_v52 = vunpack.i.h.bf16 %v9041_v54 }
 0x112   : > { %v2675_v14 = vld [vmem:[#allocation2 + $0x198] sm:$0x7]  ;;  %506 = vst [vmem:[#allocation2 + $0x310] sm:$0x7] %v485_v62  ;;  %v1308_v55 = vrot.slane %v1249_v0, 7  ;;  %v1309_v17 = vrot.slane %v1248_v46, 7  ;;  %v2754_v2 = vpack.c.bf16 %v2674_v22, %v2634_v31  ;;  %v2756_v41 = vpack.c.bf16 %v2676_v48, %v2636_v43 }
 0x113   : > { %v7453_v53 = vunpack.i.l.bf16 %v9041_v54  ;;  %7746 = vrot.lane.b32.xlu1 %v8961_v19, %s8060_s20  ;;  %v2755_v45 = vpack.c.bf16 %v2675_v14, %v2635_v28  ;;  %v925_v31 = vsel %vm897_vm5, %v7458_v47, %v7459_v49  ;;  %v926_v43 = vsel %vm897_vm5, %v7439_v5, %v7458_v47 }
 0x114   : > { %1388 = vst [vmem:[#allocation2 + $0x1f0] sm:$0xe] %v1308_v55  ;;  %1389 = vst [vmem:[#allocation2 + $0x10] sm:$0xe] %v1309_v17  ;;  %7741 = vrot.lane.b32.xlu0 %v8872_v21, %s8060_s20  ;;  %v2838_v35 = vand.u32 %v8491_v4, %v2754_v2  ;;  %v2844_v15 = vand.u32 %v8491_v4, %v2756_v41  ;;  %v989_v62 = vrot.slane %v926_v43, 2  ;;  %v990_v33 = vrot.slane %v925_v31, 2  ;;  %v9065_v22 = vpop.permute.xlu1 %7466  ;;  %v9067_v48 = vpop.permute.xlu0 %7461 }
 0x115   : > { %v644_v19 = vsel %vm616_vm6, %v7453_v53, %v7454_v52  ;;  %v645_v21 = vsel %vm616_vm6, %v7434_v8, %v7453_v53  ;;  %v7469_v5 = vunpack.i.h.bf16 %v9065_v22  ;;  %v7468_v14 = vunpack.i.l.bf16 %v9065_v22  ;;  %v2593_v53 = vld [vmem:[#allocation2 + $0x168] sm:$0xff] }
 0x116   : > { %v708_v46 = vrot.slane %v645_v21, 5  ;;  %v709_v0 = vrot.slane %v644_v19, 5  ;;  %3114 = vmatprep.subr.bf16.mxu0 %v2838_v35  ;;  %3157 = vmatprep.subr.bf16.mxu1 %v2844_v15  ;;  %v7464_v55 = vunpack.i.h.bf16 %v9067_v48  ;;  %v7463_v17 = vunpack.i.l.bf16 %v9067_v48  ;;  %1069 = vst [vmem:[#allocation2 + $0x1f8] ss:$764 sps:$4 sm:$0xc1] %v989_v62   ;;  %v2553_v62 = vld [vmem:[#allocation2 + $0x108] sm:$0xff] }
 0x117   : > { %3115 = vmatpush1.bf16.msra.mxu0 %v2835_v56  ;;  %1070 = vst [vmem:[#allocation2 + $0x2e8] ss:$36 sps:$4 sm:$0xc1] %v990_v33   ;;  %v2841_v8 = vand.u32 %v8491_v4, %v2755_v45  ;;  %7756 = vrot.lane.b32.xlu1 %v8983_v44, %s8061_s23  ;;  %v9080_v2 = vpack.i.bf16 %v8298_v50, %v8787_v16 }
 0x118   : > { %788 = vst [vmem:[#allocation2 + $0x4f0] sm:$0x38] %v708_v46  ;;  %789 = vst [vmem:[#allocation2 + $0x308] sm:$0x38] %v709_v0  ;;  %7751 = vrot.lane.b32.xlu0 %v8983_v44, %s8062_s24  ;;  %v483_v56 = vsel %vm455_vm9, %v7468_v14, %v7469_v5  ;;  %v484_v41 = vsel %vm455_vm9, %v7449_v10, %v7468_v14  ;;  %v1246_v47 = vsel %vm1218_vm8, %v7463_v17, %v7464_v55  ;;  %v9098_v24 = vpop.permute.xlu1 %7476  ;;  %v7472_v15 = vpop.permute.xlu0 %7471  ;;  %v2554_v19 = vld [vmem:[#allocation2 + $0x488] sm:$0xff] }
 0x119   : > { %v1247_v16 = vsel %vm1218_vm8, %v7444_v58, %v7463_v17  ;;  %507 = vst [vmem:[#allocation2 + $0x4f0] sm:$0x7] %v484_v41  ;;  %508 = vst [vmem:[#allocation2 + $0x308] sm:$0x7] %v483_v56  ;;  %v1311_v35 = vrot.slane %v1246_v47, 7  ;;  %3158 = vmatpush1.bf16.msra.mxu1 %v2841_v8  ;;  %v9102_v10 = vpack.i.bf16 %v9021_v25, %v8329_v59  ;;  %v7479_v51 = vunpack.i.h.bf16 %v9098_v24 }
 0x11a   : > { %v1310_v28 = vrot.slane %v1247_v16, 7  ;;  %v1432_v45 = vcombine.low %v8260_v39, %v8260_v39  ;;  %v7478_v58 = vunpack.i.l.bf16 %v9098_v24  ;;  %v7474_v31 = vunpack.i.h.bf16 %v7472_v15 }
 0x11b   : > { %v7473_v43 = vunpack.i.l.bf16 %v7472_v15  ;;  %v2594_v21 = vld [vmem:[#allocation2 + $0x1f0] sm:$0xff]  ;;  %1391 = vst [vmem:[#allocation2 + $0x2e8] sm:$0xe] %v1311_v35  ;;  %7766 = vrot.lane.b32.xlu1 %v8983_v44, %s8064_s26  ;;  %v2713_v46 = vpack.c.bf16 %v2593_v53, %v2553_v62  ;;  %v9191_v24 = vpack.i.bf16 %v9136_v57, %v8346_v7 }
 0x11c   : > { %1390 = vst [vmem:[#allocation2 + $0x1f8] sm:$0xe] %v1310_v28  ;;  %7761 = vrot.lane.b32.xlu0 %v8983_v44, %s8063_s25  ;;  %v2714_v33 = vpack.c.bf16 %v2594_v21, %v2554_v19  ;;  %1485 = vst [vmem:[#allocation2 + $0x80] sm:$0x70] %v1432_v45  ;;  %v1925_v39 = vsel %vm1900_vm2, %v7478_v58, %v7479_v51  ;;  %v1926_v0 = vsel %vm1900_vm2, %v7414_v20, %v7478_v58  ;;  %v9126_v47 = vpop.permute.xlu1 %7486  ;;  %v7482_v16 = vpop.permute.xlu0 %7481  ;;  %v2595_v58 = vld [vmem:[#allocation2 + $0x10] sm:$0xff] }
 0x11d   : > { %v1604_v14 = vsel %vm1579_vm1, %v7473_v43, %v7474_v31  ;;  %v1605_v44 = vsel %vm1579_vm1, %v7409_v36, %v7473_v43  ;;  %v1994_v17 = vrot.slane %v1926_v0, 6  ;;  %v1995_v8 = vrot.slane %v1925_v39, 6 }
 0x11e   : > { %v1673_v56 = vrot.slane %v1605_v44, 1  ;;  %v1674_v41 = vrot.slane %v1604_v14, 1  ;;  %3116 = vmatprep.subr.bf16.mxu0 %v2714_v33  ;;  %v7489_v34 = vunpack.i.h.bf16 %v9126_v47  ;;  %v7488_v20 = vunpack.i.l.bf16 %v9126_v47  ;;  %v2555_v44 = vld [vmem:[#allocation2 + $0x310] sm:$0xff] }
 0x11f   : > { %v7484_v53 = vunpack.i.h.bf16 %v7482_v16  ;;  %v7483_v28 = vunpack.i.l.bf16 %v7482_v16  ;;  %3117 = vmatpush1.bf16.msra.mxu0 %v2713_v46  ;;  %2074 = vst [vmem:[#allocation2 + $0x2c8] sm:$0x1c] %v1994_v17  ;;  %2075 = vst [vmem:[#allocation2 + $0x3e0] sm:$0x1c] %v1995_v8  ;;  %7776 = vrot.lane.b32.xlu1 %v9080_v2, %s8061_s23  ;;  %v2715_v8 = vpack.c.bf16 %v2595_v58, %v2555_v44 }
 0x120   : > { %1753 = vst [vmem:[#allocation2 + $0x2c8] ss:$-108 sps:$4 sm:$0x83] %v1673_v56   ;;  %1754 = vst [vmem:[#allocation2 + $0x3e0] ss:$-380 sps:$4 sm:$0x83] %v1674_v41   ;;  %7771 = vrot.lane.b32.xlu0 %v9080_v2, %s8062_s24  ;;  %v1602_v36 = vsel %vm1579_vm1, %v7488_v20, %v7489_v34  ;;  %v1603_v35 = vsel %vm1579_vm1, %v7474_v31, %v7488_v20  ;;  %v9150_v33 = vpop.permute.xlu1 %7496  ;;  %v9152_v46 = vpop.permute.xlu0 %7491  ;;  %v1433_v56 = vcombine.low %v8298_v50, %v8298_v50 }
 0x121   : > { %v2206_v15 = vsel %vm2181_vm0, %v7483_v28, %v7484_v53  ;;  %v2207_v45 = vsel %vm2181_vm0, %v7419_v11, %v7483_v28  ;;  %v1675_v43 = vrot.slane %v1603_v35, 1  ;;  %v1676_v19 = vrot.slane %v1602_v36, 1  ;;  %v2556_v0 = vld [vmem:[#allocation2 + $0x4f0] sm:$0xff] }
 0x122   : > { %v2275_v21 = vrot.slane %v2207_v45, 3  ;;  %v2276_v62 = vrot.slane %v2206_v15, 3  ;;  %6330 = vmatmul.mubr.msk.bf16.vlgmr.msra.gmra.mxu0 %vm2802_vm10, %v8710_v32  ;;  %v7499_v31 = vunpack.i.h.bf16 %v9150_v33  ;;  %v7498_v39 = vunpack.i.l.bf16 %v9150_v33  ;;  %1487 = vst [vmem:[#allocation2 + $0x228] sm:$0x70] %v1433_v56 }
 0x123   : > { %v7494_v61 = vunpack.i.h.bf16 %v9152_v46  ;;  %v7493_v11 = vunpack.i.l.bf16 %v9152_v46  ;;  %v2596_v14 = vld [vmem:[#allocation2 + $0x1f8] sm:$0xff]  ;;  %3220 = vmatprep.mubr.bf16.mxu0 %v8065_v42  ;;  %1755 = vst [vmem:[#allocation2 + $0x130] ss:$404 sps:$4 sm:$0x83] %v1675_v43   ;;  %7786 = vrot.lane.b32.xlu1 %v9102_v10, %s8058_s18  ;;  %v9366_v47 = vcombine.high %v8532_v40, %v8532_v40 }
 0x124   : > { %1756 = vst [vmem:[#allocation2 + $0x298] ss:$-340 sps:$4 sm:$0x83] %v1676_v19   ;;  %2355 = vst [vmem:[#allocation2 + $0x2c8] sm:$0xe0] %v2275_v21  ;;  %7781 = vrot.lane.b32.xlu0 %v9080_v2, %s8063_s25  ;;  %v2716_v17 = vpack.c.bf16 %v2596_v14, %v2556_v0  ;;  %v2204_v41 = vsel %vm2181_vm0, %v7498_v39, %v7499_v31  ;;  %v2205_v16 = vsel %vm2181_vm0, %v7484_v53, %v7498_v39  ;;  %v9181_v45 = vpop.permute.xlu1 %7506  ;;  %v7502_v58 = vpop.permute.xlu0 %7501 }
 0x125   : > { %2356 = vst [vmem:[#allocation2 + $0x3e0] sm:$0xe0] %v2276_v62  ;;  %v1923_v20 = vsel %vm1900_vm2, %v7493_v11, %v7494_v61  ;;  %v1924_v28 = vsel %vm1900_vm2, %v7479_v51, %v7493_v11  ;;  %v2277_v36 = vrot.slane %v2205_v16, 3  ;;  %v2278_v50 = vrot.slane %v2204_v41, 3  ;;  %v2677_v0 = vld [vmem:[#allocation2 + $0xf0] sm:$0x7] }
 0x126   : > { %v1996_v35 = vrot.slane %v1924_v28, 6  ;;  %v1997_v15 = vrot.slane %v1923_v20, 6  ;;  %3159 = vmatprep.subr.bf16.mxu1 %v2716_v17  ;;  %v7509_v53 = vunpack.i.h.bf16 %v9181_v45  ;;  %v7508_v43 = vunpack.i.l.bf16 %v9181_v45  ;;  %v2637_v41 = vld [vmem:[#allocation2 + $0x438] sm:$0xff] }
 0x127   : > { %v7504_v19 = vunpack.i.h.bf16 %v7502_v58  ;;  %v7503_v21 = vunpack.i.l.bf16 %v7502_v58  ;;  %3160 = vmatpush1.bf16.msra.mxu1 %v2715_v8  ;;  %2357 = vst [vmem:[#allocation2 + $0x130] sm:$0xe0] %v2277_v36  ;;  %2358 = vst [vmem:[#allocation2 + $0x298] sm:$0xe0] %v2278_v50  ;;  %7796 = vrot.lane.b32.xlu1 %v9102_v10, %s8057_s17  ;;  %v9213_v17 = vpack.i.bf16 %v8329_v59, %v8906_v9 }
 0x128   : > { %2076 = vst [vmem:[#allocation2 + $0x130] sm:$0x1c] %v1996_v35  ;;  %2077 = vst [vmem:[#allocation2 + $0x298] sm:$0x1c] %v1997_v15  ;;  %7791 = vrot.lane.b32.xlu0 %v9102_v10, %s8059_s19  ;;  %v2485_v51 = vsel %vm2462_vm3, %v7508_v43, %v7509_v53  ;;  %v9205_v14 = vpop.permute.xlu1 %7516  ;;  %v9207_v44 = vpop.permute.xlu0 %7511 }
 0x129   : > { %v2486_v62 = vsel %vm2462_vm3, %v7504_v19, %v7508_v43  ;;  %v2487_v39 = vsel %vm2462_vm3, %v7503_v21, %v7504_v19  ;;  %v2488_v11 = vsel %vm2462_vm3, %v7429_v23, %v7503_v21  ;;  %2519 = vst [vmem:[#allocation2 + $0x498] sm:$0x7] %v2485_v51  ;;  %v7519_v18 = vunpack.i.h.bf16 %v9205_v14 }
 0x12a   : > { %2518 = vst [vmem:[#allocation2 + $0x4d0] sm:$0x7] %v2486_v62  ;;  %2516 = vst [vmem:[#allocation2 + $0x238] sm:$0x7] %v2488_v11  ;;  %6331 = vmatmul.mubr.msk.bf16.vlgmr.msra.gmra.mxu1 %vm2802_vm10, %v8710_v32  ;;  %v7518_v23 = vunpack.i.l.bf16 %v9205_v14  ;;  %v7514_v8 = vunpack.i.h.bf16 %v9207_v44  ;;  %v7513_v56 = vunpack.i.l.bf16 %v9207_v44  ;;  %v2757_v32 = vpack.c.bf16 %v2677_v0, %v2637_v41 }
 0x12b   : > { %2517 = vst [vmem:[#allocation2 + $0x248] sm:$0x7] %v2487_v39  ;;  %3263 = vmatprep.mubr.bf16.mxu1 %v8065_v42  ;;  %7806 = vrot.lane.b32.xlu1 %v9191_v24, %s8058_s18  ;;  %v2638_v54 = vld [vmem:[#allocation2 + $0x2c8] sm:$0xff]  ;;  %v9251_v51 = vcombine.high %v8480_v63, %v8480_v63 }
 0x12c   : > { %7801 = vrot.lane.b32.xlu0 %v9080_v2, %s8064_s26  ;;  %v923_v9 = vsel %vm897_vm5, %v7518_v23, %v7519_v18  ;;  %v924_v16 = vsel %vm897_vm5, %v7459_v49, %v7518_v23  ;;  %v642_v20 = vsel %vm616_vm6, %v7513_v56, %v7514_v8  ;;  %v643_v28 = vsel %vm616_vm6, %v7454_v52, %v7513_v56  ;;  %v9236_v15 = vpop.permute.xlu1 %7526  ;;  %v9238_v58 = vpop.permute.xlu0 %7521 }
 0x12d   : > { %v991_v36 = vrot.slane %v924_v16, 2  ;;  %v992_v50 = vrot.slane %v923_v9, 2  ;;  %v710_v2 = vrot.slane %v643_v28, 5  ;;  %v711_v35 = vrot.slane %v642_v20, 5  ;;  %v2639_v28 = vld [vmem:[#allocation2 + $0x3e0] sm:$0xff] }
 0x12e   : > { %v7529_v38 = vunpack.i.h.bf16 %v9236_v15  ;;  %v7528_v49 = vunpack.i.l.bf16 %v9236_v15  ;;  %v7524_v43 = vunpack.i.h.bf16 %v9238_v58  ;;  %v7523_v19 = vunpack.i.l.bf16 %v9238_v58 }
 0x12f   : > { %1071 = vst [vmem:[#allocation2 + $0x258] ss:$84 sps:$4 sm:$0xc1] %v991_v36   ;;  %1072 = vst [vmem:[#allocation2 + $0x260] ss:$316 sps:$4 sm:$0xc1] %v992_v50   ;;  %7816 = vrot.lane.b32.xlu1 %v9191_v24, %s8057_s17  ;;  %v2847_v21 = vand.u32 %v8491_v4, %v2757_v32 }
 0x130   : > { %790 = vst [vmem:[#allocation2 + $0x2a8] sm:$0x38] %v710_v2  ;;  %791 = vst [vmem:[#allocation2 + $0x398] sm:$0x38] %v711_v35  ;;  %7811 = vrot.lane.b32.xlu0 %v9191_v24, %s8059_s19  ;;  %v2640_v52 = vld [vmem:[#allocation2 + $0x130] sm:$0xff]  ;;  %v481_v62 = vsel %vm455_vm9, %v7528_v49, %v7529_v38  ;;  %v482_v39 = vsel %vm455_vm9, %v7469_v5, %v7528_v49  ;;  %v1244_v11 = vsel %vm1218_vm8, %v7523_v19, %v7524_v43  ;;  %v9269_v41 = vpop.permute.xlu1 %7536  ;;  %v9271_v5 = vpop.permute.xlu0 %7531 }
 0x131   : > { %v1245_v0 = vsel %vm1218_vm8, %v7464_v55, %v7523_v19  ;;  %v2678_v14 = vld [vmem:[#allocation2 + $0x238] sm:$0x7]  ;;  %v2680_v44 = vld [vmem:[#allocation2 + $0x4d0] sm:$0x7]  ;;  %509 = vst [vmem:[#allocation2 + $0x2a8] sm:$0x7] %v482_v39  ;;  %v7539_v16 = vunpack.i.h.bf16 %v9269_v41  ;;  %v7538_v48 = vunpack.i.l.bf16 %v9269_v41  ;;  %v7534_v20 = vunpack.i.h.bf16 %v9271_v5 }
 0x132   : > { %v2679_v23 = vld [vmem:[#allocation2 + $0x248] sm:$0x7]  ;;  %510 = vst [vmem:[#allocation2 + $0x398] sm:$0x7] %v481_v62  ;;  %v1312_v56 = vrot.slane %v1245_v0, 7  ;;  %v1313_v22 = vrot.slane %v1244_v11, 7  ;;  %v2758_v32 = vpack.c.bf16 %v2678_v14, %v2638_v54  ;;  %v2760_v9 = vpack.c.bf16 %v2680_v44, %v2640_v52 }
 0x133   : > { %v7533_v55 = vunpack.i.l.bf16 %v9271_v5  ;;  %7826 = vrot.lane.b32.xlu1 %v9191_v24, %s8060_s20  ;;  %v2759_v2 = vpack.c.bf16 %v2679_v23, %v2639_v28  ;;  %v921_v35 = vsel %vm897_vm5, %v7538_v48, %v7539_v16  ;;  %v922_v49 = vsel %vm897_vm5, %v7519_v18, %v7538_v48 }
 0x134   : > { %1392 = vst [vmem:[#allocation2 + $0x258] sm:$0xe] %v1312_v56  ;;  %1393 = vst [vmem:[#allocation2 + $0x260] sm:$0xe] %v1313_v22  ;;  %7821 = vrot.lane.b32.xlu0 %v9102_v10, %s8060_s20  ;;  %v2850_v36 = vand.u32 %v8491_v4, %v2758_v32  ;;  %v2856_v50 = vand.u32 %v8491_v4, %v2760_v9  ;;  %v993_v19 = vrot.slane %v922_v49, 2  ;;  %v994_v54 = vrot.slane %v921_v35, 2  ;;  %v9295_v39 = vpop.permute.xlu1 %7546  ;;  %v9297_v11 = vpop.permute.xlu0 %7541 }
 0x135   : > { %v640_v24 = vsel %vm616_vm6, %v7533_v55, %v7534_v20  ;;  %v641_v10 = vsel %vm616_vm6, %v7514_v8, %v7533_v55  ;;  %v7549_v18 = vunpack.i.h.bf16 %v9295_v39  ;;  %v7548_v0 = vunpack.i.l.bf16 %v9295_v39  ;;  %v2597_v32 = vld [vmem:[#allocation2 + $0x2e8] sm:$0xff] }
 0x136   : > { %v712_v52 = vrot.slane %v641_v10, 5  ;;  %v713_v62 = vrot.slane %v640_v24, 5  ;;  %3200 = vmatprep.subr.bf16.mxu0 %v2850_v36  ;;  %3243 = vmatprep.subr.bf16.mxu1 %v2856_v50  ;;  %v7544_v14 = vunpack.i.h.bf16 %v9297_v11  ;;  %v7543_v44 = vunpack.i.l.bf16 %v9297_v11  ;;  %1073 = vst [vmem:[#allocation2 + $0x2c0] ss:$-604 sps:$4 sm:$0xc1] %v993_v19   ;;  %v2557_v49 = vld [vmem:[#allocation2 + $0x308] sm:$0xff] }
 0x137   : > { %3201 = vmatpush1.bf16.msra.mxu0 %v2847_v21  ;;  %1074 = vst [vmem:[#allocation2 + $0x140] ss:$-100 sps:$4 sm:$0xc1] %v994_v54   ;;  %v2853_v8 = vand.u32 %v8491_v4, %v2759_v2  ;;  %7836 = vrot.lane.b32.xlu1 %v9213_v17, %s8061_s23  ;;  %v9310_v23 = vpack.i.bf16 %v8346_v7, %v9021_v25 }
 0x138   : > { %792 = vst [vmem:[#allocation2 + $0x60] sm:$0x38] %v712_v52  ;;  %793 = vst [vmem:[#allocation2 + $0xd8] sm:$0x38] %v713_v62  ;;  %7831 = vrot.lane.b32.xlu0 %v9213_v17, %s8062_s24  ;;  %v479_v21 = vsel %vm455_vm9, %v7548_v0, %v7549_v18  ;;  %v480_v56 = vsel %vm455_vm9, %v7529_v38, %v7548_v0  ;;  %v1242_v22 = vsel %vm1218_vm8, %v7543_v44, %v7544_v14  ;;  %v9328_v15 = vpop.permute.xlu1 %7556  ;;  %v7552_v55 = vpop.permute.xlu0 %7551  ;;  %v2558_v2 = vld [vmem:[#allocation2 + $0x2a8] sm:$0xff] }
 0x139   : > { %v1243_v25 = vsel %vm1218_vm8, %v7524_v43, %v7543_v44  ;;  %511 = vst [vmem:[#allocation2 + $0x60] sm:$0x7] %v480_v56  ;;  %512 = vst [vmem:[#allocation2 + $0xd8] sm:$0x7] %v479_v21  ;;  %v1315_v48 = vrot.slane %v1242_v22, 7  ;;  %3244 = vmatpush1.bf16.msra.mxu1 %v2853_v8  ;;  %v9332_v38 = vpack.i.bf16 %v9251_v51, %v8480_v63  ;;  %v7559_v58 = vunpack.i.h.bf16 %v9328_v15 }
 0x13a   : > { %v1314_v9 = vrot.slane %v1243_v25, 7  ;;  %v1434_v28 = vcombine.low %v8329_v59, %v8329_v59  ;;  %v7558_v43 = vunpack.i.l.bf16 %v9328_v15  ;;  %v7554_v36 = vunpack.i.h.bf16 %v7552_v55 }
 0x13b   : > { %v7553_v50 = vunpack.i.l.bf16 %v7552_v55  ;;  %v2598_v35 = vld [vmem:[#allocation2 + $0x258] sm:$0xff]  ;;  %1395 = vst [vmem:[#allocation2 + $0x140] sm:$0xe] %v1315_v48  ;;  %7846 = vrot.lane.b32.xlu1 %v9213_v17, %s8064_s26  ;;  %v2717_v10 = vpack.c.bf16 %v2597_v32, %v2557_v49  ;;  %v2599_v48 = vld [vmem:[#allocation2 + $0x260] sm:$0xff]  ;;  %v9426_v15 = vpack.i.bf16 %v9366_v47, %v8532_v40 }
 0x13c   : > { %1394 = vst [vmem:[#allocation2 + $0x2c0] sm:$0xe] %v1314_v9  ;;  %7841 = vrot.lane.b32.xlu0 %v9213_v17, %s8063_s25  ;;  %v2718_v24 = vpack.c.bf16 %v2598_v35, %v2558_v2  ;;  %1489 = vst [vmem:[#allocation2 + $0x288] sm:$0x70] %v1434_v28  ;;  %v1921_v59 = vsel %vm1900_vm2, %v7558_v43, %v7559_v58  ;;  %v1922_v19 = vsel %vm1900_vm2, %v7494_v61, %v7558_v43  ;;  %v9356_v8 = vpop.permute.xlu1 %7566  ;;  %v7562_v21 = vpop.permute.xlu0 %7561 }
 0x13d   : > { %v1600_v54 = vsel %vm1579_vm1, %v7553_v50, %v7554_v36  ;;  %v1601_v17 = vsel %vm1579_vm1, %v7489_v34, %v7553_v50  ;;  %v1998_v52 = vrot.slane %v1922_v19, 6  ;;  %v1999_v62 = vrot.slane %v1921_v59, 6  ;;  %v2559_v19 = vld [vmem:[#allocation2 + $0x398] sm:$0xff] }
 0x13e   : > { %v1677_v0 = vrot.slane %v1601_v17, 1  ;;  %v1678_v44 = vrot.slane %v1600_v54, 1  ;;  %3202 = vmatprep.subr.bf16.mxu0 %v2718_v24  ;;  %v7569_v46 = vunpack.i.h.bf16 %v9356_v8  ;;  %v7568_v61 = vunpack.i.l.bf16 %v9356_v8 }
 0x13f   : > { %v7564_v56 = vunpack.i.h.bf16 %v7562_v21  ;;  %v7563_v22 = vunpack.i.l.bf16 %v7562_v21  ;;  %3203 = vmatpush1.bf16.msra.mxu0 %v2717_v10  ;;  %2078 = vst [vmem:[#allocation2 + $0x2f8] sm:$0x1c] %v1998_v52  ;;  %2079 = vst [vmem:[#allocation2 + $0x68] sm:$0x1c] %v1999_v62  ;;  %7856 = vrot.lane.b32.xlu1 %v9310_v23, %s8061_s23  ;;  %v2719_v17 = vpack.c.bf16 %v2599_v48, %v2559_v19 }
 0x140   : > { %1757 = vst [vmem:[#allocation2 + $0x2f8] ss:$-508 sps:$4 sm:$0x83] %v1677_v0   ;;  %1758 = vst [vmem:[#allocation2 + $0x68] ss:$12 sps:$4 sm:$0x83] %v1678_v44   ;;  %7851 = vrot.lane.b32.xlu0 %v9310_v23, %s8062_s24  ;;  %v1598_v34 = vsel %vm1579_vm1, %v7568_v61, %v7569_v46  ;;  %v1599_v25 = vsel %vm1579_vm1, %v7554_v36, %v7568_v61  ;;  %v1435_v52 = vcombine.low %v8346_v7, %v8346_v7 }
 0x141   : > { %v2202_v32 = vsel %vm2181_vm0, %v7563_v22, %v7564_v56  ;;  %v2203_v9 = vsel %vm2181_vm0, %v7499_v31, %v7563_v22  ;;  %v1679_v55 = vrot.slane %v1599_v25, 1  ;;  %v1680_v28 = vrot.slane %v1598_v34, 1  ;;  %v9380_v2 = vpop.permute.xlu1 %7576  ;;  %v9382_v35 = vpop.permute.xlu0 %7571  ;;  %v9387_v36 = vld [vmem:[%s10650_s1] sm:$0xff]  }
 0x142   : > { %v2279_v43 = vrot.slane %v2203_v9, 3  ;;  %v2280_v50 = vrot.slane %v2202_v32, 3  ;;  %6332 = vmatmul.mubr.msk.bf16.vlgmr.msra.gmra.mxu0 %vm2802_vm10, %v9387_v36  ;;  %v7579_v33 = vunpack.i.h.bf16 %v9380_v2  ;;  %v7578_v31 = vunpack.i.l.bf16 %v9380_v2  ;;  %v2560_v10 = vld [vmem:[#allocation2 + $0x60] sm:$0xff]  ;;  %1491 = vst [vmem:[#allocation2 + $0x4b0] sm:$0x70] %v1435_v52 }
 0x143   : > { %v7574_v49 = vunpack.i.h.bf16 %v9382_v35  ;;  %v7573_v24 = vunpack.i.l.bf16 %v9382_v35  ;;  %v2600_v59 = vld [vmem:[#allocation2 + $0x2c0] sm:$0xff]  ;;  %3306 = vmatprep.mubr.bf16.mxu0 %v8065_v42  ;;  %1759 = vst [vmem:[#allocation2 + $0x3c0] ss:$260 sps:$4 sm:$0x83] %v1679_v55   ;;  %7866 = vrot.lane.b32.xlu1 %v9332_v38, %s8058_s18  ;;  %v9457_v52 = vpack.i.bf16 %v8480_v63, %v9136_v57 }
 0x144   : > { %1760 = vst [vmem:[#allocation2 + $0x368] ss:$-804 sps:$4 sm:$0x83] %v1680_v28   ;;  %2359 = vst [vmem:[#allocation2 + $0x2f8] sm:$0xe0] %v2279_v43  ;;  %7861 = vrot.lane.b32.xlu0 %v9310_v23, %s8063_s25  ;;  %v2720_v54 = vpack.c.bf16 %v2600_v59, %v2560_v10  ;;  %v2200_v62 = vsel %vm2181_vm0, %v7578_v31, %v7579_v33  ;;  %v2201_v0 = vsel %vm2181_vm0, %v7564_v56, %v7578_v31 }
 0x145   : > { %2360 = vst [vmem:[#allocation2 + $0x68] sm:$0xe0] %v2280_v50  ;;  %v1919_v44 = vsel %vm1900_vm2, %v7573_v24, %v7574_v49  ;;  %v1920_v21 = vsel %vm1900_vm2, %v7559_v58, %v7573_v24  ;;  %v2281_v61 = vrot.slane %v2201_v0, 3  ;;  %v2282_v7 = vrot.slane %v2200_v62, 3  ;;  %v9416_v25 = vpop.permute.xlu1 %7586  ;;  %v7582_v32 = vpop.permute.xlu0 %7581  ;;  %v2681_v31 = vld [vmem:[#allocation2 + $0x498] sm:$0x7] }
 0x146   : > { %v2000_v22 = vrot.slane %v1920_v21, 6  ;;  %v2001_v34 = vrot.slane %v1919_v44, 6  ;;  %3245 = vmatprep.subr.bf16.mxu1 %v2720_v54  ;;  %v7589_v56 = vunpack.i.h.bf16 %v9416_v25  ;;  %v7588_v9 = vunpack.i.l.bf16 %v9416_v25  ;;  %v2641_v54 = vld [vmem:[#allocation2 + $0x298] sm:$0xff] }
 0x147   : > { %v7584_v48 = vunpack.i.h.bf16 %v7582_v32  ;;  %v7583_v55 = vunpack.i.l.bf16 %v7582_v32  ;;  %3246 = vmatpush1.bf16.msra.mxu1 %v2719_v17  ;;  %2361 = vst [vmem:[#allocation2 + $0x3c0] sm:$0xe0] %v2281_v61  ;;  %2362 = vst [vmem:[#allocation2 + $0x368] sm:$0xe0] %v2282_v7  ;;  %7876 = vrot.lane.b32.xlu1 %v9332_v38, %s8057_s17  ;;  %v2761_v17 = vpack.c.bf16 %v2681_v31, %v2641_v54 }
 0x148   : > { %2080 = vst [vmem:[#allocation2 + $0x3c0] sm:$0x1c] %v2000_v22  ;;  %2081 = vst [vmem:[#allocation2 + $0x368] sm:$0x1c] %v2001_v34  ;;  %7871 = vrot.lane.b32.xlu0 %v9332_v38, %s8059_s19  ;;  %v2481_v58 = vsel %vm2462_vm3, %v7588_v9, %v7589_v56 }
 0x149   : > { %v2482_v28 = vsel %vm2462_vm3, %v7584_v48, %v7588_v9  ;;  %v2483_v43 = vsel %vm2462_vm3, %v7583_v55, %v7584_v48  ;;  %v2484_v50 = vsel %vm2462_vm3, %v7509_v53, %v7583_v55  ;;  %2523 = vst [vmem:[#allocation2 + $0x4e0] sm:$0x7] %v2481_v58  ;;  %v9440_v24 = vpop.permute.xlu1 %7596  ;;  %v9442_v10 = vpop.permute.xlu0 %7591  ;;  %v2859_v48 = vand.u32 %v8491_v4, %v2761_v17 }
 0x14a   : > { %2522 = vst [vmem:[#allocation2 + $0x2d8] sm:$0x7] %v2482_v28  ;;  %2520 = vst [vmem:[#allocation2 + $0x240] sm:$0x7] %v2484_v50  ;;  %6333 = vmatmul.mubr.msk.bf16.vlgmr.msra.gmra.mxu1 %vm2802_vm10, %v9387_v36  ;;  %v7599_v59 = vunpack.i.h.bf16 %v9440_v24  ;;  %v7598_v19 = vunpack.i.l.bf16 %v9440_v24  ;;  %v7594_v45 = vunpack.i.h.bf16 %v9442_v10  ;;  %v7593_v53 = vunpack.i.l.bf16 %v9442_v10 }
 0x14b   : > { %2521 = vst [vmem:[#allocation2 + $0x100] sm:$0x7] %v2483_v43  ;;  %3349 = vmatprep.mubr.bf16.mxu1 %v8065_v42  ;;  %7886 = vrot.lane.b32.xlu1 %v9426_v15, %s8058_s18  ;;  %v2642_v5 = vld [vmem:[#allocation2 + $0x2f8] sm:$0xff] }
 0x14c   : > { %7881 = vrot.lane.b32.xlu0 %v9310_v23, %s8064_s26  ;;  %v919_v62 = vsel %vm897_vm5, %v7598_v19, %v7599_v59  ;;  %v920_v0 = vsel %vm897_vm5, %v7539_v16, %v7598_v19  ;;  %v638_v44 = vsel %vm616_vm6, %v7593_v53, %v7594_v45  ;;  %v639_v23 = vsel %vm616_vm6, %v7534_v20, %v7593_v53 }
 0x14d   : > { %v995_v21 = vrot.slane %v920_v0, 2  ;;  %v996_v61 = vrot.slane %v919_v62, 2  ;;  %v714_v57 = vrot.slane %v639_v23, 5  ;;  %v715_v7 = vrot.slane %v638_v44, 5  ;;  %v9471_v22 = vpop.permute.xlu1 %7606  ;;  %v9473_v34 = vpop.permute.xlu0 %7601  ;;  %v2643_v0 = vld [vmem:[#allocation2 + $0x68] sm:$0xff] }
 0x14e   : > { %v7609_v41 = vunpack.i.h.bf16 %v9471_v22  ;;  %v7608_v16 = vunpack.i.l.bf16 %v9471_v22  ;;  %v7604_v32 = vunpack.i.h.bf16 %v9473_v34  ;;  %v7603_v9 = vunpack.i.l.bf16 %v9473_v34 }
 0x14f   : > { %1075 = vst [vmem:[#allocation2 + $0xf8] ss:$660 sps:$4 sm:$0xc1] %v995_v21   ;;  %1076 = vst [vmem:[#allocation2 + $0x70] ss:$244 sps:$4 sm:$0xc1] %v996_v61   ;;  %7896 = vrot.lane.b32.xlu1 %v9426_v15, %s8057_s17 }
 0x150   : > { %794 = vst [vmem:[#allocation2 + $0x388] sm:$0x38] %v714_v57  ;;  %795 = vst [vmem:[#allocation2 + $0x160] sm:$0x38] %v715_v7  ;;  %7891 = vrot.lane.b32.xlu0 %v9426_v15, %s8059_s19  ;;  %v2644_v20 = vld [vmem:[#allocation2 + $0x3c0] sm:$0xff]  ;;  %v477_v55 = vsel %vm455_vm9, %v7608_v16, %v7609_v41  ;;  %v478_v58 = vsel %vm455_vm9, %v7549_v18, %v7608_v16  ;;  %v1240_v28 = vsel %vm1218_vm8, %v7603_v9, %v7604_v32 }
 0x151   : > { %v1241_v43 = vsel %vm1218_vm8, %v7544_v14, %v7603_v9  ;;  %v2682_v50 = vld [vmem:[#allocation2 + $0x240] sm:$0x7]  ;;  %v2684_v31 = vld [vmem:[#allocation2 + $0x2d8] sm:$0x7]  ;;  %513 = vst [vmem:[#allocation2 + $0x388] sm:$0x7] %v478_v58  ;;  %v9500_v19 = vpop.permute.xlu1 %7616  ;;  %v9502_v18 = vpop.permute.xlu0 %7611 }
 0x152   : > { %v2683_v24 = vld [vmem:[#allocation2 + $0x100] sm:$0x7]  ;;  %514 = vst [vmem:[#allocation2 + $0x160] sm:$0x7] %v477_v55  ;;  %v1316_v10 = vrot.slane %v1241_v43, 7  ;;  %v1317_v39 = vrot.slane %v1240_v28, 7  ;;  %v2762_v53 = vpack.c.bf16 %v2682_v50, %v2642_v5  ;;  %v2764_v54 = vpack.c.bf16 %v2684_v31, %v2644_v20 }
 0x153   : > { %v7619_v17 = vunpack.i.h.bf16 %v9500_v19  ;;  %v7618_v11 = vunpack.i.l.bf16 %v9500_v19  ;;  %v7614_v62 = vunpack.i.h.bf16 %v9502_v18  ;;  %v7613_v14 = vunpack.i.l.bf16 %v9502_v18  ;;  %7906 = vrot.lane.b32.xlu1 %v9426_v15, %s8060_s20 }
 0x154   : > { %1396 = vst [vmem:[#allocation2 + $0xf8] sm:$0xe] %v1316_v10  ;;  %1397 = vst [vmem:[#allocation2 + $0x70] sm:$0xe] %v1317_v39  ;;  %7901 = vrot.lane.b32.xlu0 %v9332_v38, %s8060_s20  ;;  %v2862_v44 = vand.u32 %v8491_v4, %v2762_v53  ;;  %v2868_v23 = vand.u32 %v8491_v4, %v2764_v54  ;;  %v2763_v21 = vpack.c.bf16 %v2683_v24, %v2643_v0  ;;  %v2601_v10 = vld [vmem:[#allocation2 + $0x140] sm:$0xff] }
 0x155   : > { %v917_v61 = vsel %vm897_vm5, %v7618_v11, %v7619_v17  ;;  %v918_v57 = vsel %vm897_vm5, %v7599_v59, %v7618_v11  ;;  %v636_v15 = vsel %vm616_vm6, %v7613_v14, %v7614_v62  ;;  %v637_v38 = vsel %vm616_vm6, %v7594_v45, %v7613_v14  ;;  %v9526_v20 = vpop.permute.xlu1 %7626  ;;  %v9528_v55 = vpop.permute.xlu0 %7621 }
 0x156   : > { %v997_v7 = vrot.slane %v918_v57, 2  ;;  %v998_v16 = vrot.slane %v917_v61, 2  ;;  %v716_v9 = vrot.slane %v637_v38, 5  ;;  %v717_v5 = vrot.slane %v636_v15, 5  ;;  %3286 = vmatprep.subr.bf16.mxu0 %v2862_v44  ;;  %3329 = vmatprep.subr.bf16.mxu1 %v2868_v23 }
 0x157   : > { %v7629_v59 = vunpack.i.h.bf16 %v9526_v20  ;;  %v7628_v58 = vunpack.i.l.bf16 %v9526_v20  ;;  %v7624_v28 = vunpack.i.h.bf16 %v9528_v55  ;;  %v7623_v43 = vunpack.i.l.bf16 %v9528_v55  ;;  %3287 = vmatpush1.bf16.msra.mxu0 %v2859_v48  ;;  %7916 = vrot.lane.b32.xlu1 %v9457_v52, %s8061_s23 }
 0x158   : > { %1077 = vst [vmem:[#allocation2 + $0x4c0] ss:$-668 sps:$4 sm:$0xc1] %v997_v7   ;;  %1078 = vst [vmem:[#allocation2 + $0x40] ss:$100 sps:$4 sm:$0xc1] %v998_v16   ;;  %v2865_v45 = vand.u32 %v8491_v4, %v2763_v21  ;;  %7911 = vrot.lane.b32.xlu0 %v9457_v52, %s8062_s24  ;;  %v9541_v50 = vpack.i.bf16 %v8532_v40, %v9251_v51 }
 0x159   : > { %796 = vst [vmem:[#allocation2 + $0x220] sm:$0x38] %v716_v9  ;;  %797 = vst [vmem:[#allocation2 + $0xa0] sm:$0x38] %v717_v5  ;;  %v1596_v48 = vsel %vm1579_vm1, %v7628_v58, %v7629_v59  ;;  %v1597_v31 = vsel %vm1579_vm1, %v7569_v46, %v7628_v58  ;;  %v1238_v24 = vsel %vm1218_vm8, %v7623_v43, %v7624_v28  ;;  %v9559_v8 = vpop.permute.xlu1 %7636  ;;  %v9561_v14 = vpop.permute.xlu0 %7631  ;;  %v2562_v23 = vld [vmem:[#allocation2 + $0x388] sm:$0xff]  ;;  %v2561_v21 = vld [vmem:[#allocation2 + $0xd8] sm:$0xff] }
 0x15a   : > { %v1239_v51 = vsel %vm1218_vm8, %v7604_v32, %v7623_v43  ;;  %v1681_v39 = vrot.slane %v1597_v31, 1  ;;  %v1682_v53 = vrot.slane %v1596_v48, 1  ;;  %v1319_v11 = vrot.slane %v1238_v24, 7  ;;  %3330 = vmatpush1.bf16.msra.mxu1 %v2865_v45 }
 0x15b   : > { %v1318_v54 = vrot.slane %v1239_v51, 7  ;;  %v7639_v46 = vunpack.i.h.bf16 %v9559_v8  ;;  %v7638_v0 = vunpack.i.l.bf16 %v9559_v8  ;;  %v7634_v44 = vunpack.i.h.bf16 %v9561_v14  ;;  %v2602_v32 = vld [vmem:[#allocation2 + $0xf8] sm:$0xff]  ;;  %7926 = vrot.lane.b32.xlu1 %v9457_v52, %s8064_s26 }
 0x15c   : > { %v7633_v34 = vunpack.i.l.bf16 %v9561_v14  ;;  %1761 = vst [vmem:[#allocation2 + $0x2e0] ss:$116 sps:$4 sm:$0x83] %v1681_v39   ;;  %1762 = vst [vmem:[#allocation2 + $0x3a8] ss:$-340 sps:$4 sm:$0x83] %v1682_v53   ;;  %7921 = vrot.lane.b32.xlu0 %v9457_v52, %s8063_s25  ;;  %v2722_v61 = vpack.c.bf16 %v2602_v32, %v2562_v23  ;;  %v2721_v57 = vpack.c.bf16 %v2601_v10, %v2561_v21 }
 0x15d   : > { %1398 = vst [vmem:[#allocation2 + $0x4c0] sm:$0xe] %v1318_v54  ;;  %1399 = vst [vmem:[#allocation2 + $0x40] sm:$0xe] %v1319_v11  ;;  %v2198_v15 = vsel %vm2181_vm0, %v7638_v0, %v7639_v46  ;;  %v2199_v38 = vsel %vm2181_vm0, %v7579_v33, %v7638_v0  ;;  %v9587_v43 = vpop.permute.xlu1 %7646  ;;  %v9589_v2 = vpop.permute.xlu0 %7641  ;;  %v1436_v31 = vcombine.low %v8480_v63, %v8480_v63  ;;  %v2685_v14 = vld [vmem:[#allocation2 + $0x4e0] sm:$0x7] }
 0x15e   : > { %v1917_v7 = vsel %vm1900_vm2, %v7633_v34, %v7634_v44  ;;  %v1918_v52 = vsel %vm1900_vm2, %v7574_v49, %v7633_v34  ;;  %v2283_v16 = vrot.slane %v2199_v38, 3  ;;  %v2284_v9 = vrot.slane %v2198_v15, 3  ;;  %3288 = vmatprep.subr.bf16.mxu0 %v2722_v61 }
 0x15f   : > { %v2002_v5 = vrot.slane %v1918_v52, 6  ;;  %v2003_v58 = vrot.slane %v1917_v7, 6  ;;  %v7649_v33 = vunpack.i.h.bf16 %v9587_v43  ;;  %v7648_v45 = vunpack.i.l.bf16 %v9587_v43  ;;  %3289 = vmatpush1.bf16.msra.mxu0 %v2721_v57  ;;  %7936 = vrot.lane.b32.xlu1 %v9541_v50, %s8061_s23  ;;  %1493 = vst [vmem:[#allocation2 + $0x200] sm:$0x70] %v1436_v31  ;;  %v2786_v43 = vld [vmem:[%s10651_s2 + $0x8] sm:$0xff] }
 0x160   : > { %v7644_v48 = vunpack.i.h.bf16 %v9589_v2  ;;  %v7643_v35 = vunpack.i.l.bf16 %v9589_v2  ;;  %2363 = vst [vmem:[#allocation2 + $0x2e0] sm:$0xe0] %v2283_v16  ;;  %2364 = vst [vmem:[#allocation2 + $0x3a8] sm:$0xe0] %v2284_v9  ;;  %7931 = vrot.lane.b32.xlu0 %v9541_v50, %s8062_s24  ;;  %v9601_v49 = vpack.i.bf16 %v8222_v26, %v8171_v6 }
 0x161   : > { %2082 = vst [vmem:[#allocation2 + $0x2e0] sm:$0x1c] %v2002_v5  ;;  %2083 = vst [vmem:[#allocation2 + $0x3a8] sm:$0x1c] %v2003_v58  ;;  %v1594_v24 = vsel %vm1579_vm1, %v7648_v45, %v7649_v33  ;;  %v1595_v51 = vsel %vm1579_vm1, %v7629_v59, %v7648_v45  ;;  %v9621_v53 = vpop.permute.xlu1 %7656  ;;  %v9623_v20 = vpop.permute.xlu0 %7651  ;;  %v1437_v59 = vcombine.low %v8532_v40, %v8532_v40 }
 0x162   : > { %v475_v10 = vsel %vm455_vm9, %v7643_v35, %v7644_v48  ;;  %v476_v26 = vsel %vm455_vm9, %v7609_v41, %v7643_v35  ;;  %v1683_v63 = vrot.slane %v1595_v51, 1  ;;  %v1684_v39 = vrot.slane %v1594_v24, 1  ;;  %6334 = vmatmul.mubr.msk.bf16.vlgmr.msra.gmra.mxu0 %vm2802_vm10, %v9387_v36  ;;  %v2603_v35 = vld [vmem:[#allocation2 + $0x70] sm:$0xff] }
 0x163   : > { %515 = vst [vmem:[#allocation2 + $0x220] sm:$0x7] %v476_v26  ;;  %516 = vst [vmem:[#allocation2 + $0xa0] sm:$0x7] %v475_v10  ;;  %v7659_v22 = vunpack.i.h.bf16 %v9621_v53  ;;  %v7658_v54 = vunpack.i.l.bf16 %v9621_v53  ;;  %v7654_v41 = vunpack.i.h.bf16 %v9623_v20  ;;  %v7653_v11 = vunpack.i.l.bf16 %v9623_v20  ;;  %3392 = vmatprep.mubr.bf16.mxu0 %v8065_v42  ;;  %7946 = vrot.lane.b32.xlu1 %v9601_v49, %s8058_s18  ;;  %v6017_v53 = vld [vmem:[%s10651_s2 + $0x28] sm:$0xff] }
 0x164   : > { %1763 = vst [vmem:[#allocation2 + $0x1c8] ss:$28 sps:$4 sm:$0x83] %v1683_v63   ;;  %1764 = vst [vmem:[#allocation2 + $0x3d8] ss:$-188 sps:$4 sm:$0x83] %v1684_v39   ;;  %7941 = vrot.lane.b32.xlu0 %v9541_v50, %s8063_s25  ;;  %v7975_v10 = vpack.i.bf16 %v8171_v6, %v9366_v47 }
 0x165   : > { %1495 = vst [vmem:[#allocation2 + $0x1b0] sm:$0x70] %v1437_v59  ;;  %v2196_v40 = vsel %vm2181_vm0, %v7658_v54, %v7659_v22  ;;  %v2197_v0 = vsel %vm2181_vm0, %v7639_v46, %v7658_v54  ;;  %v1915_v34 = vsel %vm1900_vm2, %v7653_v11, %v7654_v41  ;;  %v1916_v23 = vsel %vm1900_vm2, %v7634_v44, %v7653_v11  ;;  %v9654_v15 = vpop.permute.xlu1 %7666  ;;  %v7662_v8 = vpop.permute.xlu0 %7661  ;;  %v2604_v45 = vld [vmem:[#allocation2 + $0x4c0] sm:$0xff]  ;;  %v2645_v59 = vld [vmem:[#allocation2 + $0x368] sm:$0xff] }
 0x166   : > { %v2285_v32 = vrot.slane %v2197_v0, 3  ;;  %v2286_v21 = vrot.slane %v2196_v40, 3  ;;  %v2004_v61 = vrot.slane %v1916_v23, 6  ;;  %v2005_v57 = vrot.slane %v1915_v34, 6  ;;  %v2563_v39 = vld [vmem:[#allocation2 + $0x160] sm:$0xff] }
 0x167   : > { %v7669_v38 = vunpack.i.h.bf16 %v9654_v15  ;;  %v7668_v46 = vunpack.i.l.bf16 %v9654_v15  ;;  %v7664_v7 = vunpack.i.h.bf16 %v7662_v8  ;;  %v7663_v52 = vunpack.i.l.bf16 %v7662_v8  ;;  %7956 = vrot.lane.b32.xlu1 %v9601_v49, %s8057_s17 }
 0x168   : > { %2365 = vst [vmem:[#allocation2 + $0x1c8] sm:$0xe0] %v2285_v32  ;;  %2366 = vst [vmem:[#allocation2 + $0x3d8] sm:$0xe0] %v2286_v21  ;;  %7951 = vrot.lane.b32.xlu0 %v9601_v49, %s8059_s19  ;;  %v2723_v54 = vpack.c.bf16 %v2603_v35, %v2563_v39  ;;  %v2765_v11 = vpack.c.bf16 %v2685_v14, %v2645_v59  ;;  %v2647_v39 = vld [vmem:[#allocation2 + $0x3a8] sm:$0xff] }
 0x169   : > { %2084 = vst [vmem:[#allocation2 + $0x1c8] sm:$0x1c] %v2004_v61  ;;  %2085 = vst [vmem:[#allocation2 + $0x3d8] sm:$0x1c] %v2005_v57  ;;  %v2477_v44 = vsel %vm2462_vm3, %v7668_v46, %v7669_v38  ;;  %v2478_v16 = vsel %vm2462_vm3, %v7664_v7, %v7668_v46  ;;  %v2479_v9 = vsel %vm2462_vm3, %v7663_v52, %v7664_v7  ;;  %v9674_v31 = vpop.permute.xlu1 %7676 }
 0x16a   : > { %v2480_v5 = vsel %vm2462_vm3, %v7589_v56, %v7663_v52  ;;  %v2564_v58 = vld [vmem:[#allocation2 + $0x220] sm:$0xff]  ;;  %2527 = vst [vmem:[#allocation2 + $0x468] sm:$0x7] %v2477_v44  ;;  %2526 = vst [vmem:[#allocation2 + $0x1c0] sm:$0x7] %v2478_v16  ;;  %v9676_v24 = vpop.permute.xlu0 %7671  ;;  %v7679_v25 = vunpack.i.h.bf16 %v9674_v31  ;;  %v7678_v26 = vunpack.i.l.bf16 %v9674_v31  ;;  %v2871_v7 = vand.u32 %v8491_v4, %v2765_v11 }
 0x16b   : > { %2524 = vst [vmem:[#allocation2 + $0x30] sm:$0x7] %v2480_v5  ;;  %2525 = vst [vmem:[#allocation2 + $0x2b8] sm:$0x7] %v2479_v9  ;;  %v2724_v51 = vpack.c.bf16 %v2604_v45, %v2564_v58  ;;  %v7674_v56 = vunpack.i.h.bf16 %v9676_v24  ;;  %v7673_v63 = vunpack.i.l.bf16 %v9676_v24  ;;  %7966 = vrot.lane.b32.xlu1 %v9601_v49, %s8060_s20 }
 0x16c   : > { %7961 = vrot.lane.b32.xlu0 %v9541_v50, %s8064_s26  ;;  %v915_v40 = vsel %vm897_vm5, %v7678_v26, %v7679_v25  ;;  %v916_v0 = vsel %vm897_vm5, %v7619_v17, %v7678_v26 }
 0x16d   : > { %v634_v49 = vsel %vm616_vm6, %v7673_v63, %v7674_v56  ;;  %v635_v50 = vsel %vm616_vm6, %v7614_v62, %v7673_v63  ;;  %3331 = vmatprep.subr.bf16.mxu1 %v2724_v51  ;;  %v999_v34 = vrot.slane %v916_v0, 2  ;;  %v1000_v23 = vrot.slane %v915_v40, 2  ;;  %v9704_v19 = vpop.permute.xlu1 %7686  ;;  %v2646_v62 = vld [vmem:[#allocation2 + $0x2e0] sm:$0xff] }
 0x16e   : > { %v718_v32 = vrot.slane %v635_v50, 5  ;;  %v719_v21 = vrot.slane %v634_v49, 5  ;;  %3332 = vmatpush1.bf16.msra.mxu1 %v2723_v54  ;;  %v9706_v61 = vpop.permute.xlu0 %7681  ;;  %v7689_v17 = vunpack.i.h.bf16 %v9704_v19  ;;  %v7688_v57 = vunpack.i.l.bf16 %v9704_v19 }
 0x16f   : > { %v7684_v8 = vunpack.i.h.bf16 %v9706_v61  ;;  %v7683_v18 = vunpack.i.l.bf16 %v9706_v61  ;;  %1079 = vst [vmem:[#allocation2 + $0x350] ss:$20 sps:$4 sm:$0xc1] %v999_v34   ;;  %1080 = vst [vmem:[#allocation2 + $0x250] ss:$684 sps:$4 sm:$0xc1] %v1000_v23   ;;  %7976 = vrot.lane.b32.xlu1 %v7975_v10, %s8061_s23 }
 0x170   : > { %798 = vst [vmem:[#allocation2 + $0x360] sm:$0x38] %v718_v32  ;;  %799 = vst [vmem:[#allocation2 + $0x4f8] sm:$0x38] %v719_v21  ;;  %7971 = vrot.lane.b32.xlu0 %v7975_v10, %s8062_s24  ;;  %v2648_v46 = vld [vmem:[#allocation2 + $0x1c8] sm:$0xff]  ;;  %v473_v52 = vsel %vm455_vm9, %v7688_v57, %v7689_v17  ;;  %v474_v14 = vsel %vm455_vm9, %v7644_v48, %v7688_v57 }
 0x171   : > { %v1236_v44 = vsel %vm1218_vm8, %v7683_v18, %v7684_v8  ;;  %v1237_v16 = vsel %vm1218_vm8, %v7624_v28, %v7683_v18  ;;  %6335 = vmatmul.mubr.msk.bf16.vlgmr.msra.gmra.mxu1 %vm2802_vm10, %v9387_v36  ;;  %v2688_v5 = vld [vmem:[#allocation2 + $0x1c0] sm:$0x7]  ;;  %517 = vst [vmem:[#allocation2 + $0x360] sm:$0x7] %v474_v14  ;;  %518 = vst [vmem:[#allocation2 + $0x4f8] sm:$0x7] %v473_v52  ;;  %v9733_v45 = vpop.permute.xlu1 %7696 }
 0x172   : > { %v2686_v9 = vld [vmem:[#allocation2 + $0x30] sm:$0x7]  ;;  %v2687_v58 = vld [vmem:[#allocation2 + $0x2b8] sm:$0x7]  ;;  %v1320_v2 = vrot.slane %v1237_v16, 7  ;;  %v1321_v48 = vrot.slane %v1236_v44, 7  ;;  %v9735_v35 = vpop.permute.xlu0 %7691  ;;  %v2768_v10 = vpack.c.bf16 %v2688_v5, %v2648_v46  ;;  %3435 = vmatprep.mubr.bf16.mxu1 %v8065_v42  ;;  %v7699_v55 = vunpack.i.h.bf16 %v9733_v45 }
 0x173   : > { %v2766_v51 = vpack.c.bf16 %v2686_v9, %v2646_v62  ;;  %v7698_v28 = vunpack.i.l.bf16 %v9733_v45  ;;  %v7694_v26 = vunpack.i.h.bf16 %v9735_v35  ;;  %v7693_v63 = vunpack.i.l.bf16 %v9735_v35  ;;  %447 = vrot.lane.b32.xlu1 %v9366_v47, %s8064_s26  ;;  %v2565_v14 = vld [vmem:[#allocation2 + $0xa0] sm:$0xff] }
 0x174   : > { %1400 = vst [vmem:[#allocation2 + $0x350] sm:$0xe] %v1320_v2  ;;  %1401 = vst [vmem:[#allocation2 + $0x250] sm:$0xe] %v1321_v48  ;;  %1212 = vrot.lane.b32.xlu0 %v9366_v47, %s8063_s25  ;;  %v2880_v54 = vand.u32 %v8491_v4, %v2768_v10  ;;  %v2767_v11 = vpack.c.bf16 %v2687_v58, %v2647_v39  ;;  %v1438_v62 = vcombine.low %v8171_v6, %v8171_v6  ;;  %v2785_v44 = vld [vmem:[%s10651_s2] sm:$0xff] }
 0x175   : > { %v2874_v59 = vand.u32 %v8491_v4, %v2766_v51  ;;  %v913_v40 = vsel %vm897_vm5, %v7698_v28, %v7699_v55  ;;  %v914_v0 = vsel %vm897_vm5, %v7679_v25, %v7698_v28  ;;  %v632_v47 = vsel %vm616_vm6, %v7693_v63, %v7694_v26  ;;  %v9764_v21 = vpop.permute.xlu1 %7706 }
 0x176   : > { %v633_v49 = vsel %vm616_vm6, %v7674_v56, %v7693_v63  ;;  %v1001_v50 = vrot.slane %v914_v0, 2  ;;  %v1002_v34 = vrot.slane %v913_v40, 2  ;;  %v721_v32 = vrot.slane %v632_v47, 5  ;;  %v9766_v31 = vpop.permute.xlu0 %7701  ;;  %3415 = vmatprep.subr.bf16.mxu1 %v2880_v54  ;;  %1497 = vst [vmem:[#allocation2 + $0x4e8] sm:$0x70] %v1438_v62  ;;  %v2605_v63 = vld [vmem:[#allocation2 + $0x40] sm:$0xff] }
 0x177   : > { %v720_v23 = vrot.slane %v633_v49, 5  ;;  %3372 = vmatprep.subr.bf16.mxu0 %v2874_v59  ;;  %v7709_v25 = vunpack.i.h.bf16 %v9764_v21  ;;  %v7708_v57 = vunpack.i.l.bf16 %v9764_v21  ;;  %v7704_v18 = vunpack.i.h.bf16 %v9766_v31  ;;  %449 = vrot.lane.b32.xlu1 %v8171_v6, %s8064_s26  ;;  %v6016_v47 = vld [vmem:[%s10651_s2 + $0x20] sm:$0xff]  ;;  %v6015_v21 = vld [vmem:[%s10651_s2 + $0x18] sm:$0xff] }
 0x178   : > { %v7703_v24 = vunpack.i.l.bf16 %v9766_v31  ;;  %3373 = vmatpush1.bf16.msra.mxu0 %v2871_v7  ;;  %1081 = vst [vmem:[#allocation2 + $0x1e0] ss:$420 sps:$4 sm:$0xc1] %v1001_v50   ;;  %1082 = vst [vmem:[#allocation2 + $0x318] ss:$324 sps:$4 sm:$0xc1] %v1002_v34   ;;  %v2877_v56 = vand.u32 %v8491_v4, %v2767_v11  ;;  %1214 = vrot.lane.b32.xlu0 %v8171_v6, %s8063_s25  ;;  %v2725_v59 = vpack.c.bf16 %v2605_v63, %v2565_v14 }
 0x179   : > { %800 = vst [vmem:[#allocation2 + $0x380] sm:$0x38] %v720_v23  ;;  %801 = vst [vmem:[#allocation2 + $0x458] sm:$0x38] %v721_v32  ;;  %v1592_v46 = vsel %vm1579_vm1, %v7708_v57, %v7709_v25  ;;  %v1593_v7 = vsel %vm1579_vm1, %v7649_v33, %v7708_v57  ;;  %v9801_v58 = vpop.permute.xlu1 %7716  ;;  %v2566_v10 = vld [vmem:[#allocation2 + $0x360] sm:$0xff] }
 0x17a   : > { %v1234_v52 = vsel %vm1218_vm8, %v7703_v24, %v7704_v18  ;;  %v1235_v6 = vsel %vm1218_vm8, %v7684_v8, %v7703_v24  ;;  %v1685_v33 = vrot.slane %v1593_v7, 1  ;;  %v1686_v16 = vrot.slane %v1592_v46, 1  ;;  %3416 = vmatpush1.bf16.msra.mxu1 %v2877_v56  ;;  %v9803_v61 = vpop.permute.xlu0 %7711 }
 0x17b   : > { %v1322_v9 = vrot.slane %v1235_v6, 7  ;;  %v1323_v5 = vrot.slane %v1234_v52, 7  ;;  %v7719_v8 = vunpack.i.h.bf16 %v9801_v58  ;;  %v7718_v2 = vunpack.i.l.bf16 %v9801_v58  ;;  %v2606_v28 = vld [vmem:[#allocation2 + $0x350] sm:$0xff]  ;;  %2794 = vperm.xlu1 %7981, %v2786_v43  }
 0x17c   : > { %v7714_v48 = vunpack.i.h.bf16 %v9803_v61  ;;  %v7713_v51 = vunpack.i.l.bf16 %v9803_v61  ;;  %1765 = vst [vmem:[#allocation2 + $0x408] ss:$-100 sps:$4 sm:$0x83] %v1685_v33   ;;  %1766 = vst [vmem:[#allocation2 + $0xe8] ss:$-100 sps:$4 sm:$0x83] %v1686_v16   ;;  %v2726_v39 = vpack.c.bf16 %v2606_v28, %v2566_v10  ;;  %2789 = vperm.xlu0 %7980, %v2785_v44  }
 0x17d   : > { %1402 = vst [vmem:[#allocation2 + $0x1e0] sm:$0xe] %v1322_v9  ;;  %1403 = vst [vmem:[#allocation2 + $0x318] sm:$0xe] %v1323_v5  ;;  %v2194_v54 = vsel %vm2181_vm0, %v7718_v2, %v7719_v8  ;;  %v2195_v11 = vsel %vm2181_vm0, %v7659_v22, %v7718_v2  ;;  %v9831_v23 = vpop.permute.xlu1 %7726  ;;  %v6014_v52 = vld [vmem:[%s10651_s2 + $0x10] sm:$0xff] }
 0x17e   : > { %v1913_v40 = vsel %vm1900_vm2, %v7713_v51, %v7714_v48  ;;  %v1914_v0 = vsel %vm1900_vm2, %v7654_v41, %v7713_v51  ;;  %v2287_v49 = vrot.slane %v2195_v11, 3  ;;  %v2288_v22 = vrot.slane %v2194_v54, 3  ;;  %v9833_v32 = vpop.permute.xlu0 %7721  ;;  %3374 = vmatprep.subr.bf16.mxu0 %v2726_v39  ;;  %v6139_v51 = vld [vmem:[%s10651_s2 + $0x38] sm:$0x3]  ;;  %v6138_v58 = vld [vmem:[%s10651_s2 + $0x30] sm:$0xff] }
 0x17f   : > { %v2006_v50 = vrot.slane %v1914_v0, 6  ;;  %v2007_v34 = vrot.slane %v1913_v40, 6  ;;  %v7729_v20 = vunpack.i.h.bf16 %v9831_v23  ;;  %v7728_v41 = vunpack.i.l.bf16 %v9831_v23  ;;  %3375 = vmatpush1.bf16.msra.mxu0 %v2725_v59  ;;  %6035 = vperm.xlu1 %7981, %v6017_v53   ;;  %v2607_v40 = vld [vmem:[#allocation2 + $0x250] sm:$0xff] }
 0x180   : > { %v7724_v57 = vunpack.i.h.bf16 %v9833_v32  ;;  %v7723_v24 = vunpack.i.l.bf16 %v9833_v32  ;;  %2367 = vst [vmem:[#allocation2 + $0x408] sm:$0xe0] %v2287_v49  ;;  %2368 = vst [vmem:[#allocation2 + $0xe8] sm:$0xe0] %v2288_v22  ;;  %6030 = vperm.xlu0 %7980, %v6016_v47  }
 0x181   : > { %2086 = vst [vmem:[#allocation2 + $0x408] sm:$0x1c] %v2006_v50  ;;  %2087 = vst [vmem:[#allocation2 + $0xe8] sm:$0x1c] %v2007_v34  ;;  %v1590_v56 = vsel %vm1579_vm1, %v7728_v41, %v7729_v20  ;;  %v1591_v62 = vsel %vm1579_vm1, %v7709_v25, %v7728_v41  ;;  %v9861_v14 = vpop.permute.xlu1 %7736  ;;  %v2567_v34 = vld [vmem:[#allocation2 + $0x4f8] sm:$0xff] }
 0x182   : > { %v471_v46 = vsel %vm455_vm9, %v7723_v24, %v7724_v57  ;;  %v472_v7 = vsel %vm455_vm9, %v7689_v17, %v7723_v24  ;;  %v1687_v6 = vrot.slane %v1591_v62, 1  ;;  %v1688_v25 = vrot.slane %v1590_v56, 1  ;;  %v9863_v44 = vpop.permute.xlu0 %7731  ;;  %6336 = vmatmul.mubr.msk.bf16.vlgmr.msra.gmra.mxu0 %vm2802_vm10, %v9387_v36 }
 0x183   : > { %519 = vst [vmem:[#allocation2 + $0x380] sm:$0x7] %v472_v7  ;;  %520 = vst [vmem:[#allocation2 + $0x458] sm:$0x7] %v471_v46  ;;  %v7739_v19 = vunpack.i.h.bf16 %v9861_v14  ;;  %v7738_v17 = vunpack.i.l.bf16 %v9861_v14  ;;  %v7734_v43 = vunpack.i.h.bf16 %v9863_v44  ;;  %v7733_v33 = vunpack.i.l.bf16 %v9863_v44  ;;  %3478 = vmatprep.mubr.bf16.mxu0 %v8065_v42  ;;  %6025 = vperm.xlu1 %7981, %v6015_v21  }
 0x184   : > { %1767 = vst [vmem:[#allocation2 + $0x98] ss:$876 sps:$4 sm:$0x83] %v1687_v6   ;;  %1768 = vst [vmem:[#allocation2 + $0x410] ss:$-484 sps:$4 sm:$0x83] %v1688_v25   ;;  %6020 = vperm.xlu0 %7980, %v6014_v52   ;;  %v2727_v62 = vpack.c.bf16 %v2607_v40, %v2567_v34 }
 0x185   : > { %v2192_v16 = vsel %vm2181_vm0, %v7738_v17, %v7739_v19  ;;  %v2193_v9 = vsel %vm2181_vm0, %v7719_v8, %v7738_v17  ;;  %v1911_v5 = vsel %vm1900_vm2, %v7733_v33, %v7734_v43  ;;  %v1912_v2 = vsel %vm1900_vm2, %v7714_v48, %v7733_v33  ;;  %v9894_v39 = vpop.permute.xlu1 %7746  ;;  %v2608_v50 = vld [vmem:[#allocation2 + $0x1e0] sm:$0xff]  ;;  %v2689_v17 = vld [vmem:[#allocation2 + $0x468] sm:$0x7] }
 0x186   : > { %v2289_v10 = vrot.slane %v2193_v9, 3  ;;  %v2290_v8 = vrot.slane %v2192_v16, 3  ;;  %v2008_v28 = vrot.slane %v1912_v2, 6  ;;  %v2009_v63 = vrot.slane %v1911_v5, 6  ;;  %v7742_v59 = vpop.permute.xlu0 %7741 }
 0x187   : > { %v7749_v61 = vunpack.i.h.bf16 %v9894_v39  ;;  %v7748_v54 = vunpack.i.l.bf16 %v9894_v39  ;;  %v7744_v48 = vunpack.i.h.bf16 %v7742_v59  ;;  %v7743_v11 = vunpack.i.l.bf16 %v7742_v59  ;;  %6142 = vperm.xlu1 %7981, %v6138_v58  }
 0x188   : > { %2369 = vst [vmem:[#allocation2 + $0x98] sm:$0xe0] %v2289_v10  ;;  %2370 = vst [vmem:[#allocation2 + $0x410] sm:$0xe0] %v2290_v8  ;;  %6147 = vperm.xlu0 %7980, %v6139_v51   ;;  %v2649_v10 = vld [vmem:[#allocation2 + $0x3d8] sm:$0xff]  ;;  %v2651_v34 = vld [vmem:[#allocation2 + $0xe8] sm:$0xff] }
 0x189   : > { %2088 = vst [vmem:[#allocation2 + $0x98] sm:$0x1c] %v2008_v28  ;;  %2089 = vst [vmem:[#allocation2 + $0x410] sm:$0x1c] %v2009_v63  ;;  %v2473_v0 = vsel %vm2462_vm3, %v7748_v54, %v7749_v61  ;;  %v2474_v47 = vsel %vm2462_vm3, %v7744_v48, %v7748_v54  ;;  %v2475_v53 = vsel %vm2462_vm3, %v7743_v11, %v7744_v48  ;;  %v9910_v41 = vpop.permute.xlu1 %7756 }
 0x18a   : > { %v2476_v49 = vsel %vm2462_vm3, %v7669_v38, %v7743_v11  ;;  %v2568_v22 = vld [vmem:[#allocation2 + $0x380] sm:$0xff]  ;;  %2531 = vst [vmem:[#allocation2 + $0x340] sm:$0x7] %v2473_v0  ;;  %2530 = vst [vmem:[#allocation2 + $0x3d0] sm:$0x7] %v2474_v47  ;;  %v9912_v24 = vpop.permute.xlu0 %7751  ;;  %v7759_v46 = vunpack.i.h.bf16 %v9910_v41  ;;  %v7758_v15 = vunpack.i.l.bf16 %v9910_v41  ;;  %v2769_v28 = vpack.c.bf16 %v2689_v17, %v2649_v10 }
 0x18b   : > { %2528 = vst [vmem:[#allocation2 + $0xe0] sm:$0x7] %v2476_v49  ;;  %2529 = vst [vmem:[#allocation2 + $0x58] sm:$0x7] %v2475_v53  ;;  %v2728_v56 = vpack.c.bf16 %v2608_v50, %v2568_v22  ;;  %v7754_v7 = vunpack.i.h.bf16 %v9912_v24  ;;  %v7753_v38 = vunpack.i.l.bf16 %v9912_v24 }
 0x18c   : > { %v911_v52 = vsel %vm897_vm5, %v7758_v15, %v7759_v46  ;;  %v912_v21 = vsel %vm897_vm5, %v7699_v55, %v7758_v15 }
 0x18d   : > { %3417 = vmatprep.subr.bf16.mxu1 %v2728_v56  ;;  %v630_v6 = vsel %vm616_vm6, %v7753_v38, %v7754_v7  ;;  %v631_v25 = vsel %vm616_vm6, %v7694_v26, %v7753_v38  ;;  %v1003_v33 = vrot.slane %v912_v21, 2  ;;  %v1004_v16 = vrot.slane %v911_v52, 2  ;;  %v9930_v2 = vpop.permute.xlu1 %7766  ;;  %v2650_v26 = vld [vmem:[#allocation2 + $0x408] sm:$0xff] }
 0x18e   : > { %3418 = vmatpush1.bf16.msra.mxu1 %v2727_v62  ;;  %v722_v9 = vrot.slane %v631_v25, 5  ;;  %v723_v5 = vrot.slane %v630_v6, 5  ;;  %v9932_v45 = vpop.permute.xlu0 %7761  ;;  %v7769_v55 = vunpack.i.h.bf16 %v9930_v2  ;;  %v7768_v51 = vunpack.i.l.bf16 %v9930_v2 }
 0x18f   : > { %v7764_v58 = vunpack.i.h.bf16 %v9932_v45  ;;  %v7763_v35 = vunpack.i.l.bf16 %v9932_v45  ;;  %1083 = vst [vmem:[#allocation2 + $0x3a0] ss:$260 sps:$4 sm:$0xc1] %v1003_v33   ;;  %1084 = vst [vmem:[#allocation2 + $0x80] ss:$788 sps:$4 sm:$0xc1] %v1004_v16   ;;  %v2883_v56 = vand.u32 %v8491_v4, %v2769_v28 }
 0x190   : > { %802 = vst [vmem:[#allocation2 + $0x4a0] sm:$0x38] %v722_v9  ;;  %803 = vst [vmem:[#allocation2 + $0x390] sm:$0x38] %v723_v5  ;;  %v2652_v8 = vld [vmem:[#allocation2 + $0x98] sm:$0xff]  ;;  %v469_v63 = vsel %vm455_vm9, %v7768_v51, %v7769_v55  ;;  %v470_v59 = vsel %vm455_vm9, %v7724_v57, %v7768_v51 }
 0x191   : > { %6337 = vmatmul.mubr.msk.bf16.vlgmr.msra.gmra.mxu1 %vm2802_vm10, %v9387_v36  ;;  %v1232_v54 = vsel %vm1218_vm8, %v7763_v35, %v7764_v58  ;;  %v1233_v36 = vsel %vm1218_vm8, %v7704_v18, %v7763_v35  ;;  %v2692_v11 = vld [vmem:[#allocation2 + $0x3d0] sm:$0x7]  ;;  %521 = vst [vmem:[#allocation2 + $0x4a0] sm:$0x7] %v470_v59  ;;  %522 = vst [vmem:[#allocation2 + $0x390] sm:$0x7] %v469_v63  ;;  %v9957_v57 = vpop.permute.xlu1 %7776 }
 0x192   : > { %v2690_v48 = vld [vmem:[#allocation2 + $0xe0] sm:$0x7]  ;;  %v2691_v40 = vld [vmem:[#allocation2 + $0x58] sm:$0x7]  ;;  %3521 = vmatprep.mubr.bf16.mxu1 %v8065_v42  ;;  %v1324_v32 = vrot.slane %v1233_v36, 7  ;;  %v1325_v0 = vrot.slane %v1232_v54, 7  ;;  %v9959_v47 = vpop.permute.xlu0 %7771  ;;  %v2772_v49 = vpack.c.bf16 %v2692_v11, %v2652_v8  ;;  %v7779_v31 = vunpack.i.h.bf16 %v9957_v57 }
 0x193   : > { %v2770_v53 = vpack.c.bf16 %v2690_v48, %v2650_v26  ;;  %v7778_v22 = vunpack.i.l.bf16 %v9957_v57  ;;  %v7774_v18 = vunpack.i.h.bf16 %v9959_v47  ;;  %v7773_v50 = vunpack.i.l.bf16 %v9959_v47  ;;  %v2569_v63 = vld [vmem:[#allocation2 + $0x458] sm:$0xff] }
 0x194   : > { %1404 = vst [vmem:[#allocation2 + $0x3a0] sm:$0xe] %v1324_v32  ;;  %1405 = vst [vmem:[#allocation2 + $0x80] sm:$0xe] %v1325_v0  ;;  %v2892_v24 = vand.u32 %v8491_v4, %v2772_v49  ;;  %v2771_v62 = vpack.c.bf16 %v2691_v40, %v2651_v34 }
 0x195   : > { %v2886_v41 = vand.u32 %v8491_v4, %v2770_v53  ;;  %v909_v15 = vsel %vm897_vm5, %v7778_v22, %v7779_v31  ;;  %v910_v38 = vsel %vm897_vm5, %v7759_v46, %v7778_v22  ;;  %v628_v52 = vsel %vm616_vm6, %v7773_v50, %v7774_v18  ;;  %v7787_v16 = vpop.permute.xlu1 %7786  ;;  %v2609_v22 = vld [vmem:[#allocation2 + $0x318] sm:$0xff] }
 0x196   : > { %v629_v21 = vsel %vm616_vm6, %v7754_v7, %v7773_v50  ;;  %v1005_v6 = vrot.slane %v910_v38, 2  ;;  %v1006_v25 = vrot.slane %v909_v15, 2  ;;  %v725_v33 = vrot.slane %v628_v52, 5  ;;  %v9980_v9 = vpop.permute.xlu0 %7781  ;;  %3501 = vmatprep.subr.bf16.mxu1 %v2892_v24 }
 0x197   : > { %v724_v17 = vrot.slane %v629_v21, 5  ;;  %3458 = vmatprep.subr.bf16.mxu0 %v2886_v41  ;;  %v7789_v5 = vunpack.i.h.bf16 %v7787_v16  ;;  %v7788_v51 = vunpack.i.l.bf16 %v7787_v16  ;;  %v7784_v46 = vunpack.i.h.bf16 %v9980_v9 }
 0x198   : > { %v7783_v35 = vunpack.i.l.bf16 %v9980_v9  ;;  %3459 = vmatpush1.bf16.msra.mxu0 %v2883_v56  ;;  %1085 = vst [vmem:[#allocation2 + $0x400] ss:$-836 sps:$4 sm:$0xc1] %v1005_v6   ;;  %1086 = vst [vmem:[#allocation2 + $0x228] ss:$76 sps:$4 sm:$0xc1] %v1006_v25   ;;  %v2889_v7 = vand.u32 %v8491_v4, %v2771_v62 }
 0x199   : > { %804 = vst [vmem:[#allocation2 + $0xb8] sm:$0x38] %v724_v17  ;;  %805 = vst [vmem:[#allocation2 + $0x270] sm:$0x38] %v725_v33  ;;  %v1588_v10 = vsel %vm1579_vm1, %v7788_v51, %v7789_v5  ;;  %v1589_v26 = vsel %vm1579_vm1, %v7729_v20, %v7788_v51  ;;  %v7797_v23 = vpop.permute.xlu1 %7796  ;;  %v2570_v53 = vld [vmem:[#allocation2 + $0x4a0] sm:$0xff] }
 0x19a   : > { %v1230_v8 = vsel %vm1218_vm8, %v7783_v35, %v7784_v46  ;;  %v1231_v28 = vsel %vm1218_vm8, %v7764_v58, %v7783_v35  ;;  %v1689_v59 = vrot.slane %v1589_v26, 1  ;;  %v1690_v54 = vrot.slane %v1588_v10, 1  ;;  %3502 = vmatpush1.bf16.msra.mxu1 %v2889_v7  ;;  %v7792_v11 = vpop.permute.xlu0 %7791 }
 0x19b   : > { %v1326_v36 = vrot.slane %v1231_v28, 7  ;;  %v1327_v48 = vrot.slane %v1230_v8, 7  ;;  %v7799_v40 = vunpack.i.h.bf16 %v7797_v23  ;;  %v7798_v20 = vunpack.i.l.bf16 %v7797_v23  ;;  %v2610_v49 = vld [vmem:[#allocation2 + $0x3a0] sm:$0xff] }
 0x19c   : > { %v7794_v32 = vunpack.i.h.bf16 %v7792_v11  ;;  %v7793_v0 = vunpack.i.l.bf16 %v7792_v11  ;;  %1769 = vst [vmem:[#allocation2 + $0xc8] ss:$644 sps:$4 sm:$0x83] %v1689_v59   ;;  %1770 = vst [vmem:[#allocation2 + $0x420] ss:$-404 sps:$4 sm:$0x83] %v1690_v54   ;;  %v2730_v45 = vpack.c.bf16 %v2610_v49, %v2570_v53  ;;  %v2729_v58 = vpack.c.bf16 %v2609_v22, %v2569_v63 }
 0x19d   : > { %1406 = vst [vmem:[#allocation2 + $0x400] sm:$0xe] %v1326_v36  ;;  %1407 = vst [vmem:[#allocation2 + $0x228] sm:$0xe] %v1327_v48  ;;  %v2190_v50 = vsel %vm2181_vm0, %v7798_v20, %v7799_v40  ;;  %v2191_v34 = vsel %vm2181_vm0, %v7739_v19, %v7798_v20  ;;  %v10011_v52 = vpop.permute.xlu1 %7806  ;;  %v2611_v22 = vld [vmem:[#allocation2 + $0x80] sm:$0xff] }
 0x19e   : > { %v1909_v41 = vsel %vm1900_vm2, %v7793_v0, %v7794_v32  ;;  %v1910_v24 = vsel %vm1900_vm2, %v7734_v43, %v7793_v0  ;;  %v2291_v56 = vrot.slane %v2191_v34, 3  ;;  %v2292_v62 = vrot.slane %v2190_v50, 3  ;;  %v10013_v21 = vpop.permute.xlu0 %7801  ;;  %3460 = vmatprep.subr.bf16.mxu0 %v2730_v45 }
 0x19f   : > { %v2010_v15 = vrot.slane %v1910_v24, 6  ;;  %v2011_v38 = vrot.slane %v1909_v41, 6  ;;  %v7809_v14 = vunpack.i.h.bf16 %v10011_v52  ;;  %v7808_v19 = vunpack.i.l.bf16 %v10011_v52  ;;  %3461 = vmatpush1.bf16.msra.mxu0 %v2729_v58  ;;  %v2571_v24 = vld [vmem:[#allocation2 + $0x390] sm:$0xff] }
 0x1a0   : > { %v7804_v6 = vunpack.i.h.bf16 %v10013_v21  ;;  %v7803_v44 = vunpack.i.l.bf16 %v10013_v21  ;;  %2371 = vst [vmem:[#allocation2 + $0xc8] sm:$0xe0] %v2291_v56  ;;  %2372 = vst [vmem:[#allocation2 + $0x420] sm:$0xe0] %v2292_v62 }
 0x1a1   : > { %2090 = vst [vmem:[#allocation2 + $0xc8] sm:$0x1c] %v2010_v15  ;;  %2091 = vst [vmem:[#allocation2 + $0x420] sm:$0x1c] %v2011_v38  ;;  %v1586_v43 = vsel %vm1579_vm1, %v7808_v19, %v7809_v14  ;;  %v1587_v25 = vsel %vm1579_vm1, %v7789_v5, %v7808_v19  ;;  %v10033_v35 = vpop.permute.xlu1 %7816  ;;  %v10040_v5 = vld [vmem:[%s10650_s1] sm:$0xff]   ;;  %v2731_v38 = vpack.c.bf16 %v2611_v22, %v2571_v24 }
 0x1a2   : > { %v467_v17 = vsel %vm455_vm9, %v7803_v44, %v7804_v6  ;;  %v468_v33 = vsel %vm455_vm9, %v7769_v55, %v7803_v44  ;;  %v1691_v16 = vrot.slane %v1587_v25, 1  ;;  %v1692_v51 = vrot.slane %v1586_v43, 1  ;;  %v10035_v7 = vpop.permute.xlu0 %7811  ;;  %6338 = vmatmul.mubr.msk.bf16.vlgmr.msra.gmra.mxu0 %vm2802_vm10, %v10040_v5 }
 0x1a3   : > { %523 = vst [vmem:[#allocation2 + $0xb8] sm:$0x7] %v468_v33  ;;  %524 = vst [vmem:[#allocation2 + $0x270] sm:$0x7] %v467_v17  ;;  %v7819_v2 = vunpack.i.h.bf16 %v10033_v35  ;;  %v7818_v55 = vunpack.i.l.bf16 %v10033_v35  ;;  %v7814_v10 = vunpack.i.h.bf16 %v10035_v7  ;;  %v7813_v26 = vunpack.i.l.bf16 %v10035_v7  ;;  %3564 = vmatprep.mubr.bf16.mxu0 %v8065_v42 }
 0x1a4   : > { %1771 = vst [vmem:[#allocation2 + $0x28] ss:$1084 sps:$4 sm:$0x83] %v1691_v16   ;;  %1772 = vst [vmem:[#allocation2 + $0x290] ss:$548 sps:$4 sm:$0x83] %v1692_v51  }
 0x1a5   : > { %v2188_v8 = vsel %vm2181_vm0, %v7818_v55, %v7819_v2  ;;  %v2189_v28 = vsel %vm2181_vm0, %v7799_v40, %v7818_v55  ;;  %v1907_v63 = vsel %vm1900_vm2, %v7813_v26, %v7814_v10  ;;  %v1908_v59 = vsel %vm1900_vm2, %v7794_v32, %v7813_v26  ;;  %v10061_v11 = vpop.permute.xlu1 %7826  ;;  %v2612_v41 = vld [vmem:[#allocation2 + $0x400] sm:$0xff] }
 0x1a6   : > { %v2293_v54 = vrot.slane %v2189_v28, 3  ;;  %v2294_v36 = vrot.slane %v2188_v8, 3  ;;  %v2012_v48 = vrot.slane %v1908_v59, 6  ;;  %v2013_v23 = vrot.slane %v1907_v63, 6  ;;  %v7822_v20 = vpop.permute.xlu0 %7821  ;;  %v2693_v16 = vld [vmem:[#allocation2 + $0x340] sm:$0x7] }
 0x1a7   : > { %v7829_v0 = vunpack.i.h.bf16 %v10061_v11  ;;  %v7828_v53 = vunpack.i.l.bf16 %v10061_v11  ;;  %v7824_v40 = vunpack.i.h.bf16 %v7822_v20  ;;  %v7823_v49 = vunpack.i.l.bf16 %v7822_v20 }
 0x1a8   : > { %2373 = vst [vmem:[#allocation2 + $0x28] sm:$0xe0] %v2293_v54  ;;  %2374 = vst [vmem:[#allocation2 + $0x290] sm:$0xe0] %v2294_v36  ;;  %v2653_v54 = vld [vmem:[#allocation2 + $0x410] sm:$0xff] }
 0x1a9   : > { %2092 = vst [vmem:[#allocation2 + $0x28] sm:$0x1c] %v2012_v48  ;;  %2093 = vst [vmem:[#allocation2 + $0x290] sm:$0x1c] %v2013_v23  ;;  %v2469_v32 = vsel %vm2462_vm3, %v7828_v53, %v7829_v0  ;;  %v2470_v45 = vsel %vm2462_vm3, %v7824_v40, %v7828_v53  ;;  %v2471_v58 = vsel %vm2462_vm3, %v7823_v49, %v7824_v40  ;;  %v10077_v56 = vpop.permute.xlu1 %7836 }
 0x1aa   : > { %v2472_v50 = vsel %vm2462_vm3, %v7749_v61, %v7823_v49  ;;  %v2572_v34 = vld [vmem:[#allocation2 + $0xb8] sm:$0xff]  ;;  %2535 = vst [vmem:[#allocation2 + $0x148] sm:$0x7] %v2469_v32  ;;  %2534 = vst [vmem:[#allocation2 + $0x470] sm:$0x7] %v2470_v45  ;;  %v10079_v62 = vpop.permute.xlu0 %7831  ;;  %v7839_v19 = vunpack.i.h.bf16 %v10077_v56  ;;  %v7838_v39 = vunpack.i.l.bf16 %v10077_v56  ;;  %v2773_v48 = vpack.c.bf16 %v2693_v16, %v2653_v54  ;;  %v2655_v56 = vld [vmem:[#allocation2 + $0x420] sm:$0xff] }
 0x1ab   : > { %2532 = vst [vmem:[#allocation2 + $0x3e8] sm:$0x7] %v2472_v50  ;;  %2533 = vst [vmem:[#allocation2 + $0x128] sm:$0x7] %v2471_v58  ;;  %v2732_v15 = vpack.c.bf16 %v2612_v41, %v2572_v34  ;;  %v7834_v44 = vunpack.i.h.bf16 %v10079_v62  ;;  %v7833_v61 = vunpack.i.l.bf16 %v10079_v62 }
 0x1ac   : > { %v907_v43 = vsel %vm897_vm5, %v7838_v39, %v7839_v19  ;;  %v908_v25 = vsel %vm897_vm5, %v7779_v31, %v7838_v39 }
 0x1ad   : > { %3503 = vmatprep.subr.bf16.mxu1 %v2732_v15  ;;  %v626_v17 = vsel %vm616_vm6, %v7833_v61, %v7834_v44  ;;  %v627_v33 = vsel %vm616_vm6, %v7774_v18, %v7833_v61  ;;  %v1007_v51 = vrot.slane %v908_v25, 2  ;;  %v1008_v55 = vrot.slane %v907_v43, 2  ;;  %v10097_v28 = vpop.permute.xlu1 %7846  ;;  %v2654_v18 = vld [vmem:[#allocation2 + $0xc8] sm:$0xff] }
 0x1ae   : > { %3504 = vmatpush1.bf16.msra.mxu1 %v2731_v38  ;;  %v726_v26 = vrot.slane %v627_v33, 5  ;;  %v727_v8 = vrot.slane %v626_v17, 5  ;;  %v10099_v57 = vpop.permute.xlu0 %7841  ;;  %v7849_v31 = vunpack.i.h.bf16 %v10097_v28  ;;  %v7848_v63 = vunpack.i.l.bf16 %v10097_v28 }
 0x1af   : > { %v7844_v59 = vunpack.i.h.bf16 %v10099_v57  ;;  %v7843_v47 = vunpack.i.l.bf16 %v10099_v57  ;;  %1087 = vst [vmem:[#allocation2 + $0x348] ss:$316 sps:$4 sm:$0xc1] %v1007_v51   ;;  %1088 = vst [vmem:[#allocation2 + $0x288] ss:$-220 sps:$4 sm:$0xc1] %v1008_v55   ;;  %v2895_v38 = vand.u32 %v8491_v4, %v2773_v48 }
 0x1b0   : > { %806 = vst [vmem:[#allocation2 + $0x480] sm:$0x38] %v726_v26  ;;  %807 = vst [vmem:[#allocation2 + $0x1a8] sm:$0x38] %v727_v8  ;;  %v2656_v36 = vld [vmem:[#allocation2 + $0x28] sm:$0xff]  ;;  %v465_v23 = vsel %vm455_vm9, %v7848_v63, %v7849_v31  ;;  %v466_v20 = vsel %vm455_vm9, %v7804_v6, %v7848_v63 }
 0x1b1   : > { %6339 = vmatmul.mubr.msk.bf16.vlgmr.msra.gmra.mxu1 %vm2802_vm10, %v10040_v5  ;;  %v1228_v53 = vsel %vm1218_vm8, %v7843_v47, %v7844_v59  ;;  %v1229_v40 = vsel %vm1218_vm8, %v7784_v46, %v7843_v47  ;;  %v2696_v22 = vld [vmem:[#allocation2 + $0x470] sm:$0x7]  ;;  %525 = vst [vmem:[#allocation2 + $0x480] sm:$0x7] %v466_v20  ;;  %526 = vst [vmem:[#allocation2 + $0x1a8] sm:$0x7] %v465_v23  ;;  %v10124_v6 = vpop.permute.xlu1 %7856 }
 0x1b2   : > { %v2694_v49 = vld [vmem:[#allocation2 + $0x3e8] sm:$0x7]  ;;  %3607 = vmatprep.mubr.bf16.mxu1 %v8065_v42  ;;  %v1328_v21 = vrot.slane %v1229_v40, 7  ;;  %v1329_v45 = vrot.slane %v1228_v53, 7  ;;  %v10126_v58 = vpop.permute.xlu0 %7851  ;;  %v2776_v34 = vpack.c.bf16 %v2696_v22, %v2656_v36  ;;  %v7859_v9 = vunpack.i.h.bf16 %v10124_v6  ;;  %v2573_v20 = vld [vmem:[#allocation2 + $0x270] sm:$0xff] }
 0x1b3   : > { %v2695_v32 = vld [vmem:[#allocation2 + $0x128] sm:$0x7]  ;;  %v2774_v50 = vpack.c.bf16 %v2694_v49, %v2654_v18  ;;  %v7858_v41 = vunpack.i.l.bf16 %v10124_v6  ;;  %v7854_v46 = vunpack.i.h.bf16 %v10126_v58  ;;  %v7853_v24 = vunpack.i.l.bf16 %v10126_v58 }
 0x1b4   : > { %1408 = vst [vmem:[#allocation2 + $0x348] sm:$0xe] %v1328_v21  ;;  %1409 = vst [vmem:[#allocation2 + $0x288] sm:$0xe] %v1329_v45  ;;  %v2904_v15 = vand.u32 %v8491_v4, %v2776_v34  ;;  %v2775_v39 = vpack.c.bf16 %v2695_v32, %v2655_v56 }
 0x1b5   : > { %v2898_v62 = vand.u32 %v8491_v4, %v2774_v50  ;;  %v905_v61 = vsel %vm897_vm5, %v7858_v41, %v7859_v9  ;;  %v906_v43 = vsel %vm897_vm5, %v7839_v19, %v7858_v41  ;;  %v624_v25 = vsel %vm616_vm6, %v7853_v24, %v7854_v46  ;;  %v7867_v26 = vpop.permute.xlu1 %7866 }
 0x1b6   : > { %v625_v17 = vsel %vm616_vm6, %v7834_v44, %v7853_v24  ;;  %v1009_v33 = vrot.slane %v906_v43, 2  ;;  %v1010_v16 = vrot.slane %v905_v61, 2  ;;  %v729_v55 = vrot.slane %v624_v25, 5  ;;  %v10147_v8 = vpop.permute.xlu0 %7861  ;;  %3587 = vmatprep.subr.bf16.mxu1 %v2904_v15  ;;  %v2613_v24 = vld [vmem:[#allocation2 + $0x228] sm:$0xff] }
 0x1b7   : > { %v728_v51 = vrot.slane %v625_v17, 5  ;;  %3544 = vmatprep.subr.bf16.mxu0 %v2898_v62  ;;  %v7869_v63 = vunpack.i.h.bf16 %v7867_v26  ;;  %v7868_v47 = vunpack.i.l.bf16 %v7867_v26  ;;  %v7864_v19 = vunpack.i.h.bf16 %v10147_v8 }
 0x1b8   : > { %v7863_v54 = vunpack.i.l.bf16 %v10147_v8  ;;  %3545 = vmatpush1.bf16.msra.mxu0 %v2895_v38  ;;  %1089 = vst [vmem:[#allocation2 + $0x460] ss:$-444 sps:$4 sm:$0xc1] %v1009_v33   ;;  %1090 = vst [vmem:[#allocation2 + $0x4b0] ss:$-1140 sps:$4 sm:$0xc1] %v1010_v16   ;;  %v2901_v44 = vand.u32 %v8491_v4, %v2775_v39 }
 0x1b9   : > { %808 = vst [vmem:[#allocation2 + $0x2a0] sm:$0x38] %v728_v51  ;;  %809 = vst [vmem:[#allocation2 + $0x38] sm:$0x38] %v729_v55  ;;  %v1584_v18 = vsel %vm1579_vm1, %v7868_v47, %v7869_v63  ;;  %v1585_v36 = vsel %vm1579_vm1, %v7809_v14, %v7868_v47  ;;  %v7877_v52 = vpop.permute.xlu1 %7876  ;;  %v2574_v34 = vld [vmem:[#allocation2 + $0x480] sm:$0xff] }
 0x1ba   : > { %v1226_v48 = vsel %vm1218_vm8, %v7863_v54, %v7864_v19  ;;  %v1227_v23 = vsel %vm1218_vm8, %v7844_v59, %v7863_v54  ;;  %v1693_v53 = vrot.slane %v1585_v36, 1  ;;  %v1694_v40 = vrot.slane %v1584_v18, 1  ;;  %3588 = vmatpush1.bf16.msra.mxu1 %v2901_v44  ;;  %v7872_v32 = vpop.permute.xlu0 %7871 }
 0x1bb   : > { %v1330_v49 = vrot.slane %v1227_v23, 7  ;;  %v1331_v22 = vrot.slane %v1226_v48, 7  ;;  %v7879_v21 = vunpack.i.h.bf16 %v7877_v52  ;;  %v7878_v14 = vunpack.i.l.bf16 %v7877_v52  ;;  %v2614_v41 = vld [vmem:[#allocation2 + $0x348] sm:$0xff] }
 0x1bc   : > { %v7874_v45 = vunpack.i.h.bf16 %v7872_v32  ;;  %v7873_v50 = vunpack.i.l.bf16 %v7872_v32  ;;  %1773 = vst [vmem:[#allocation2 + $0x330] ss:$-340 sps:$4 sm:$0x83] %v1693_v53   ;;  %1774 = vst [vmem:[#allocation2 + $0x118] ss:$236 sps:$4 sm:$0x83] %v1694_v40   ;;  %v2734_v57 = vpack.c.bf16 %v2614_v41, %v2574_v34  ;;  %v2733_v59 = vpack.c.bf16 %v2613_v24, %v2573_v20 }
 0x1bd   : > { %1410 = vst [vmem:[#allocation2 + $0x460] sm:$0xe] %v1330_v49  ;;  %1411 = vst [vmem:[#allocation2 + $0x4b0] sm:$0xe] %v1331_v22  ;;  %v2186_v56 = vsel %vm2181_vm0, %v7878_v14, %v7879_v21  ;;  %v2187_v62 = vsel %vm2181_vm0, %v7819_v2, %v7878_v14  ;;  %v10178_v17 = vpop.permute.xlu1 %7886  ;;  %v2615_v24 = vld [vmem:[#allocation2 + $0x288] sm:$0xff] }
 0x1be   : > { %v1905_v15 = vsel %vm1900_vm2, %v7873_v50, %v7874_v45  ;;  %v1906_v38 = vsel %vm1900_vm2, %v7814_v10, %v7873_v50  ;;  %v2295_v39 = vrot.slane %v2187_v62, 3  ;;  %v2296_v61 = vrot.slane %v2186_v56, 3  ;;  %v10180_v33 = vpop.permute.xlu0 %7881  ;;  %3546 = vmatprep.subr.bf16.mxu0 %v2734_v57 }
 0x1bf   : > { %v2014_v43 = vrot.slane %v1906_v38, 6  ;;  %v2015_v25 = vrot.slane %v1905_v15, 6  ;;  %v7889_v35 = vunpack.i.h.bf16 %v10178_v17  ;;  %v7888_v2 = vunpack.i.l.bf16 %v10178_v17  ;;  %3547 = vmatpush1.bf16.msra.mxu0 %v2733_v59  ;;  %v2575_v38 = vld [vmem:[#allocation2 + $0x1a8] sm:$0xff] }
 0x1c0   : > { %v7884_v16 = vunpack.i.h.bf16 %v10180_v33  ;;  %v7883_v7 = vunpack.i.l.bf16 %v10180_v33  ;;  %2375 = vst [vmem:[#allocation2 + $0x330] sm:$0xe0] %v2295_v39  ;;  %2376 = vst [vmem:[#allocation2 + $0x118] sm:$0xe0] %v2296_v61 }
 0x1c1   : > { %2094 = vst [vmem:[#allocation2 + $0x330] sm:$0x1c] %v2014_v43  ;;  %2095 = vst [vmem:[#allocation2 + $0x118] sm:$0x1c] %v2015_v25  ;;  %v1582_v10 = vsel %vm1579_vm1, %v7888_v2, %v7889_v35  ;;  %v1583_v51 = vsel %vm1579_vm1, %v7869_v63, %v7888_v2  ;;  %v10200_v44 = vpop.permute.xlu1 %7896  ;;  %v2735_v25 = vpack.c.bf16 %v2615_v24, %v2575_v38 }
 0x1c2   : > { %v463_v55 = vsel %vm455_vm9, %v7883_v7, %v7884_v16  ;;  %v464_v26 = vsel %vm455_vm9, %v7849_v31, %v7883_v7  ;;  %v1695_v47 = vrot.slane %v1583_v51, 1  ;;  %v1696_v54 = vrot.slane %v1582_v10, 1  ;;  %v10202_v18 = vpop.permute.xlu0 %7891  ;;  %6340 = vmatmul.mubr.msk.bf16.vlgmr.msra.gmra.mxu0 %vm2802_vm10, %v10040_v5 }
 0x1c3   : > { %527 = vst [vmem:[#allocation2 + $0x2a0] sm:$0x7] %v464_v26  ;;  %528 = vst [vmem:[#allocation2 + $0x38] sm:$0x7] %v463_v55  ;;  %v7899_v63 = vunpack.i.h.bf16 %v10200_v44  ;;  %v7898_v36 = vunpack.i.l.bf16 %v10200_v44  ;;  %v7894_v28 = vunpack.i.h.bf16 %v10202_v18  ;;  %v7893_v48 = vunpack.i.l.bf16 %v10202_v18  ;;  %3650 = vmatprep.mubr.bf16.mxu0 %v8065_v42 }
 0x1c4   : > { %1775 = vst [vmem:[#allocation2 + $0x490] ss:$-1084 sps:$4 sm:$0x83] %v1695_v47   ;;  %1776 = vst [vmem:[#allocation2 + $0x4c8] ss:$-788 sps:$4 sm:$0x83] %v1696_v54   ;;  %v10671_v18 = vunpack.i.l.bf16 %v8435_v27 }
 0x1c5   : > { %v2184_v31 = vsel %vm2181_vm0, %v7898_v36, %v7899_v63  ;;  %v2185_v23 = vsel %vm2181_vm0, %v7879_v21, %v7898_v36  ;;  %v1903_v20 = vsel %vm1900_vm2, %v7893_v48, %v7894_v28  ;;  %v1904_v53 = vsel %vm1900_vm2, %v7874_v45, %v7893_v48  ;;  %v10223_v32 = vpop.permute.xlu1 %7906  ;;  %v2616_v15 = vld [vmem:[#allocation2 + $0x460] sm:$0xff]  ;;  %v2697_v47 = vld [vmem:[#allocation2 + $0x148] sm:$0x7] }
 0x1c6   : > { %v2297_v40 = vrot.slane %v2185_v23, 3  ;;  %v2298_v49 = vrot.slane %v2184_v31, 3  ;;  %v2016_v22 = vrot.slane %v1904_v53, 6  ;;  %v2017_v52 = vrot.slane %v1903_v20, 6  ;;  %v7902_v14 = vpop.permute.xlu0 %7901 }
 0x1c7   : > { %v7909_v50 = vunpack.i.h.bf16 %v10223_v32  ;;  %v7908_v34 = vunpack.i.l.bf16 %v10223_v32  ;;  %v7904_v21 = vunpack.i.h.bf16 %v7902_v14  ;;  %v7903_v41 = vunpack.i.l.bf16 %v7902_v14 }
 0x1c8   : > { %2377 = vst [vmem:[#allocation2 + $0x490] sm:$0xe0] %v2297_v40  ;;  %2378 = vst [vmem:[#allocation2 + $0x4c8] sm:$0xe0] %v2298_v49  ;;  %v2657_v40 = vld [vmem:[#allocation2 + $0x290] sm:$0xff] }
 0x1c9   : > { %2096 = vst [vmem:[#allocation2 + $0x490] sm:$0x1c] %v2016_v22  ;;  %2097 = vst [vmem:[#allocation2 + $0x4c8] sm:$0x1c] %v2017_v52  ;;  %v2465_v45 = vsel %vm2462_vm3, %v7908_v34, %v7909_v50  ;;  %v2466_v57 = vsel %vm2462_vm3, %v7904_v21, %v7908_v34  ;;  %v2467_v59 = vsel %vm2462_vm3, %v7903_v41, %v7904_v21  ;;  %v10239_v39 = vpop.permute.xlu1 %7916 }
 0x1ca   : > { %v2468_v56 = vsel %vm2462_vm3, %v7829_v0, %v7903_v41  ;;  %v2576_v62 = vld [vmem:[#allocation2 + $0x2a0] sm:$0xff]  ;;  %2539 = vst [vmem:[#allocation2 + $0x370] sm:$0x7] %v2465_v45  ;;  %2538 = vst [vmem:[#allocation2 + $0x430] sm:$0x7] %v2466_v57  ;;  %v10241_v61 = vpop.permute.xlu0 %7911  ;;  %v7919_v2 = vunpack.i.h.bf16 %v10239_v39  ;;  %v7918_v11 = vunpack.i.l.bf16 %v10239_v39  ;;  %v2777_v22 = vpack.c.bf16 %v2697_v47, %v2657_v40  ;;  %v2659_v39 = vld [vmem:[#allocation2 + $0x118] sm:$0xff] }
 0x1cb   : > { %2536 = vst [vmem:[#allocation2 + $0xd0] sm:$0x7] %v2468_v56  ;;  %2537 = vst [vmem:[#allocation2 + $0x230] sm:$0x7] %v2467_v59  ;;  %v2736_v43 = vpack.c.bf16 %v2616_v15, %v2576_v62  ;;  %v7914_v7 = vunpack.i.h.bf16 %v10241_v61  ;;  %v7913_v0 = vunpack.i.l.bf16 %v10241_v61 }
 0x1cc   : > { %v903_v10 = vsel %vm897_vm5, %v7918_v11, %v7919_v2  ;;  %v904_v51 = vsel %vm897_vm5, %v7859_v9, %v7918_v11 }
 0x1cd   : > { %3589 = vmatprep.subr.bf16.mxu1 %v2736_v43  ;;  %v622_v55 = vsel %vm616_vm6, %v7913_v0, %v7914_v7  ;;  %v623_v26 = vsel %vm616_vm6, %v7854_v46, %v7913_v0  ;;  %v1011_v54 = vrot.slane %v904_v51, 2  ;;  %v1012_v36 = vrot.slane %v903_v10, 2  ;;  %v10259_v23 = vpop.permute.xlu1 %7926  ;;  %v2658_v46 = vld [vmem:[#allocation2 + $0x330] sm:$0xff] }
 0x1ce   : > { %3590 = vmatpush1.bf16.msra.mxu1 %v2735_v25  ;;  %v730_v48 = vrot.slane %v623_v26, 5  ;;  %v731_v31 = vrot.slane %v622_v55, 5  ;;  %v10261_v6 = vpop.permute.xlu0 %7921  ;;  %v7929_v9 = vunpack.i.h.bf16 %v10259_v23  ;;  %v7928_v20 = vunpack.i.l.bf16 %v10259_v23 }
 0x1cf   : > { %v7924_v53 = vunpack.i.h.bf16 %v10261_v6  ;;  %v7923_v58 = vunpack.i.l.bf16 %v10261_v6  ;;  %1091 = vst [vmem:[#allocation2 + $0x1d8] ss:$548 sps:$4 sm:$0xc1] %v1011_v54   ;;  %1092 = vst [vmem:[#allocation2 + $0x200] ss:$-332 sps:$4 sm:$0xc1] %v1012_v36   ;;  %v2907_v25 = vand.u32 %v8491_v4, %v2777_v22  ;;  %v10668_v22 = vunpack.i.l.bf16 %v8352_v12 }
 0x1d0   : > { %810 = vst [vmem:[#allocation2 + $0x3f8] sm:$0x38] %v730_v48  ;;  %811 = vst [vmem:[#allocation2 + $0xb0] sm:$0x38] %v731_v31  ;;  %v2660_v49 = vld [vmem:[#allocation2 + $0x490] sm:$0xff]  ;;  %v461_v52 = vsel %vm455_vm9, %v7928_v20, %v7929_v9  ;;  %v462_v14 = vsel %vm455_vm9, %v7884_v16, %v7928_v20  ;;  %v2577_v12 = vld [vmem:[#allocation2 + $0x38] sm:$0xff] }
 0x1d1   : > { %6341 = vmatmul.mubr.msk.bf16.vlgmr.msra.gmra.mxu1 %vm2802_vm10, %v10040_v5  ;;  %v1224_v34 = vsel %vm1218_vm8, %v7923_v58, %v7924_v53  ;;  %v1225_v21 = vsel %vm1218_vm8, %v7864_v19, %v7923_v58  ;;  %v2700_v24 = vld [vmem:[#allocation2 + $0x430] sm:$0x7]  ;;  %529 = vst [vmem:[#allocation2 + $0x3f8] sm:$0x7] %v462_v14  ;;  %530 = vst [vmem:[#allocation2 + $0xb0] sm:$0x7] %v461_v52  ;;  %v10286_v16 = vpop.permute.xlu1 %7936 }
 0x1d2   : > { %v2698_v41 = vld [vmem:[#allocation2 + $0xd0] sm:$0x7]  ;;  %3693 = vmatprep.mubr.bf16.mxu1 %v8065_v42  ;;  %v1332_v33 = vrot.slane %v1225_v21, 7  ;;  %v1333_v57 = vrot.slane %v1224_v34, 7  ;;  %v10288_v59 = vpop.permute.xlu0 %7931  ;;  %v2780_v62 = vpack.c.bf16 %v2700_v24, %v2660_v49  ;;  %v7939_v8 = vunpack.i.h.bf16 %v10286_v16 }
 0x1d3   : > { %v2699_v45 = vld [vmem:[#allocation2 + $0x230] sm:$0x7]  ;;  %v2778_v56 = vpack.c.bf16 %v2698_v41, %v2658_v46  ;;  %v7938_v15 = vunpack.i.l.bf16 %v10286_v16  ;;  %v7934_v19 = vunpack.i.h.bf16 %v10288_v59  ;;  %v7933_v38 = vunpack.i.l.bf16 %v10288_v59 }
 0x1d4   : > { %1412 = vst [vmem:[#allocation2 + $0x1d8] sm:$0xe] %v1332_v33  ;;  %1413 = vst [vmem:[#allocation2 + $0x200] sm:$0xe] %v1333_v57  ;;  %v2916_v43 = vand.u32 %v8491_v4, %v2780_v62  ;;  %v2779_v11 = vpack.c.bf16 %v2699_v45, %v2659_v39  ;;  %v2617_v6 = vld [vmem:[#allocation2 + $0x4b0] sm:$0xff] }
 0x1d5   : > { %v2910_v61 = vand.u32 %v8491_v4, %v2778_v56  ;;  %v901_v0 = vsel %vm897_vm5, %v7938_v15, %v7939_v8  ;;  %v902_v10 = vsel %vm897_vm5, %v7919_v2, %v7938_v15  ;;  %v620_v51 = vsel %vm616_vm6, %v7933_v38, %v7934_v19  ;;  %v7947_v48 = vpop.permute.xlu1 %7946 }
 0x1d6   : > { %v621_v55 = vsel %vm616_vm6, %v7914_v7, %v7933_v38  ;;  %v1013_v26 = vrot.slane %v902_v10, 2  ;;  %v1014_v47 = vrot.slane %v901_v0, 2  ;;  %v733_v36 = vrot.slane %v620_v51, 5  ;;  %v10309_v31 = vpop.permute.xlu0 %7941  ;;  %3673 = vmatprep.subr.bf16.mxu1 %v2916_v43 }
 0x1d7   : > { %v732_v54 = vrot.slane %v621_v55, 5  ;;  %3630 = vmatprep.subr.bf16.mxu0 %v2910_v61  ;;  %v7949_v20 = vunpack.i.h.bf16 %v7947_v48  ;;  %v7948_v58 = vunpack.i.l.bf16 %v7947_v48  ;;  %v7944_v2 = vunpack.i.h.bf16 %v10309_v31 }
 0x1d8   : > { %v7943_v40 = vunpack.i.l.bf16 %v10309_v31  ;;  %3631 = vmatpush1.bf16.msra.mxu0 %v2907_v25  ;;  %1093 = vst [vmem:[#allocation2 + $0x50] ss:$724 sps:$4 sm:$0xc1] %v1013_v26   ;;  %1094 = vst [vmem:[#allocation2 + $0x1b0] ss:$-36 sps:$4 sm:$0xc1] %v1014_v47   ;;  %v2913_v7 = vand.u32 %v8491_v4, %v2779_v11  ;;  %v10669_v25 = vunpack.i.l.bf16 %v8368_v29  ;;  %v2737_v0 = vpack.c.bf16 %v2617_v6, %v2577_v12 }
 0x1d9   : > { %812 = vst [vmem:[#allocation2 + $0x320] sm:$0x38] %v732_v54  ;;  %813 = vst [vmem:[#allocation2 + $0x188] sm:$0x38] %v733_v36  ;;  %v1580_v46 = vsel %vm1579_vm1, %v7948_v58, %v7949_v20  ;;  %v1581_v49 = vsel %vm1579_vm1, %v7889_v35, %v7948_v58  ;;  %v1619_v52 = vsel %vm1579_vm1, %v7949_v20, %v10668_v22  ;;  %v7957_v35 = vpop.permute.xlu1 %7956  ;;  %v2578_v62 = vld [vmem:[#allocation2 + $0x3f8] sm:$0xff]  ;;  %v10670_v29 = vunpack.i.l.bf16 %v8370_v30 }
 0x1da   : > { %v1222_v14 = vsel %vm1218_vm8, %v7943_v40, %v7944_v2  ;;  %v1697_v34 = vrot.slane %v1581_v49, 1  ;;  %v1698_v21 = vrot.slane %v1580_v46, 1  ;;  %v1699_v41 = vrot.slane %v1619_v52, 1  ;;  %3674 = vmatpush1.bf16.msra.mxu1 %v2913_v7  ;;  %v7952_v24 = vpop.permute.xlu0 %7951 }
 0x1db   : > { %v1223_v17 = vsel %vm1218_vm8, %v7924_v53, %v7943_v40  ;;  %v1335_v33 = vrot.slane %v1222_v14, 7  ;;  %v7959_v57 = vunpack.i.h.bf16 %v7957_v35  ;;  %v7958_v56 = vunpack.i.l.bf16 %v7957_v35  ;;  %v2618_v15 = vld [vmem:[#allocation2 + $0x1d8] sm:$0xff] }
 0x1dc   : > { %v1334_v45 = vrot.slane %v1223_v17, 7  ;;  %1777 = vst [vmem:[#allocation2 + $0x120] ss:$52 sps:$4 sm:$0x83] %v1697_v34   ;;  %v7954_v38 = vunpack.i.h.bf16 %v7952_v24  ;;  %v7953_v39 = vunpack.i.l.bf16 %v7952_v24  ;;  %v2738_v61 = vpack.c.bf16 %v2618_v15, %v2578_v62  ;;  %v2701_v15 = vld [vmem:[#allocation2 + $0x370] sm:$0x7] }
 0x1dd   : > { %1778 = vst [vmem:[#allocation2 + $0x1d0] ss:$796 sps:$4 sm:$0x83] %v1698_v21   ;;  %1779 = vst [vmem:[#allocation2 + $0x208] ss:$-116 sps:$4 sm:$0x83] %v1699_v41   ;;  %v2182_v53 = vsel %vm2181_vm0, %v7958_v56, %v7959_v57  ;;  %v2183_v43 = vsel %vm2181_vm0, %v7899_v63, %v7958_v56  ;;  %v2221_v11 = vsel %vm2181_vm0, %v7959_v57, %v10669_v25  ;;  %v7967_v47 = vpop.permute.xlu1 %7966  ;;  %v10672_v41 = vunpack.i.l.bf16 %v8520_v3 }
 0x1de   : > { %1414 = vst [vmem:[#allocation2 + $0x50] sm:$0xe] %v1334_v45  ;;  %1415 = vst [vmem:[#allocation2 + $0x1b0] sm:$0xe] %v1335_v33  ;;  %v2299_v10 = vrot.slane %v2183_v43, 3  ;;  %v2300_v51 = vrot.slane %v2182_v53, 3  ;;  %v1901_v26 = vsel %vm1900_vm2, %v7953_v39, %v7954_v38  ;;  %v7962_v54 = vpop.permute.xlu0 %7961  ;;  %3632 = vmatprep.subr.bf16.mxu0 %v2738_v61  ;;  %v1902_v44 = vsel %vm1900_vm2, %v7894_v28, %v7953_v39 }
 0x1df   : > { %v2301_v55 = vrot.slane %v2221_v11, 3  ;;  %v1940_v63 = vsel %vm1900_vm2, %v7954_v38, %v10670_v29  ;;  %v2019_v36 = vrot.slane %v1901_v26, 6  ;;  %v7969_v48 = vunpack.i.h.bf16 %v7967_v47  ;;  %3633 = vmatpush1.bf16.msra.mxu0 %v2737_v0  ;;  %v2619_v25 = vld [vmem:[#allocation2 + $0x200] sm:$0xff] }
 0x1e0   : > { %2379 = vst [vmem:[#allocation2 + $0x120] sm:$0xe0] %v2299_v10  ;;  %2380 = vst [vmem:[#allocation2 + $0x1d0] sm:$0xe0] %v2300_v51  ;;  %v2018_v20 = vrot.slane %v1902_v44, 6  ;;  %v2020_v58 = vrot.slane %v1940_v63, 6  ;;  %v7968_v40 = vunpack.i.l.bf16 %v7967_v47  ;;  %v7964_v7 = vunpack.i.h.bf16 %v7962_v54 }
 0x1e1   : > { %2381 = vst [vmem:[#allocation2 + $0x208] sm:$0xe0] %v2301_v55  ;;  %2099 = vst [vmem:[#allocation2 + $0x1d0] sm:$0x1c] %v2019_v36  ;;  %v2502_v28 = vsel %vm2462_vm3, %v7969_v48, %v10671_v18  ;;  %v7963_v30 = vunpack.i.l.bf16 %v7962_v54  ;;  %v7977_v22 = vpop.permute.xlu1 %7976  ;;  %v10673_v45 = vunpack.i.l.bf16 %v8493_v13  ;;  %v10674_v31 = vunpack.i.l.bf16 %v8603_v37 }
 0x1e2   : > { %2098 = vst [vmem:[#allocation2 + $0x120] sm:$0x1c] %v2018_v20  ;;  %2100 = vst [vmem:[#allocation2 + $0x208] sm:$0x1c] %v2020_v58  ;;  %v2463_v46 = vsel %vm2462_vm3, %v7968_v40, %v7969_v48  ;;  %v2464_v49 = vsel %vm2462_vm3, %v7909_v50, %v7968_v40  ;;  %v7972_v52 = vpop.permute.xlu0 %7971  ;;  %6342 = vmatmul.mubr.msk.bf16.vlgmr.msra.gmra.mxu0 %vm2802_vm10, %v10040_v5  ;;  %v7979_v32 = vunpack.i.h.bf16 %v7977_v22  ;;  %v7978_v34 = vunpack.i.l.bf16 %v7977_v22  ;;  %v2579_v20 = vld [vmem:[#allocation2 + $0xb0] sm:$0xff] }
 0x1e3   : > { %2542 = vst [vmem:[#allocation2 + $0x1a0] sm:$0x7] %v2502_v28  ;;  %2540 = vst [vmem:[#allocation2 + $0xc0] sm:$0x7] %v2464_v49  ;;  %v459_v27 = vsel %vm455_vm9, %v7963_v30, %v7964_v7  ;;  %v460_v14 = vsel %vm455_vm9, %v7929_v9, %v7963_v30  ;;  %3736 = vmatprep.mubr.bf16.mxu0 %v8065_v42  ;;  %v7974_v50 = vunpack.i.h.bf16 %v7972_v52  ;;  %v7973_v21 = vunpack.i.l.bf16 %v7972_v52 }
 0x1e4   : > { %2541 = vst [vmem:[#allocation2 + $0x110] sm:$0x7] %v2463_v46  ;;  %531 = vst [vmem:[#allocation2 + $0x320] sm:$0x7] %v460_v14  ;;  %v898_v17 = vsel %vm897_vm5, %v7979_v32, %v10672_v41  ;;  %v899_v35 = vsel %vm897_vm5, %v7978_v34, %v7979_v32  ;;  %v900_v23 = vsel %vm897_vm5, %v7939_v8, %v7978_v34  ;;  %v10675_v26 = vunpack.i.l.bf16 %v8518_v1  ;;  %v3901_v34 = vld [vmem:[#allocation5 + $0xf8] sm:$0xff] }
 0x1e5   : > { %532 = vst [vmem:[#allocation2 + $0x188] sm:$0x7] %v459_v27  ;;  %v1015_v9 = vrot.slane %v900_v23, 2  ;;  %v1016_v24 = vrot.slane %v899_v35, 2  ;;  %v1017_v12 = vrot.slane %v898_v17, 2  ;;  %v617_v33 = vsel %vm616_vm6, %v7974_v50, %v10673_v45  ;;  %v448_v3 = vpop.permute.xlu1 %447  ;;  %v2620_v29 = vld [vmem:[#allocation2 + $0x50] sm:$0xff] }
 0x1e6   : > { %v1213_v57 = vpop.permute.xlu0 %1212  ;;  %v736_v56 = vrot.slane %v617_v33, 5  ;;  %v618_v62 = vsel %vm616_vm6, %v7973_v21, %v7974_v50  ;;  %v619_v16 = vsel %vm616_vm6, %v7934_v19, %v7973_v21  ;;  %v458_v8 = vsel %vm455_vm9, %v7964_v7, %v448_v3  ;;  %v2661_v19 = vld [vmem:[#allocation2 + $0x4c8] sm:$0xff]  ;;  %v2621_v27 = vld [vmem:[#allocation2 + $0x1b0] sm:$0xff]  ;;  %v3883_v45 = vld [vmem:[#allocation5 + $0x68] sm:$0xff] }
 0x1e7   : > { %1095 = vst [vmem:[#allocation2 + $0x150] ss:$196 sps:$4 sm:$0xc1] %v1015_v9   ;;  %1096 = vst [vmem:[#allocation2 + $0x4e8] ss:$-1132 sps:$4 sm:$0xc1] %v1016_v24   ;;  %v1221_v39 = vsel %vm1218_vm8, %v7944_v2, %v1213_v57  ;;  %v2781_v10 = vpack.c.bf16 %v2701_v15, %v2661_v19  ;;  %v2739_v7 = vpack.c.bf16 %v2619_v25, %v2579_v20  ;;  %v10420_v20 = vpop.f32.mrf.mxu1 }
 0x1e8   : > { %1097 = vst [vmem:[#allocation2 + $0x190] ss:$-364 sps:$4 sm:$0xc1] %v1017_v12   ;;  %v734_v13 = vrot.slane %v619_v16, 5  ;;  %v735_v38 = vrot.slane %v618_v62, 5  ;;  %v1336_v59 = vrot.slane %v1221_v39, 7 }
 0x1e9   : > { %533 = vst [vmem:[#allocation2 + $0x210] sm:$0x7] %v458_v8  ;;  %816 = vst [vmem:[#allocation2 + $0x20] sm:$0x38] %v736_v56  ;;  %v2664_v61 = vld [vmem:[#allocation2 + $0x208] sm:$0xff]  ;;  %v450_v53 = vpop.permute.xlu1 %449  ;;  %v2662_v63 = vld [vmem:[#allocation2 + $0x120] sm:$0xff]  ;;  %v2919_v28 = vand.u32 %v8491_v4, %v2781_v10 }
 0x1ea   : > { %v2704_v6 = vld [vmem:[#allocation2 + $0x1a0] sm:$0x7]  ;;  %814 = vst [vmem:[#allocation2 + $0x210] sm:$0x38] %v734_v13  ;;  %815 = vst [vmem:[#allocation2 + $0x78] sm:$0x38] %v735_v38  ;;  %v1215_v43 = vpop.permute.xlu0 %1214  ;;  %v456_v2 = vsel %vm455_vm9, %v450_v53, %v10674_v31  ;;  %v457_v55 = vsel %vm455_vm9, %v448_v3, %v450_v53 }
 0x1eb   : > { %v2702_v11 = vld [vmem:[#allocation2 + $0xc0] sm:$0x7]  ;;  %v2784_v0 = vpack.c.bf16 %v2704_v6, %v2664_v61  ;;  %v2703_v51 = vld [vmem:[#allocation2 + $0x110] sm:$0x7]  ;;  %1416 = vst [vmem:[#allocation2 + $0x150] sm:$0xe] %v1336_v59  ;;  %v1219_v47 = vsel %vm1218_vm8, %v1215_v43, %v10675_v26  ;;  %v1220_v54 = vsel %vm1218_vm8, %v1213_v57, %v1215_v43 }
 0x1ec   : > { %v2580_v44 = vld [vmem:[#allocation2 + $0x320] sm:$0xff]  ;;  %534 = vst [vmem:[#allocation2 + $0x78] sm:$0x7] %v457_v55  ;;  %535 = vst [vmem:[#allocation2 + $0x20] sm:$0x7] %v456_v2  ;;  %v1337_v37 = vrot.slane %v1220_v54, 7  ;;  %v2782_v58 = vpack.c.bf16 %v2702_v11, %v2662_v63  ;;  %v2964_v11 = vpop.f32.mrf.mxu0 }
 0x1ed   : > { %v1338_v36 = vrot.slane %v1219_v47, 7  ;;  %v2740_v48 = vpack.c.bf16 %v2620_v29, %v2580_v44  ;;  %v2663_v40 = vld [vmem:[#allocation2 + $0x1d0] sm:$0xff]  ;;  %v2928_v1 = vand.u32 %v8491_v4, %v2784_v0  ;;  %v2581_v46 = vld [vmem:[#allocation2 + $0x188] sm:$0xff]  ;;  %v3900_v9 = vld [vmem:[#allocation5 + $0xf0] sm:$0xff] }
 0x1ee   : > { %v2783_v18 = vpack.c.bf16 %v2703_v51, %v2663_v40  ;;  %1417 = vst [vmem:[#allocation2 + $0x4e8] sm:$0xe] %v1337_v37  ;;  %v2922_v60 = vand.u32 %v8491_v4, %v2782_v58  ;;  %v2741_v14 = vpack.c.bf16 %v2621_v27, %v2581_v46  ;;  %v3885_v35 = vld [vmem:[#allocation5 + $0x78] sm:$0xff]  ;;  %v3899_v24 = vld [vmem:[#allocation5 + $0xe8] sm:$0xff]  ;;  %v3932_v33 = vld [vmem:[#allocation5 + $0x1f0] sm:$0xff]  ;;  %v2966_v54 = vpop.f32.mrf.mxu0  ;;  %v3009_v27 = vpop.f32.mrf.mxu1 }
 0x1ef   : > { %1418 = vst [vmem:[#allocation2 + $0x190] sm:$0xe] %v1338_v36  ;;  %3675 = vmatprep.subr.bf16.mxu1 %v2740_v48  ;;  %v3933_v23 = vld [vmem:[#allocation5 + $0x1f8] sm:$0xff]  ;;  %v3898_v3 = vld [vmem:[#allocation5 + $0xe0] sm:$0xff]  ;;  %v3916_v57 = vld [vmem:[#allocation5 + $0x170] sm:$0xff] }
 0x1f0   : > { %3676 = vmatpush1.bf16.msra.mxu1 %v2739_v7  ;;  %3716 = vmatprep.subr.bf16.mxu0 %v2922_v60  ;;  %v2925_v30 = vand.u32 %v8491_v4, %v2783_v18  ;;  %v3917_v12 = vld [vmem:[#allocation5 + $0x178] sm:$0xff]  ;;  %v3882_v56 = vld [vmem:[#allocation5 + $0x60] sm:$0xff]  ;;  %v3931_v62 = vld [vmem:[#allocation5 + $0x1e8] sm:$0xff]  ;;  %v10422_v7 = vpop.f32.mrf.mxu0 }
 0x1f1   : > { %3759 = vmatprep.subr.bf16.mxu1 %v2928_v1  ;;  %3717 = vmatpush1.bf16.msra.mxu0 %v2919_v28  ;;  %v2582_v49 = vld [vmem:[#allocation2 + $0x210] sm:$0xff]  ;;  %v3897_v16 = vld [vmem:[#allocation5 + $0xd8] sm:$0xff]  ;;  %v3915_v8 = vld [vmem:[#allocation5 + $0x168] sm:$0xff] }
 0x1f2   : > { %v2622_v22 = vld [vmem:[#allocation2 + $0x150] sm:$0xff]  ;;  %v3881_v15 = vld [vmem:[#allocation5 + $0x58] sm:$0xff]  ;;  %v3896_v38 = vld [vmem:[#allocation5 + $0xd0] sm:$0xff] }
 0x1f3   : > { %6343 = vmatmul.mubr.msk.bf16.vlgmr.msra.gmra.mxu1 %vm2802_vm10, %v10040_v5  ;;  %v2742_v52 = vpack.c.bf16 %v2622_v22, %v2582_v49  ;;  %v2584_v32 = vld [vmem:[#allocation2 + $0x20] sm:$0xff]  ;;  %v2583_v21 = vld [vmem:[#allocation2 + $0x78] sm:$0xff]  ;;  %v3930_v13 = vld [vmem:[#allocation5 + $0x1e0] sm:$0xff] }
 0x1f4   : > { %3760 = vmatpush1.bf16.msra.mxu1 %v2925_v30  ;;  %3779 = vmatprep.mubr.bf16.mxu1 %v8065_v42  ;;  %v3884_v42 = vld [vmem:[#allocation5 + $0x70] sm:$0xff]  ;;  %v3914_v39 = vld [vmem:[#allocation5 + $0x160] sm:$0xff]  ;;  %v3929_v59 = vld [vmem:[#allocation5 + $0x1d8] sm:$0xff] }
 0x1f5   : > { %3718 = vmatprep.subr.bf16.mxu0 %v2742_v52  ;;  %v2623_v41 = vld [vmem:[#allocation2 + $0x4e8] sm:$0xff]  ;;  %v3895_v61 = vld [vmem:[#allocation5 + $0xc8] sm:$0xff]  ;;  %v3928_v53 = vld [vmem:[#allocation5 + $0x1d0] sm:$0xff] }
 0x1f6   : > { %v2624_v50 = vld [vmem:[#allocation2 + $0x190] sm:$0xff]  ;;  %3719 = vmatpush1.bf16.msra.mxu0 %v2741_v14  ;;  %v2743_v17 = vpack.c.bf16 %v2623_v41, %v2583_v21  ;;  %v3913_v6 = vld [vmem:[#allocation5 + $0x158] sm:$0xff]  ;;  %v3879_v19 = vld [vmem:[#allocation5 + $0x48] sm:$0xff]  ;;  %v10426_v22 = vpop.permute.xlu1 %2794 }
 0x1f7   : > { %v2744_v4 = vpack.c.bf16 %v2624_v50, %v2584_v32  ;;  %6355 = vmatprep.subr.mxu0 %v3901_v34  ;;  %v3894_v43 = vld [vmem:[#allocation5 + $0xc0] sm:$0xff]  ;;  %v3912_v25 = vld [vmem:[#allocation5 + $0x150] sm:$0xff]  ;;  %v3927_v10 = vld [vmem:[#allocation5 + $0x1c8] sm:$0xff]  ;;  %v10424_v60 = vpop.permute.xlu0 %2789  ;;  %v2970_v34 = vpop.f32.mrf.mxu0 }
 0x1f8   : > { %v3878_v0 = vld [vmem:[#allocation5 + $0x40] sm:$0xff]  ;;  %v3893_v51 = vld [vmem:[#allocation5 + $0xb8] sm:$0xff]  ;;  %v3911_v31 = vld [vmem:[#allocation5 + $0x148] sm:$0xff]  ;;  %v2967_v52 = vadd.f32 %v2966_v54, %v10424_v60  ;;  %v2965_v41 = vadd.f32 %v2964_v11, %v10424_v60 }
 0x1f9   : > { %3761 = vmatprep.subr.bf16.mxu1 %v2744_v4  ;;  %6344 = vmatmul.mubr.msk.bf16.vlgmr.msra.gmra.mxu0 %vm2802_vm10, %v10040_v5  ;;  %v3877_v2 = vld [vmem:[#allocation5 + $0x38] sm:$0xff]  ;;  %v3926_v55 = vld [vmem:[#allocation5 + $0x1c0] sm:$0xff]  ;;  %v3892_v26 = vld [vmem:[#allocation5 + $0xb0] sm:$0xff] }
 0x1fa   : > { %3762 = vmatpush1.bf16.msra.mxu1 %v2743_v17  ;;  %6356 = vmatpush3.msra.mxu0 %v3885_v35  ;;  %v3910_v47 = vld [vmem:[#allocation5 + $0x140] sm:$0xff]  ;;  %v3876_v44 = vld [vmem:[#allocation5 + $0x30] sm:$0xff]  ;;  %v3925_v29 = vld [vmem:[#allocation5 + $0x1b8] sm:$0xff]  ;;  %v2971_v35 = vadd.f32 %v2970_v34, %v10426_v22 }
 0x1fb   : > { %6393 = vmatprep.subr.mxu1 %v3933_v23  ;;  %6357 = vmatprep.subr.mxu0 %v3900_v9  ;;  %v3891_v63 = vld [vmem:[#allocation5 + $0xa8] sm:$0xff]  ;;  %v3909_v37 = vld [vmem:[#allocation5 + $0x138] sm:$0xff]  ;;  %v3924_v48 = vld [vmem:[#allocation5 + $0x1b0] sm:$0xff] }
 0x1fc   : > { %6358 = vmatpush3.msra.mxu0 %v3884_v42  ;;  %v3875_v36 = vld [vmem:[#allocation5 + $0x28] sm:$0xff]  ;;  %v3890_v58 = vld [vmem:[#allocation5 + $0xa0] sm:$0xff]  ;;  %v3908_v40 = vld [vmem:[#allocation5 + $0x130] sm:$0xff]  ;;  %v3791_v42 = vmax.f32 %v2967_v52, 0.0 }
 0x1fd   : > { %6345 = vmatmul.mubr.msk.bf16.vlgmr.msra.gmra.mxu1 %vm2802_vm10, %v10040_v5  ;;  %6359 = vmatprep.subr.mxu0 %v3899_v24  ;;  %v3880_v5 = vld [vmem:[#allocation5 + $0x50] sm:$0xff]  ;;  %v3874_v1 = vld [vmem:[#allocation5 + $0x20] sm:$0xff]  ;;  %v3923_v18 = vld [vmem:[#allocation5 + $0x1a8] sm:$0xff]  ;;  %v3011_v24 = vpop.f32.mrf.mxu1 }
 0x1fe   : > { %6394 = vmatpush3.msra.mxu1 %v3917_v12  ;;  %6360 = vmatpush3.msra.mxu0 %v3883_v45  ;;  %v3889_v28 = vld [vmem:[#allocation5 + $0x98] sm:$0xff]  ;;  %v3907_v30 = vld [vmem:[#allocation5 + $0x128] sm:$0xff]  ;;  %v3922_v49 = vld [vmem:[#allocation5 + $0x1a0] sm:$0xff]  ;;  %v3010_v45 = vadd.f32 %v3009_v27, %v10424_v60 }
 0x1ff   : > { %6395 = vmatprep.subr.mxu1 %v3932_v33  ;;  %6361 = vmatprep.subr.mxu0 %v3898_v3  ;;  %v3873_v46 = vld [vmem:[#allocation5 + $0x18] sm:$0xff]  ;;  %v3888_v14 = vld [vmem:[#allocation5 + $0x90] sm:$0xff]  ;;  %v3906_v32 = vld [vmem:[#allocation5 + $0x120] sm:$0xff] }
 0x200   : > { %6396 = vmatpush3.msra.mxu1 %v3916_v57  ;;  %6362 = vmatpush3.msra.mxu0 %v3882_v56  ;;  %v3872_v50 = vld [vmem:[#allocation5 + $0x10] sm:$0xff]  ;;  %v3921_v21 = vld [vmem:[#allocation5 + $0x198] sm:$0xff]  ;;  %v3887_v4 = vld [vmem:[#allocation5 + $0x88] sm:$0xff]  ;;  %v3790_v57 = vmax.f32 %v2965_v41, 0.0  ;;  %v10432_v56 = vpop.f32.mrf.mxu0 }
 0x201   : > { %6397 = vmatprep.subr.mxu1 %v3931_v62  ;;  %6363 = vmatprep.subr.mxu0 %v3897_v16  ;;  %v3905_v17 = vld [vmem:[#allocation5 + $0x118] sm:$0xff]  ;;  %v3871_v23 = vld [vmem:[#allocation5 + $0x8] sm:$0xff]  ;;  %v3920_v9 = vld [vmem:[#allocation5 + $0x190] sm:$0xff]  ;;  %v3831_v16 = vmax.f32 %v2971_v35, 0.0 }
 0x202   : > { %6398 = vmatpush3.msra.mxu1 %v3915_v8  ;;  %6364 = vmatpush3.msra.mxu0 %v3881_v15  ;;  %v3886_v12 = vld [vmem:[#allocation5 + $0x80] sm:$0xff]  ;;  %v3904_v3 = vld [vmem:[#allocation5 + $0x110] sm:$0xff]  ;;  %v3919_v62 = vld [vmem:[#allocation5 + $0x188] sm:$0xff]  ;;  %v3013_v15 = vpop.f32.mrf.mxu1 }
 0x203   : > { %6399 = vmatprep.subr.mxu1 %v3930_v13  ;;  %6365 = vmatprep.subr.mxu0 %v3896_v38  ;;  %v3870_v33 = vld [vmem:[#allocation5] sm:$0xff]  ;;  %v3965_v8 = vld [vmem:[#allocation5 + $0x2f8] sm:$0xff]  ;;  %v3903_v13 = vld [vmem:[#allocation5 + $0x108] sm:$0xff] }
 0x204   : > { %6400 = vmatpush3.msra.mxu1 %v3914_v39  ;;  %6366 = vmatpush3.msra.mxu0 %v3880_v5  ;;  %v3949_v38 = vld [vmem:[#allocation5 + $0x278] sm:$0xff]  ;;  %v3793_v39 = vmax.f32 %v3010_v45, 0.0  ;;  %v3008_v5 = vadd.f32 %v10420_v20, %v10424_v60  ;;  %v3978_v52 = vld [vmem:[#allocation5 + $0x360] sm:$0xff]  ;;  %v3959_v27 = vld [vmem:[#allocation5 + $0x2c8] sm:$0xff] }
 0x205   : > { %6401 = vmatprep.subr.mxu1 %v3929_v59  ;;  %6367 = vmatprep.subr.mxu0 %v3895_v61  ;;  %v3918_v59 = vld [vmem:[#allocation5 + $0x180] sm:$0xff]  ;;  %v2969_v61 = vadd.f32 %v10422_v7, %v10426_v22  ;;  %v3981_v54 = vld [vmem:[#allocation5 + $0x378] sm:$0xff]  ;;  %v3991_v35 = vld [vmem:[#allocation5 + $0x3c8] sm:$0xff] }
 0x206   : > { %6402 = vmatpush3.msra.mxu1 %v3913_v6  ;;  %6368 = vmatpush3.msra.mxu0 %v3879_v19  ;;  %v3052_v6 = vpop.f32.mrf.mxu0  ;;  %v3964_v19 = vld [vmem:[#allocation5 + $0x2f0] sm:$0xff]  ;;  %v3961_v20 = vld [vmem:[#allocation5 + $0x2d8] sm:$0xff]  ;;  %v3942_v41 = vld [vmem:[#allocation5 + $0x240] sm:$0xff] }
 0x207   : > { %6403 = vmatprep.subr.mxu1 %v3928_v53  ;;  %6369 = vmatprep.subr.mxu0 %v3894_v43  ;;  %v3902_v53 = vld [vmem:[#allocation5 + $0x100] sm:$0xff]  ;;  %v3014_v43 = vadd.f32 %v3013_v15, %v10426_v22  ;;  %v3053_v11 = vadd.f32 %v3052_v6, %v10424_v60  ;;  %v3977_v34 = vld [vmem:[#allocation5 + $0x358] sm:$0xff]  ;;  %v3952_v6 = vld [vmem:[#allocation5 + $0x290] sm:$0xff] }
 0x208   : > { %6404 = vmatpush3.msra.mxu1 %v3912_v25  ;;  %6370 = vmatpush3.msra.mxu0 %v3878_v0  ;;  %v3948_v25 = vld [vmem:[#allocation5 + $0x270] sm:$0xff]  ;;  %v10440_v0 = vpop.f32.mrf.mxu1  ;;  %v3974_v45 = vld [vmem:[#allocation5 + $0x340] sm:$0xff] }
 0x209   : > { %6405 = vmatprep.subr.mxu1 %v3927_v10  ;;  %6371 = vmatprep.subr.mxu0 %v3893_v51  ;;  %v3792_v10 = vmax.f32 %v3008_v5, 0.0  ;;  %v3963_v51 = vld [vmem:[#allocation5 + $0x2e8] sm:$0xff]  ;;  %v3938_v15 = vld [vmem:[#allocation5 + $0x220] sm:$0xff] }
 0x20a   : > { %6406 = vmatpush3.msra.mxu1 %v3911_v31  ;;  %6372 = vmatpush3.msra.mxu0 %v3877_v2  ;;  %v3830_v31 = vmax.f32 %v2969_v61, 0.0  ;;  %v3997_v2 = vld [vmem:[#allocation5 + $0x3f8] sm:$0xff]  ;;  %v3987_v5 = vld [vmem:[#allocation5 + $0x3a8] sm:$0xff] }
 0x20b   : > { %6407 = vmatprep.subr.mxu1 %v3926_v55  ;;  %6373 = vmatprep.subr.mxu0 %v3892_v26  ;;  %v3833_v55 = vmax.f32 %v3014_v43, 0.0  ;;  %v3947_v26 = vld [vmem:[#allocation5 + $0x268] sm:$0xff] }
 0x20c   : > { %6408 = vmatpush3.msra.mxu1 %v3910_v47  ;;  %6374 = vmatpush3.msra.mxu0 %v3876_v44  ;;  %v3795_v47 = vmax.f32 %v3053_v11, 0.0  ;;  %v3962_v44 = vld [vmem:[#allocation5 + $0x2e0] sm:$0xff]  ;;  %v3971_v61 = vld [vmem:[#allocation5 + $0x328] sm:$0xff] }
 0x20d   : > { %6409 = vmatprep.subr.mxu1 %v3925_v29  ;;  %6375 = vmatprep.subr.mxu0 %v3891_v63  ;;  %v3012_v29 = vadd.f32 %v3011_v24, %v10426_v22  ;;  %v3095_v63 = vpop.f32.mrf.mxu1  ;;  %v3990_v24 = vld [vmem:[#allocation5 + $0x3c0] sm:$0xff]  ;;  %v3951_v11 = vld [vmem:[#allocation5 + $0x288] sm:$0xff] }
 0x20e   : > { %6410 = vmatpush3.msra.mxu1 %v3909_v37  ;;  %6376 = vmatpush3.msra.mxu0 %v3875_v36  ;;  %v3996_v37 = vld [vmem:[#allocation5 + $0x3f0] sm:$0xff]  ;;  %v3946_v36 = vld [vmem:[#allocation5 + $0x260] sm:$0xff] }
 0x20f   : > { %6411 = vmatprep.subr.mxu1 %v3924_v48  ;;  %6377 = vmatprep.subr.mxu0 %v3890_v58  ;;  %v3980_v48 = vld [vmem:[#allocation5 + $0x370] sm:$0xff]  ;;  %v3096_v58 = vadd.f32 %v3095_v63, %v10424_v60  ;;  %v3832_v7 = vmax.f32 %v3012_v29, 0.0 }
 0x210   : > { %6412 = vmatpush3.msra.mxu1 %v3908_v40  ;;  %6378 = vmatpush3.msra.mxu0 %v3874_v1  ;;  %v3995_v40 = vld [vmem:[#allocation5 + $0x3e8] sm:$0xff]  ;;  %v3945_v1 = vld [vmem:[#allocation5 + $0x258] sm:$0xff]  ;;  %v3968_v63 = vld [vmem:[#allocation5 + $0x310] sm:$0xff] }
 0x211   : > { %6413 = vmatprep.subr.mxu1 %v3923_v18  ;;  %6379 = vmatprep.subr.mxu0 %v3889_v28  ;;  %v3979_v18 = vld [vmem:[#allocation5 + $0x368] sm:$0xff]  ;;  %v3960_v28 = vld [vmem:[#allocation5 + $0x2d0] sm:$0xff] }
 0x212   : > { %6414 = vmatpush3.msra.mxu1 %v3907_v30  ;;  %6380 = vmatpush3.msra.mxu0 %v3873_v46  ;;  %v3797_v30 = vmax.f32 %v3096_v58, 0.0  ;;  %v3994_v46 = vld [vmem:[#allocation5 + $0x3e0] sm:$0xff]  ;;  %v3094_v58 = vadd.f32 %v10440_v0, %v10424_v60 }
 0x213   : > { %6415 = vmatprep.subr.mxu1 %v3922_v49  ;;  %6381 = vmatprep.subr.mxu0 %v3888_v14  ;;  %v3944_v49 = vld [vmem:[#allocation5 + $0x250] sm:$0xff]  ;;  %v3993_v14 = vld [vmem:[#allocation5 + $0x3d8] sm:$0xff] }
 0x214   : > { %6416 = vmatpush3.msra.mxu1 %v3906_v32  ;;  %6382 = vmatpush3.msra.mxu0 %v3872_v50  ;;  %v3943_v32 = vld [vmem:[#allocation5 + $0x248] sm:$0xff]  ;;  %v3958_v50 = vld [vmem:[#allocation5 + $0x2c0] sm:$0xff] }
 0x215   : > { %6417 = vmatprep.subr.mxu1 %v3921_v21  ;;  %6383 = vmatprep.subr.mxu0 %v3887_v4  ;;  %v3992_v21 = vld [vmem:[#allocation5 + $0x3d0] sm:$0xff] }
 0x216   : > { %6418 = vmatpush3.msra.mxu1 %v3905_v17  ;;  %6384 = vmatpush3.msra.mxu0 %v3871_v23  ;;  %v3976_v4 = vld [vmem:[#allocation5 + $0x350] sm:$0xff]  ;;  %v3957_v17 = vld [vmem:[#allocation5 + $0x2b8] sm:$0xff] }
 0x217   : > { %6419 = vmatprep.subr.mxu1 %v3920_v9  ;;  %6385 = vmatprep.subr.mxu0 %v3886_v12  ;;  %v3941_v23 = vld [vmem:[#allocation5 + $0x238] sm:$0xff]  ;;  %v3975_v9 = vld [vmem:[#allocation5 + $0x348] sm:$0xff]  ;;  %v3940_v12 = vld [vmem:[#allocation5 + $0x230] sm:$0xff] }
 0x218   : > { %4574 = vmatprep.mubr.f32.mxu0 %v3791_v42  ;;  %6386 = vmatpush3.msra.mxu0 %v3870_v33  ;;  %v3956_v42 = vld [vmem:[#allocation5 + $0x2b0] sm:$0xff]  ;;  %v3955_v33 = vld [vmem:[#allocation5 + $0x2a8] sm:$0xff] }
 0x219   : > { %6420 = vmatpush3.msra.mxu1 %v3904_v3  ;;  %4575 = vmatmul.mubr.f32.vlgmr.msra.gmra.mxu0 %v3790_v57  ;;  %v3989_v3 = vld [vmem:[#allocation5 + $0x3b8] sm:$0xff]  ;;  %v3939_v57 = vld [vmem:[#allocation5 + $0x228] sm:$0xff] }
 0x21a   : > { %6421 = vmatprep.subr.mxu1 %v3919_v62  ;;  %6431 = vmatprep.subr.mxu0 %v3965_v8  ;;  %v3973_v62 = vld [vmem:[#allocation5 + $0x338] sm:$0xff]  ;;  %v3988_v8 = vld [vmem:[#allocation5 + $0x3b0] sm:$0xff] }
 0x21b   : > { %4579 = vmatprep.mubr.f32.mxu0 %v3831_v16  ;;  %6422 = vmatpush3.msra.mxu1 %v3903_v13  ;;  %v3954_v16 = vld [vmem:[#allocation5 + $0x2a0] sm:$0xff]  ;;  %v3054_v13 = vpop.f32.mrf.mxu0 }
 0x21c   : > { %6432 = vmatpush3.msra.mxu0 %v3949_v38  ;;  %6423 = vmatprep.subr.mxu1 %v3918_v59  ;;  %v3972_v38 = vld [vmem:[#allocation5 + $0x330] sm:$0xff]  ;;  %v3937_v59 = vld [vmem:[#allocation5 + $0x218] sm:$0xff] }
 0x21d   : > { %4649 = vmatprep.mubr.f32.mxu1 %v3793_v39  ;;  %6433 = vmatprep.subr.mxu0 %v3964_v19  ;;  %v3953_v39 = vld [vmem:[#allocation5 + $0x298] sm:$0xff]  ;;  %v3986_v19 = vld [vmem:[#allocation5 + $0x3a0] sm:$0xff]  ;;  %v3056_v43 = vpop.f32.mrf.mxu0 }
 0x21e   : > { %6424 = vmatpush3.msra.mxu1 %v3902_v53  ;;  %6434 = vmatpush3.msra.mxu0 %v3948_v25  ;;  %v3936_v53 = vld [vmem:[#allocation5 + $0x210] sm:$0xff]  ;;  %v3970_v25 = vld [vmem:[#allocation5 + $0x320] sm:$0xff] }
 0x21f   : > { %4650 = vmatmul.mubr.f32.vlgmr.msra.gmra.mxu1 %v3792_v10  ;;  %4580 = vmatmul.mubr.f32.gmra.mxu0 %v3830_v31  ;;  %v3985_v10 = vld [vmem:[#allocation5 + $0x398] sm:$0xff]  ;;  %v3051_v31 = vadd.f32 %v10432_v56, %v10424_v60  ;;  %v10447_v29 = vpop.f32.mrf.mxu0  ;;  %v3983_v56 = vld [vmem:[#allocation5 + $0x388] sm:$0xff] }
 0x220   : > { %6435 = vmatprep.subr.mxu0 %v3963_v51  ;;  %6469 = vmatprep.subr.mxu1 %v3997_v2  ;;  %v3935_v51 = vld [vmem:[#allocation5 + $0x208] sm:$0xff]  ;;  %v3097_v2 = vpop.f32.mrf.mxu1 }
 0x221   : > { %4654 = vmatprep.mubr.f32.mxu1 %v3833_v55  ;;  %6436 = vmatpush3.msra.mxu0 %v3947_v26  ;;  %v3969_v55 = vld [vmem:[#allocation5 + $0x318] sm:$0xff]  ;;  %v3950_v26 = vld [vmem:[#allocation5 + $0x280] sm:$0xff] }
 0x222   : > { %4724 = vmatprep.mubr.f32.mxu0 %v3795_v47  ;;  %6470 = vmatpush3.msra.mxu1 %v3981_v54  ;;  %v3984_v47 = vld [vmem:[#allocation5 + $0x390] sm:$0xff]  ;;  %v3934_v54 = vld [vmem:[#allocation5 + $0x200] sm:$0xff] }
 0x223   : > { %6437 = vmatprep.subr.mxu0 %v3962_v44  ;;  %6471 = vmatprep.subr.mxu1 %v3996_v37  ;;  %v3057_v44 = vadd.f32 %v3056_v43, %v10426_v22  ;;  %v3794_v37 = vmax.f32 %v3051_v31, 0.0  ;;  %v4006_v43 = vld [vmem:[#allocation5 + $0x440] sm:$0xff]  ;;  %v4039_v31 = vld [vmem:[#allocation5 + $0x548] sm:$0xff] }
 0x224   : > { %6438 = vmatpush3.msra.mxu0 %v3946_v36  ;;  %6472 = vmatpush3.msra.mxu1 %v3980_v48  ;;  %v4029_v36 = vld [vmem:[#allocation5 + $0x4f8] sm:$0xff]  ;;  %v3099_v48 = vpop.f32.mrf.mxu1 }
 0x225   : > { %6439 = vmatprep.subr.mxu0 %v3961_v20  ;;  %4655 = vmatmul.mubr.f32.gmra.mxu1 %v3832_v7  ;;  %v3967_v20 = vld [vmem:[#allocation5 + $0x308] sm:$0xff]  ;;  %v4013_v7 = vld [vmem:[#allocation5 + $0x478] sm:$0xff] }
 0x226   : > { %6473 = vmatprep.subr.mxu1 %v3995_v40  ;;  %6440 = vmatpush3.msra.mxu0 %v3945_v1  ;;  %v3835_v40 = vmax.f32 %v3057_v44, 0.0  ;;  %v3982_v1 = vld [vmem:[#allocation5 + $0x380] sm:$0xff]  ;;  %v10454_v0 = vpop.f32.mrf.mxu1  ;;  %v4053_v44 = vld [vmem:[#allocation5 + $0x5b8] sm:$0xff] }
 0x227   : > { %6474 = vmatpush3.msra.mxu1 %v3979_v18  ;;  %4799 = vmatprep.mubr.f32.mxu1 %v3797_v30  ;;  %v3055_v18 = vadd.f32 %v3054_v13, %v10426_v22  ;;  %v4028_v30 = vld [vmem:[#allocation5 + $0x4f0] sm:$0xff]  ;;  %v4058_v13 = vld [vmem:[#allocation5 + $0x5e0] sm:$0xff] }
 0x228   : > { %6441 = vmatprep.subr.mxu0 %v3960_v28  ;;  %6475 = vmatprep.subr.mxu1 %v3994_v46  ;;  %v3138_v28 = vpop.f32.mrf.mxu0  ;;  %v3966_v46 = vld [vmem:[#allocation5 + $0x300] sm:$0xff] }
 0x229   : > { %6442 = vmatpush3.msra.mxu0 %v3944_v49  ;;  %6476 = vmatpush3.msra.mxu1 %v3978_v52  ;;  %v3100_v49 = vadd.f32 %v3099_v48, %v10426_v22  ;;  %v3139_v52 = vadd.f32 %v3138_v28, %v10424_v60  ;;  %v4052_v48 = vld [vmem:[#allocation5 + $0x5b0] sm:$0xff]  ;;  %v4035_v28 = vld [vmem:[#allocation5 + $0x528] sm:$0xff] }
 0x22a   : > { %6443 = vmatprep.subr.mxu0 %v3959_v27  ;;  %6477 = vmatprep.subr.mxu1 %v3993_v14  ;;  %v4012_v27 = vld [vmem:[#allocation5 + $0x470] sm:$0xff]  ;;  %v3796_v14 = vmax.f32 %v3094_v58, 0.0 }
 0x22b   : > { %6444 = vmatpush3.msra.mxu0 %v3943_v32  ;;  %6478 = vmatpush3.msra.mxu1 %v3977_v34  ;;  %v4027_v32 = vld [vmem:[#allocation5 + $0x4e8] sm:$0xff]  ;;  %v3834_v34 = vmax.f32 %v3055_v18, 0.0  ;;  %v4036_v58 = vld [vmem:[#allocation5 + $0x530] sm:$0xff] }
 0x22c   : > { %6445 = vmatprep.subr.mxu0 %v3958_v50  ;;  %6479 = vmatprep.subr.mxu1 %v3992_v21  ;;  %v4061_v50 = vld [vmem:[#allocation5 + $0x5f8] sm:$0xff]  ;;  %v3837_v21 = vmax.f32 %v3100_v49, 0.0  ;;  %v4000_v49 = vld [vmem:[#allocation5 + $0x410] sm:$0xff] }
 0x22d   : > { %6446 = vmatpush3.msra.mxu0 %v3942_v41  ;;  %6480 = vmatpush3.msra.mxu1 %v3976_v4  ;;  %v4011_v41 = vld [vmem:[#allocation5 + $0x468] sm:$0xff]  ;;  %v3799_v4 = vmax.f32 %v3139_v52, 0.0 }
 0x22e   : > { %6447 = vmatprep.subr.mxu0 %v3957_v17  ;;  %6481 = vmatprep.subr.mxu1 %v3991_v35  ;;  %v4045_v17 = vld [vmem:[#allocation5 + $0x578] sm:$0xff]  ;;  %v4026_v35 = vld [vmem:[#allocation5 + $0x4e0] sm:$0xff] }
 0x22f   : > { %6448 = vmatpush3.msra.mxu0 %v3941_v23  ;;  %6482 = vmatpush3.msra.mxu1 %v3975_v9  ;;  %v3098_v23 = vadd.f32 %v3097_v2, %v10426_v22  ;;  %v3181_v9 = vpop.f32.mrf.mxu1  ;;  %v4020_v2 = vld [vmem:[#allocation5 + $0x4b0] sm:$0xff] }
 0x230   : > { %6449 = vmatprep.subr.mxu0 %v3956_v42  ;;  %6483 = vmatprep.subr.mxu1 %v3990_v24  ;;  %v4060_v42 = vld [vmem:[#allocation5 + $0x5f0] sm:$0xff]  ;;  %v4010_v24 = vld [vmem:[#allocation5 + $0x460] sm:$0xff] }
 0x231   : > { %6450 = vmatpush3.msra.mxu0 %v3940_v12  ;;  %6484 = vmatpush3.msra.mxu1 %v3974_v45  ;;  %v3182_v12 = vadd.f32 %v3181_v9, %v10424_v60  ;;  %v4044_v45 = vld [vmem:[#allocation5 + $0x570] sm:$0xff]  ;;  %v10460_v52 = vpop.f32.mrf.mxu1 }
 0x232   : > { %6451 = vmatprep.subr.mxu0 %v3955_v33  ;;  %6485 = vmatprep.subr.mxu1 %v3989_v3  ;;  %v4025_v33 = vld [vmem:[#allocation5 + $0x4d8] sm:$0xff]  ;;  %v4059_v3 = vld [vmem:[#allocation5 + $0x5e8] sm:$0xff] }
 0x233   : > { %6452 = vmatpush3.msra.mxu0 %v3939_v57  ;;  %6486 = vmatpush3.msra.mxu1 %v3973_v62  ;;  %v3836_v57 = vmax.f32 %v3098_v23, 0.0  ;;  %v4009_v62 = vld [vmem:[#allocation5 + $0x458] sm:$0xff]  ;;  %v3185_v9 = vpop.f32.mrf.mxu1 }
 0x234   : > { %6453 = vmatprep.subr.mxu0 %v3954_v16  ;;  %6487 = vmatprep.subr.mxu1 %v3988_v8  ;;  %v4043_v16 = vld [vmem:[#allocation5 + $0x568] sm:$0xff]  ;;  %v4024_v8 = vld [vmem:[#allocation5 + $0x4d0] sm:$0xff] }
 0x235   : > { %6454 = vmatpush3.msra.mxu0 %v3938_v15  ;;  %6488 = vmatpush3.msra.mxu1 %v3972_v38  ;;  %v3801_v15 = vmax.f32 %v3182_v12, 0.0  ;;  %v4008_v38 = vld [vmem:[#allocation5 + $0x450] sm:$0xff]  ;;  %v4093_v12 = vld [vmem:[#allocation5 + $0x6f8] sm:$0xff] }
 0x236   : > { %6455 = vmatprep.subr.mxu0 %v3953_v39  ;;  %6489 = vmatprep.subr.mxu1 %v3987_v5  ;;  %v4042_v39 = vld [vmem:[#allocation5 + $0x560] sm:$0xff]  ;;  %v4023_v5 = vld [vmem:[#allocation5 + $0x4c8] sm:$0xff] }
 0x237   : > { %6456 = vmatpush3.msra.mxu0 %v3937_v59  ;;  %6490 = vmatpush3.msra.mxu1 %v3971_v61  ;;  %v4057_v59 = vld [vmem:[#allocation5 + $0x5d8] sm:$0xff]  ;;  %v4007_v61 = vld [vmem:[#allocation5 + $0x448] sm:$0xff] }
 0x238   : > { %6457 = vmatprep.subr.mxu0 %v3952_v6  ;;  %6491 = vmatprep.subr.mxu1 %v3986_v19  ;;  %v4041_v6 = vld [vmem:[#allocation5 + $0x558] sm:$0xff]  ;;  %v4022_v19 = vld [vmem:[#allocation5 + $0x4c0] sm:$0xff] }
 0x239   : > { %6458 = vmatpush3.msra.mxu0 %v3936_v53  ;;  %6492 = vmatpush3.msra.mxu1 %v3970_v25  ;;  %v4056_v53 = vld [vmem:[#allocation5 + $0x5d0] sm:$0xff] }
 0x23a   : > { %6459 = vmatprep.subr.mxu0 %v3951_v11  ;;  %6493 = vmatprep.subr.mxu1 %v3985_v10  ;;  %v4040_v25 = vld [vmem:[#allocation5 + $0x550] sm:$0xff]  ;;  %v4021_v11 = vld [vmem:[#allocation5 + $0x4b8] sm:$0xff]  ;;  %v4055_v10 = vld [vmem:[#allocation5 + $0x5c8] sm:$0xff] }
 0x23b   : > { %6460 = vmatpush3.msra.mxu0 %v3935_v51  ;;  %6494 = vmatpush3.msra.mxu1 %v3969_v55  ;;  %v4005_v51 = vld [vmem:[#allocation5 + $0x438] sm:$0xff]  ;;  %v4054_v55 = vld [vmem:[#allocation5 + $0x5c0] sm:$0xff] }
 0x23c   : > { %6461 = vmatprep.subr.mxu0 %v3950_v26  ;;  %6495 = vmatprep.subr.mxu1 %v3984_v47  ;;  %v4004_v26 = vld [vmem:[#allocation5 + $0x430] sm:$0xff]  ;;  %v4038_v47 = vld [vmem:[#allocation5 + $0x540] sm:$0xff] }
 0x23d   : > { %6462 = vmatpush3.msra.mxu0 %v3934_v54  ;;  %6496 = vmatpush3.msra.mxu1 %v3968_v63  ;;  %v4019_v54 = vld [vmem:[#allocation5 + $0x4a8] sm:$0xff] }
 0x23e   : > { %4725 = vmatmul.mubr.f32.vlgmr.msra.gmra.mxu0 %v3794_v37  ;;  %6497 = vmatprep.subr.mxu1 %v3983_v56  ;;  %v4003_v63 = vld [vmem:[#allocation5 + $0x428] sm:$0xff]  ;;  %v10458_v37 = vpop.f32.mrf.mxu0  ;;  %v4037_v56 = vld [vmem:[#allocation5 + $0x538] sm:$0xff] }
 0x23f   : > { %6507 = vmatprep.subr.mxu0 %v4029_v36  ;;  %4729 = vmatprep.mubr.f32.mxu0 %v3835_v40  ;;  %v4018_v36 = vld [vmem:[#allocation5 + $0x4a0] sm:$0xff]  ;;  %v4017_v40 = vld [vmem:[#allocation5 + $0x498] sm:$0xff] }
 0x240   : > { %6498 = vmatpush3.msra.mxu1 %v3967_v20  ;;  %6508 = vmatpush3.msra.mxu0 %v4013_v7  ;;  %v4002_v20 = vld [vmem:[#allocation5 + $0x420] sm:$0xff]  ;;  %v4051_v7 = vld [vmem:[#allocation5 + $0x5a8] sm:$0xff]  ;;  %v3142_v18 = vpop.f32.mrf.mxu0 }
 0x241   : > { %6499 = vmatprep.subr.mxu1 %v3982_v1  ;;  %6509 = vmatprep.subr.mxu0 %v4028_v30  ;;  %v4001_v1 = vld [vmem:[#allocation5 + $0x418] sm:$0xff]  ;;  %v4016_v30 = vld [vmem:[#allocation5 + $0x490] sm:$0xff]  ;;  %v3143_v23 = vadd.f32 %v3142_v18, %v10426_v22  ;;  %v4071_v18 = vld [vmem:[#allocation5 + $0x648] sm:$0xff] }
 0x242   : > { %6500 = vmatpush3.msra.mxu1 %v3966_v46  ;;  %6510 = vmatpush3.msra.mxu0 %v4012_v27  ;;  %v4050_v46 = vld [vmem:[#allocation5 + $0x5a0] sm:$0xff] }
 0x243   : > { %4800 = vmatmul.mubr.f32.vlgmr.msra.gmra.mxu1 %v3796_v14  ;;  %4730 = vmatmul.mubr.f32.gmra.mxu0 %v3834_v34  ;;  %v4034_v27 = vld [vmem:[#allocation5 + $0x520] sm:$0xff]  ;;  %v4015_v14 = vld [vmem:[#allocation5 + $0x488] sm:$0xff]  ;;  %v4049_v34 = vld [vmem:[#allocation5 + $0x598] sm:$0xff] }
 0x244   : > { %6511 = vmatprep.subr.mxu0 %v4027_v32  ;;  %6545 = vmatprep.subr.mxu1 %v4061_v50  ;;  %v3137_v32 = vadd.f32 %v10447_v29, %v10424_v60  ;;  %v3999_v50 = vld [vmem:[#allocation5 + $0x408] sm:$0xff]  ;;  %v4032_v29 = vld [vmem:[#allocation5 + $0x510] sm:$0xff] }
 0x245   : > { %4804 = vmatprep.mubr.f32.mxu1 %v3837_v21  ;;  %6512 = vmatpush3.msra.mxu0 %v4011_v41  ;;  %v10464_v21 = vpop.f32.mrf.mxu0  ;;  %v4033_v41 = vld [vmem:[#allocation5 + $0x518] sm:$0xff] }
 0x246   : > { %4874 = vmatprep.mubr.f32.mxu0 %v3799_v4  ;;  %6546 = vmatpush3.msra.mxu1 %v4045_v17  ;;  %v4014_v4 = vld [vmem:[#allocation5 + $0x480] sm:$0xff]  ;;  %v4048_v17 = vld [vmem:[#allocation5 + $0x590] sm:$0xff] }
 0x247   : > { %6513 = vmatprep.subr.mxu0 %v4026_v35  ;;  %6547 = vmatprep.subr.mxu1 %v4060_v42  ;;  %v3998_v35 = vld [vmem:[#allocation5 + $0x400] sm:$0xff]  ;;  %v3798_v42 = vmax.f32 %v3137_v32, 0.0  ;;  %v4069_v32 = vld [vmem:[#allocation5 + $0x638] sm:$0xff] }
 0x248   : > { %6514 = vmatpush3.msra.mxu0 %v4010_v24  ;;  %6548 = vmatpush3.msra.mxu1 %v4044_v45  ;;  %v4047_v24 = vld [vmem:[#allocation5 + $0x588] sm:$0xff]  ;;  %v3180_v45 = vadd.f32 %v10454_v0, %v10424_v60  ;;  %v3186_v0 = vadd.f32 %v3185_v9, %v10426_v22 }
 0x249   : > { %6515 = vmatprep.subr.mxu0 %v4025_v33  ;;  %4805 = vmatmul.mubr.f32.gmra.mxu1 %v3836_v57  ;;  %v3224_v33 = vpop.f32.mrf.mxu0  ;;  %v3839_v57 = vmax.f32 %v3143_v23, 0.0  ;;  %v4117_v23 = vld [vmem:[#allocation5 + $0x7b8] sm:$0xff]  ;;  %v4067_v9 = vld [vmem:[#allocation5 + $0x628] sm:$0xff] }
 0x24a   : > { %6549 = vmatprep.subr.mxu1 %v4059_v3  ;;  %6516 = vmatpush3.msra.mxu0 %v4009_v62  ;;  %v4031_v3 = vld [vmem:[#allocation5 + $0x508] sm:$0xff]  ;;  %v4077_v62 = vld [vmem:[#allocation5 + $0x678] sm:$0xff] }
 0x24b   : > { %6550 = vmatpush3.msra.mxu1 %v4043_v16  ;;  %4949 = vmatprep.mubr.f32.mxu1 %v3801_v15  ;;  %v4046_v16 = vld [vmem:[#allocation5 + $0x580] sm:$0xff]  ;;  %v10471_v15 = vpop.f32.mrf.mxu1 }
 0x24c   : > { %6517 = vmatprep.subr.mxu0 %v4024_v8  ;;  %6551 = vmatprep.subr.mxu1 %v4058_v13  ;;  %v3141_v8 = vadd.f32 %v10458_v37, %v10426_v22  ;;  %v4092_v13 = vld [vmem:[#allocation5 + $0x6f0] sm:$0xff]  ;;  %v4073_v37 = vld [vmem:[#allocation5 + $0x658] sm:$0xff] }
 0x24d   : > { %6518 = vmatpush3.msra.mxu0 %v4008_v38  ;;  %6552 = vmatpush3.msra.mxu1 %v4042_v39  ;;  %v4030_v38 = vld [vmem:[#allocation5 + $0x500] sm:$0xff]  ;;  %v3225_v39 = vadd.f32 %v3224_v33, %v10424_v60  ;;  %v4100_v33 = vld [vmem:[#allocation5 + $0x730] sm:$0xff] }
 0x24e   : > { %6519 = vmatprep.subr.mxu0 %v4023_v5  ;;  %6553 = vmatprep.subr.mxu1 %v4057_v59  ;;  %v4076_v5 = vld [vmem:[#allocation5 + $0x670] sm:$0xff]  ;;  %v3800_v59 = vmax.f32 %v3180_v45, 0.0  ;;  %v4066_v45 = vld [vmem:[#allocation5 + $0x620] sm:$0xff] }
 0x24f   : > { %6520 = vmatpush3.msra.mxu0 %v4007_v61  ;;  %6554 = vmatpush3.msra.mxu1 %v4041_v6  ;;  %v4091_v61 = vld [vmem:[#allocation5 + $0x6e8] sm:$0xff]  ;;  %v3838_v6 = vmax.f32 %v3141_v8, 0.0 }
 0x250   : > { %6521 = vmatprep.subr.mxu0 %v4022_v19  ;;  %6555 = vmatprep.subr.mxu1 %v4056_v53  ;;  %v4125_v19 = vld [vmem:[#allocation5 + $0x7f8] sm:$0xff]  ;;  %v3267_v53 = vpop.f32.mrf.mxu1  ;;  %v4099_v8 = vld [vmem:[#allocation5 + $0x728] sm:$0xff] }
 0x251   : > { %6522 = vmatpush3.msra.mxu0 %v4006_v43  ;;  %6556 = vmatpush3.msra.mxu1 %v4040_v25  ;;  %v3841_v43 = vmax.f32 %v3186_v0, 0.0  ;;  %v4075_v25 = vld [vmem:[#allocation5 + $0x668] sm:$0xff]  ;;  %v4064_v0 = vld [vmem:[#allocation5 + $0x610] sm:$0xff] }
 0x252   : > { %6523 = vmatprep.subr.mxu0 %v4021_v11  ;;  %6557 = vmatprep.subr.mxu1 %v4055_v10  ;;  %v3803_v11 = vmax.f32 %v3225_v39, 0.0  ;;  %v4109_v10 = vld [vmem:[#allocation5 + $0x778] sm:$0xff]  ;;  %v10478_v39 = vpop.f32.mrf.mxu1 }
 0x253   : > { %6524 = vmatpush3.msra.mxu0 %v4005_v51  ;;  %6558 = vmatpush3.msra.mxu1 %v4039_v31  ;;  %v4090_v51 = vld [vmem:[#allocation5 + $0x6e0] sm:$0xff]  ;;  %v3184_v31 = vadd.f32 %v10460_v52, %v10426_v22  ;;  %v4104_v52 = vld [vmem:[#allocation5 + $0x750] sm:$0xff] }
 0x254   : > { %6525 = vmatprep.subr.mxu0 %v4020_v2  ;;  %6559 = vmatprep.subr.mxu1 %v4054_v55  ;;  %v4124_v2 = vld [vmem:[#allocation5 + $0x7f0] sm:$0xff]  ;;  %v4074_v55 = vld [vmem:[#allocation5 + $0x660] sm:$0xff] }
 0x255   : > { %6526 = vmatpush3.msra.mxu0 %v4004_v26  ;;  %6560 = vmatpush3.msra.mxu1 %v4038_v47  ;;  %v3268_v26 = vadd.f32 %v3267_v53, %v10424_v60  ;;  %v4108_v47 = vld [vmem:[#allocation5 + $0x770] sm:$0xff] }
 0x256   : > { %6527 = vmatprep.subr.mxu0 %v4019_v54  ;;  %6561 = vmatprep.subr.mxu1 %v4053_v44  ;;  %v4089_v54 = vld [vmem:[#allocation5 + $0x6d8] sm:$0xff]  ;;  %v4123_v44 = vld [vmem:[#allocation5 + $0x7e8] sm:$0xff] }
 0x257   : > { %6528 = vmatpush3.msra.mxu0 %v4003_v63  ;;  %6562 = vmatpush3.msra.mxu1 %v4037_v56  ;;  %v3840_v63 = vmax.f32 %v3184_v31, 0.0  ;;  %v4107_v56 = vld [vmem:[#allocation5 + $0x768] sm:$0xff]  ;;  %v3271_v31 = vpop.f32.mrf.mxu1 }
 0x258   : > { %6529 = vmatprep.subr.mxu0 %v4018_v36  ;;  %6563 = vmatprep.subr.mxu1 %v4052_v48  ;;  %v4088_v36 = vld [vmem:[#allocation5 + $0x6d0] sm:$0xff]  ;;  %v3805_v48 = vmax.f32 %v3268_v26, 0.0  ;;  %v4157_v26 = vld [vmem:[#allocation5 + $0x8f8] sm:$0xff] }
 0x259   : > { %6530 = vmatpush3.msra.mxu0 %v4002_v20  ;;  %6564 = vmatpush3.msra.mxu1 %v4036_v58  ;;  %v4122_v20 = vld [vmem:[#allocation5 + $0x7e0] sm:$0xff]  ;;  %v4072_v58 = vld [vmem:[#allocation5 + $0x650] sm:$0xff] }
 0x25a   : > { %6531 = vmatprep.subr.mxu0 %v4017_v40  ;;  %6565 = vmatprep.subr.mxu1 %v4051_v7  ;;  %v4106_v40 = vld [vmem:[#allocation5 + $0x760] sm:$0xff]  ;;  %v4087_v7 = vld [vmem:[#allocation5 + $0x6c8] sm:$0xff] }
 0x25b   : > { %6532 = vmatpush3.msra.mxu0 %v4001_v1  ;;  %6566 = vmatpush3.msra.mxu1 %v4035_v28  ;;  %v4121_v1 = vld [vmem:[#allocation5 + $0x7d8] sm:$0xff] }
 0x25c   : > { %6533 = vmatprep.subr.mxu0 %v4016_v30  ;;  %6567 = vmatprep.subr.mxu1 %v4050_v46  ;;  %v4105_v28 = vld [vmem:[#allocation5 + $0x758] sm:$0xff]  ;;  %v4086_v30 = vld [vmem:[#allocation5 + $0x6c0] sm:$0xff]  ;;  %v4120_v46 = vld [vmem:[#allocation5 + $0x7d0] sm:$0xff] }
 0x25d   : > { %6534 = vmatpush3.msra.mxu0 %v4000_v49  ;;  %6568 = vmatpush3.msra.mxu1 %v4034_v27  ;;  %v4070_v49 = vld [vmem:[#allocation5 + $0x640] sm:$0xff]  ;;  %v4085_v27 = vld [vmem:[#allocation5 + $0x6b8] sm:$0xff] }
 0x25e   : > { %6535 = vmatprep.subr.mxu0 %v4015_v14  ;;  %6569 = vmatprep.subr.mxu1 %v4049_v34  ;;  %v4119_v14 = vld [vmem:[#allocation5 + $0x7c8] sm:$0xff] }
 0x25f   : > { %6536 = vmatpush3.msra.mxu0 %v3999_v50  ;;  %6570 = vmatpush3.msra.mxu1 %v4033_v41  ;;  %v4103_v34 = vld [vmem:[#allocation5 + $0x748] sm:$0xff]  ;;  %v4084_v50 = vld [vmem:[#allocation5 + $0x6b0] sm:$0xff]  ;;  %v4118_v41 = vld [vmem:[#allocation5 + $0x7c0] sm:$0xff] }
 0x260   : > { %6537 = vmatprep.subr.mxu0 %v4014_v4  ;;  %6571 = vmatprep.subr.mxu1 %v4048_v17  ;;  %v4068_v4 = vld [vmem:[#allocation5 + $0x630] sm:$0xff]  ;;  %v4102_v17 = vld [vmem:[#allocation5 + $0x740] sm:$0xff] }
 0x261   : > { %6538 = vmatpush3.msra.mxu0 %v3998_v35  ;;  %6572 = vmatpush3.msra.mxu1 %v4032_v29  ;;  %v4083_v35 = vld [vmem:[#allocation5 + $0x6a8] sm:$0xff]  ;;  %v3226_v29 = vpop.f32.mrf.mxu0 }
 0x262   : > { %4875 = vmatmul.mubr.f32.vlgmr.msra.gmra.mxu0 %v3798_v42  ;;  %6573 = vmatprep.subr.mxu1 %v4047_v24  ;;  %v4101_v42 = vld [vmem:[#allocation5 + $0x738] sm:$0xff]  ;;  %v4082_v24 = vld [vmem:[#allocation5 + $0x6a0] sm:$0xff] }
 0x263   : > { %6583 = vmatprep.subr.mxu0 %v4093_v12  ;;  %4879 = vmatprep.mubr.f32.mxu0 %v3839_v57  ;;  %v4116_v12 = vld [vmem:[#allocation5 + $0x7b0] sm:$0xff]  ;;  %v4115_v57 = vld [vmem:[#allocation5 + $0x7a8] sm:$0xff] }
 0x264   : > { %6574 = vmatpush3.msra.mxu1 %v4031_v3  ;;  %6584 = vmatpush3.msra.mxu0 %v4077_v62  ;;  %v4081_v3 = vld [vmem:[#allocation5 + $0x698] sm:$0xff] }
 0x265   : > { %6575 = vmatprep.subr.mxu1 %v4046_v16  ;;  %6585 = vmatprep.subr.mxu0 %v4092_v13  ;;  %v4065_v62 = vld [vmem:[#allocation5 + $0x618] sm:$0xff]  ;;  %v3228_v16 = vpop.f32.mrf.mxu0  ;;  %v4080_v13 = vld [vmem:[#allocation5 + $0x690] sm:$0xff] }
 0x266   : > { %6576 = vmatpush3.msra.mxu1 %v4030_v38  ;;  %6586 = vmatpush3.msra.mxu0 %v4076_v5  ;;  %v4114_v38 = vld [vmem:[#allocation5 + $0x7a0] sm:$0xff] }
 0x267   : > { %4950 = vmatmul.mubr.f32.vlgmr.msra.gmra.mxu1 %v3800_v59  ;;  %4880 = vmatmul.mubr.f32.gmra.mxu0 %v3838_v6  ;;  %v4098_v5 = vld [vmem:[#allocation5 + $0x720] sm:$0xff]  ;;  %v4079_v59 = vld [vmem:[#allocation5 + $0x688] sm:$0xff]  ;;  %v4113_v6 = vld [vmem:[#allocation5 + $0x798] sm:$0xff]  ;;  %v10482_v53 = vpop.f32.mrf.mxu0 }
 0x268   : > { %6587 = vmatprep.subr.mxu0 %v4091_v61  ;;  %6621 = vmatprep.subr.mxu1 %v4125_v19  ;;  %v3223_v61 = vadd.f32 %v10464_v21, %v10424_v60  ;;  %v4063_v19 = vld [vmem:[#allocation5 + $0x608] sm:$0xff]  ;;  %v4096_v21 = vld [vmem:[#allocation5 + $0x710] sm:$0xff] }
 0x269   : > { %4954 = vmatprep.mubr.f32.mxu1 %v3841_v43  ;;  %6588 = vmatpush3.msra.mxu0 %v4075_v25  ;;  %v4097_v43 = vld [vmem:[#allocation5 + $0x718] sm:$0xff]  ;;  %v4078_v25 = vld [vmem:[#allocation5 + $0x680] sm:$0xff] }
 0x26a   : > { %5024 = vmatprep.mubr.f32.mxu0 %v3803_v11  ;;  %6622 = vmatpush3.msra.mxu1 %v4109_v10  ;;  %v3229_v11 = vadd.f32 %v3228_v16, %v10426_v22  ;;  %v4112_v10 = vld [vmem:[#allocation5 + $0x790] sm:$0xff]  ;;  %v4135_v16 = vld [vmem:[#allocation5 + $0x848] sm:$0xff] }
 0x26b   : > { %6589 = vmatprep.subr.mxu0 %v4090_v51  ;;  %6623 = vmatprep.subr.mxu1 %v4124_v2  ;;  %v4062_v51 = vld [vmem:[#allocation5 + $0x600] sm:$0xff]  ;;  %v3802_v2 = vmax.f32 %v3223_v61, 0.0  ;;  %v4133_v61 = vld [vmem:[#allocation5 + $0x838] sm:$0xff] }
 0x26c   : > { %6590 = vmatpush3.msra.mxu0 %v4074_v55  ;;  %6624 = vmatpush3.msra.mxu1 %v4108_v47  ;;  %v4111_v55 = vld [vmem:[#allocation5 + $0x788] sm:$0xff]  ;;  %v3266_v47 = vadd.f32 %v10471_v15, %v10424_v60 }
 0x26d   : > { %6591 = vmatprep.subr.mxu0 %v4089_v54  ;;  %4955 = vmatmul.mubr.f32.gmra.mxu1 %v3840_v63  ;;  %v3310_v54 = vpop.f32.mrf.mxu0  ;;  %v3227_v63 = vadd.f32 %v3226_v29, %v10426_v22  ;;  %v4137_v29 = vld [vmem:[#allocation5 + $0x858] sm:$0xff] }
 0x26e   : > { %6625 = vmatprep.subr.mxu1 %v4123_v44  ;;  %6592 = vmatpush3.msra.mxu0 %v4073_v37  ;;  %v4095_v44 = vld [vmem:[#allocation5 + $0x708] sm:$0xff]  ;;  %v3843_v37 = vmax.f32 %v3229_v11, 0.0  ;;  %v3311_v15 = vadd.f32 %v3310_v54, %v10424_v60  ;;  %v4166_v11 = vld [vmem:[#allocation5 + $0x940] sm:$0xff]  ;;  %v4164_v54 = vld [vmem:[#allocation5 + $0x930] sm:$0xff] }
 0x26f   : > { %6626 = vmatpush3.msra.mxu1 %v4107_v56  ;;  %5099 = vmatprep.mubr.f32.mxu1 %v3805_v48  ;;  %v4141_v56 = vld [vmem:[#allocation5 + $0x878] sm:$0xff]  ;;  %v3272_v48 = vadd.f32 %v3271_v31, %v10426_v22  ;;  %v4131_v31 = vld [vmem:[#allocation5 + $0x828] sm:$0xff] }
 0x270   : > { %6593 = vmatprep.subr.mxu0 %v4088_v36  ;;  %6627 = vmatprep.subr.mxu1 %v4122_v20  ;;  %v4110_v36 = vld [vmem:[#allocation5 + $0x780] sm:$0xff]  ;;  %v10489_v20 = vpop.f32.mrf.mxu1 }
 0x271   : > { %6594 = vmatpush3.msra.mxu0 %v4072_v58  ;;  %6628 = vmatpush3.msra.mxu1 %v4106_v40  ;;  %v4156_v58 = vld [vmem:[#allocation5 + $0x8f0] sm:$0xff]  ;;  %v4094_v40 = vld [vmem:[#allocation5 + $0x700] sm:$0xff] }
 0x272   : > { %6595 = vmatprep.subr.mxu0 %v4087_v7  ;;  %6629 = vmatprep.subr.mxu1 %v4121_v1  ;;  %v4140_v7 = vld [vmem:[#allocation5 + $0x870] sm:$0xff]  ;;  %v3804_v1 = vmax.f32 %v3266_v47, 0.0  ;;  %v3312_v47 = vpop.f32.mrf.mxu0 }
 0x273   : > { %6596 = vmatpush3.msra.mxu0 %v4071_v18  ;;  %6630 = vmatpush3.msra.mxu1 %v4105_v28  ;;  %v4155_v18 = vld [vmem:[#allocation5 + $0x8e8] sm:$0xff]  ;;  %v3842_v28 = vmax.f32 %v3227_v63, 0.0 }
 0x274   : > { %6597 = vmatprep.subr.mxu0 %v4086_v30  ;;  %6631 = vmatprep.subr.mxu1 %v4120_v46  ;;  %v4189_v30 = vld [vmem:[#allocation5 + $0x9f8] sm:$0xff]  ;;  %v3845_v46 = vmax.f32 %v3272_v48, 0.0  ;;  %v4179_v63 = vld [vmem:[#allocation5 + $0x9a8] sm:$0xff]  ;;  %v4178_v48 = vld [vmem:[#allocation5 + $0x9a0] sm:$0xff] }
 0x275   : > { %6598 = vmatpush3.msra.mxu0 %v4070_v49  ;;  %6632 = vmatpush3.msra.mxu1 %v4104_v52  ;;  %v3353_v49 = vpop.f32.mrf.mxu1  ;;  %v4139_v52 = vld [vmem:[#allocation5 + $0x868] sm:$0xff] }
 0x276   : > { %6599 = vmatprep.subr.mxu0 %v4085_v27  ;;  %6633 = vmatprep.subr.mxu1 %v4119_v14  ;;  %v3807_v27 = vmax.f32 %v3311_v15, 0.0  ;;  %v3270_v14 = vadd.f32 %v10478_v39, %v10426_v22  ;;  %v4168_v39 = vld [vmem:[#allocation5 + $0x950] sm:$0xff]  ;;  %v4162_v15 = vld [vmem:[#allocation5 + $0x920] sm:$0xff] }
 0x277   : > { %6600 = vmatpush3.msra.mxu0 %v4069_v32  ;;  %6634 = vmatpush3.msra.mxu1 %v4103_v34  ;;  %v4173_v32 = vld [vmem:[#allocation5 + $0x978] sm:$0xff]  ;;  %v4154_v34 = vld [vmem:[#allocation5 + $0x8e0] sm:$0xff] }
 0x278   : > { %6601 = vmatprep.subr.mxu0 %v4084_v50  ;;  %6635 = vmatprep.subr.mxu1 %v4118_v41  ;;  %v4188_v50 = vld [vmem:[#allocation5 + $0x9f0] sm:$0xff]  ;;  %v4138_v41 = vld [vmem:[#allocation5 + $0x860] sm:$0xff] }
 0x279   : > { %6602 = vmatpush3.msra.mxu0 %v4068_v4  ;;  %6636 = vmatpush3.msra.mxu1 %v4102_v17  ;;  %v3354_v4 = vadd.f32 %v3353_v49, %v10424_v60  ;;  %v4172_v17 = vld [vmem:[#allocation5 + $0x970] sm:$0xff]  ;;  %v4161_v49 = vld [vmem:[#allocation5 + $0x918] sm:$0xff] }
 0x27a   : > { %6603 = vmatprep.subr.mxu0 %v4083_v35  ;;  %6637 = vmatprep.subr.mxu1 %v4117_v23  ;;  %v4153_v35 = vld [vmem:[#allocation5 + $0x8d8] sm:$0xff]  ;;  %v4187_v23 = vld [vmem:[#allocation5 + $0x9e8] sm:$0xff] }
 0x27b   : > { %6604 = vmatpush3.msra.mxu0 %v4067_v9  ;;  %6638 = vmatpush3.msra.mxu1 %v4101_v42  ;;  %v3844_v9 = vmax.f32 %v3270_v14, 0.0  ;;  %v4171_v42 = vld [vmem:[#allocation5 + $0x968] sm:$0xff]  ;;  %v4176_v14 = vld [vmem:[#allocation5 + $0x990] sm:$0xff] }
 0x27c   : > { %6605 = vmatprep.subr.mxu0 %v4082_v24  ;;  %6639 = vmatprep.subr.mxu1 %v4116_v12  ;;  %v4152_v24 = vld [vmem:[#allocation5 + $0x8d0] sm:$0xff]  ;;  %v3809_v12 = vmax.f32 %v3354_v4, 0.0  ;;  %v4221_v4 = vld [vmem:[#allocation5 + $0xaf8] sm:$0xff] }
 0x27d   : > { %6606 = vmatpush3.msra.mxu0 %v4066_v45  ;;  %6640 = vmatpush3.msra.mxu1 %v4100_v33  ;;  %v4186_v45 = vld [vmem:[#allocation5 + $0x9e0] sm:$0xff]  ;;  %v4136_v33 = vld [vmem:[#allocation5 + $0x850] sm:$0xff] }
 0x27e   : > { %6607 = vmatprep.subr.mxu0 %v4081_v3  ;;  %6641 = vmatprep.subr.mxu1 %v4115_v57  ;;  %v4170_v3 = vld [vmem:[#allocation5 + $0x960] sm:$0xff]  ;;  %v4151_v57 = vld [vmem:[#allocation5 + $0x8c8] sm:$0xff] }
 0x27f   : > { %6608 = vmatpush3.msra.mxu0 %v4065_v62  ;;  %6642 = vmatpush3.msra.mxu1 %v4099_v8  ;;  %v4185_v62 = vld [vmem:[#allocation5 + $0x9d8] sm:$0xff] }
 0x280   : > { %6609 = vmatprep.subr.mxu0 %v4080_v13  ;;  %6643 = vmatprep.subr.mxu1 %v4114_v38  ;;  %v4169_v8 = vld [vmem:[#allocation5 + $0x958] sm:$0xff]  ;;  %v4150_v13 = vld [vmem:[#allocation5 + $0x8c0] sm:$0xff]  ;;  %v4184_v38 = vld [vmem:[#allocation5 + $0x9d0] sm:$0xff] }
 0x281   : > { %6610 = vmatpush3.msra.mxu0 %v4064_v0  ;;  %6644 = vmatpush3.msra.mxu1 %v4098_v5  ;;  %v4134_v0 = vld [vmem:[#allocation5 + $0x840] sm:$0xff]  ;;  %v4149_v5 = vld [vmem:[#allocation5 + $0x8b8] sm:$0xff] }
 0x282   : > { %6611 = vmatprep.subr.mxu0 %v4079_v59  ;;  %6645 = vmatprep.subr.mxu1 %v4113_v6  ;;  %v4183_v59 = vld [vmem:[#allocation5 + $0x9c8] sm:$0xff] }
 0x283   : > { %6612 = vmatpush3.msra.mxu0 %v4063_v19  ;;  %6646 = vmatpush3.msra.mxu1 %v4097_v43  ;;  %v4167_v6 = vld [vmem:[#allocation5 + $0x948] sm:$0xff]  ;;  %v4148_v19 = vld [vmem:[#allocation5 + $0x8b0] sm:$0xff]  ;;  %v4182_v43 = vld [vmem:[#allocation5 + $0x9c0] sm:$0xff] }
 0x284   : > { %6613 = vmatprep.subr.mxu0 %v4078_v25  ;;  %6647 = vmatprep.subr.mxu1 %v4112_v10  ;;  %v4132_v25 = vld [vmem:[#allocation5 + $0x830] sm:$0xff]  ;;  %v4147_v10 = vld [vmem:[#allocation5 + $0x8a8] sm:$0xff] }
 0x285   : > { %6614 = vmatpush3.msra.mxu0 %v4062_v51  ;;  %6648 = vmatpush3.msra.mxu1 %v4096_v21  ;;  %v4181_v51 = vld [vmem:[#allocation5 + $0x9b8] sm:$0xff] }
 0x286   : > { %5025 = vmatmul.mubr.f32.vlgmr.msra.gmra.mxu0 %v3802_v2  ;;  %6649 = vmatprep.subr.mxu1 %v4111_v55  ;;  %v4165_v21 = vld [vmem:[#allocation5 + $0x938] sm:$0xff]  ;;  %v4146_v2 = vld [vmem:[#allocation5 + $0x8a0] sm:$0xff]  ;;  %v4180_v55 = vld [vmem:[#allocation5 + $0x9b0] sm:$0xff] }
 0x287   : > { %6659 = vmatprep.subr.mxu0 %v4157_v26  ;;  %5029 = vmatprep.mubr.f32.mxu0 %v3843_v37  ;;  %v4130_v26 = vld [vmem:[#allocation5 + $0x820] sm:$0xff]  ;;  %v4129_v37 = vld [vmem:[#allocation5 + $0x818] sm:$0xff] }
 0x288   : > { %6650 = vmatpush3.msra.mxu1 %v4095_v44  ;;  %6660 = vmatpush3.msra.mxu0 %v4141_v56  ;;  %v4145_v44 = vld [vmem:[#allocation5 + $0x898] sm:$0xff]  ;;  %v4163_v56 = vld [vmem:[#allocation5 + $0x928] sm:$0xff] }
 0x289   : > { %6651 = vmatprep.subr.mxu1 %v4110_v36  ;;  %6661 = vmatprep.subr.mxu0 %v4156_v58  ;;  %v4144_v36 = vld [vmem:[#allocation5 + $0x890] sm:$0xff] }
 0x28a   : > { %6652 = vmatpush3.msra.mxu1 %v4094_v40  ;;  %6662 = vmatpush3.msra.mxu0 %v4140_v7  ;;  %v4128_v58 = vld [vmem:[#allocation5 + $0x810] sm:$0xff]  ;;  %v3314_v40 = vpop.f32.mrf.mxu0  ;;  %v4143_v7 = vld [vmem:[#allocation5 + $0x888] sm:$0xff] }
 0x28b   : > { %5100 = vmatmul.mubr.f32.vlgmr.msra.gmra.mxu1 %v3804_v1  ;;  %5030 = vmatmul.mubr.f32.gmra.mxu0 %v3842_v28  ;;  %v3309_v1 = vadd.f32 %v10482_v53, %v10424_v60  ;;  %v4177_v28 = vld [vmem:[#allocation5 + $0x998] sm:$0xff]  ;;  %v4160_v53 = vld [vmem:[#allocation5 + $0x910] sm:$0xff] }
 0x28c   : > { %6663 = vmatprep.subr.mxu0 %v4155_v18  ;;  %6697 = vmatprep.subr.mxu1 %v4189_v30  ;;  %v3355_v18 = vpop.f32.mrf.mxu1  ;;  %v4127_v30 = vld [vmem:[#allocation5 + $0x808] sm:$0xff] }
 0x28d   : > { %5104 = vmatprep.mubr.f32.mxu1 %v3845_v46  ;;  %6664 = vmatpush3.msra.mxu0 %v4139_v52  ;;  %v10497_v46 = vpop.f32.mrf.mxu0  ;;  %v4142_v52 = vld [vmem:[#allocation5 + $0x880] sm:$0xff] }
 0x28e   : > { %5174 = vmatprep.mubr.f32.mxu0 %v3807_v27  ;;  %6698 = vmatpush3.msra.mxu1 %v4173_v32  ;;  %v3315_v27 = vadd.f32 %v3314_v40, %v10426_v22  ;;  %v4126_v32 = vld [vmem:[#allocation5 + $0x800] sm:$0xff] }
 0x28f   : > { %6665 = vmatprep.subr.mxu0 %v4154_v34  ;;  %6699 = vmatprep.subr.mxu1 %v4188_v50  ;;  %v3806_v34 = vmax.f32 %v3309_v1, 0.0  ;;  %v3357_v50 = vpop.f32.mrf.mxu1  ;;  %v4198_v40 = vld [vmem:[#allocation5 + $0xa40] sm:$0xff]  ;;  %v4247_v1 = vld [vmem:[#allocation5 + $0xbc8] sm:$0xff] }
 0x290   : > { %6666 = vmatpush3.msra.mxu0 %v4138_v41  ;;  %6700 = vmatpush3.msra.mxu1 %v4172_v17  ;;  %v4175_v41 = vld [vmem:[#allocation5 + $0x988] sm:$0xff]  ;;  %v3352_v17 = vadd.f32 %v10489_v20, %v10424_v60 }
 0x291   : > { %6667 = vmatprep.subr.mxu0 %v4153_v35  ;;  %5105 = vmatmul.mubr.f32.gmra.mxu1 %v3844_v9  ;;  %v3396_v35 = vpop.f32.mrf.mxu0  ;;  %v3313_v9 = vadd.f32 %v3312_v47, %v10426_v22  ;;  %v4250_v47 = vld [vmem:[#allocation5 + $0xbe0] sm:$0xff] }
 0x292   : > { %6701 = vmatprep.subr.mxu1 %v4187_v23  ;;  %6668 = vmatpush3.msra.mxu0 %v4137_v29  ;;  %v4159_v23 = vld [vmem:[#allocation5 + $0x908] sm:$0xff]  ;;  %v3847_v29 = vmax.f32 %v3315_v27, 0.0  ;;  %v3397_v20 = vadd.f32 %v3396_v35, %v10424_v60  ;;  %v4230_v27 = vld [vmem:[#allocation5 + $0xb40] sm:$0xff]  ;;  %v4228_v35 = vld [vmem:[#allocation5 + $0xb30] sm:$0xff] }
 0x293   : > { %6702 = vmatpush3.msra.mxu1 %v4171_v42  ;;  %5249 = vmatprep.mubr.f32.mxu1 %v3809_v12  ;;  %v4205_v42 = vld [vmem:[#allocation5 + $0xa78] sm:$0xff]  ;;  %v3358_v12 = vadd.f32 %v3357_v50, %v10426_v22  ;;  %v4210_v50 = vld [vmem:[#allocation5 + $0xaa0] sm:$0xff] }
 0x294   : > { %6669 = vmatprep.subr.mxu0 %v4152_v24  ;;  %6703 = vmatprep.subr.mxu1 %v4186_v45  ;;  %v4174_v24 = vld [vmem:[#allocation5 + $0x980] sm:$0xff]  ;;  %v10504_v45 = vpop.f32.mrf.mxu1 }
 0x295   : > { %6670 = vmatpush3.msra.mxu0 %v4136_v33  ;;  %6704 = vmatpush3.msra.mxu1 %v4170_v3  ;;  %v4220_v33 = vld [vmem:[#allocation5 + $0xaf0] sm:$0xff]  ;;  %v4158_v3 = vld [vmem:[#allocation5 + $0x900] sm:$0xff] }
 0x296   : > { %6671 = vmatprep.subr.mxu0 %v4151_v57  ;;  %6705 = vmatprep.subr.mxu1 %v4185_v62  ;;  %v4204_v57 = vld [vmem:[#allocation5 + $0xa70] sm:$0xff]  ;;  %v3808_v62 = vmax.f32 %v3352_v17, 0.0  ;;  %v3398_v17 = vpop.f32.mrf.mxu0 }
 0x297   : > { %6672 = vmatpush3.msra.mxu0 %v4135_v16  ;;  %6706 = vmatpush3.msra.mxu1 %v4169_v8  ;;  %v4219_v16 = vld [vmem:[#allocation5 + $0xae8] sm:$0xff]  ;;  %v3846_v8 = vmax.f32 %v3313_v9, 0.0 }
 0x298   : > { %6673 = vmatprep.subr.mxu0 %v4150_v13  ;;  %6707 = vmatprep.subr.mxu1 %v4184_v38  ;;  %v4253_v13 = vld [vmem:[#allocation5 + $0xbf8] sm:$0xff]  ;;  %v3849_v38 = vmax.f32 %v3358_v12, 0.0  ;;  %v4243_v9 = vld [vmem:[#allocation5 + $0xba8] sm:$0xff]  ;;  %v4242_v12 = vld [vmem:[#allocation5 + $0xba0] sm:$0xff] }
 0x299   : > { %6674 = vmatpush3.msra.mxu0 %v4134_v0  ;;  %6708 = vmatpush3.msra.mxu1 %v4168_v39  ;;  %v3439_v0 = vpop.f32.mrf.mxu1  ;;  %v4203_v39 = vld [vmem:[#allocation5 + $0xa68] sm:$0xff] }
 0x29a   : > { %6675 = vmatprep.subr.mxu0 %v4149_v5  ;;  %6709 = vmatprep.subr.mxu1 %v4183_v59  ;;  %v3356_v5 = vadd.f32 %v3355_v18, %v10426_v22  ;;  %v3811_v59 = vmax.f32 %v3397_v20, 0.0  ;;  %v4197_v18 = vld [vmem:[#allocation5 + $0xa38] sm:$0xff]  ;;  %v4226_v20 = vld [vmem:[#allocation5 + $0xb20] sm:$0xff] }
 0x29b   : > { %6676 = vmatpush3.msra.mxu0 %v4133_v61  ;;  %6710 = vmatpush3.msra.mxu1 %v4167_v6  ;;  %v4237_v61 = vld [vmem:[#allocation5 + $0xb78] sm:$0xff]  ;;  %v4218_v6 = vld [vmem:[#allocation5 + $0xae0] sm:$0xff] }
 0x29c   : > { %6677 = vmatprep.subr.mxu0 %v4148_v19  ;;  %6711 = vmatprep.subr.mxu1 %v4182_v43  ;;  %v4252_v19 = vld [vmem:[#allocation5 + $0xbf0] sm:$0xff]  ;;  %v4202_v43 = vld [vmem:[#allocation5 + $0xa60] sm:$0xff] }
 0x29d   : > { %6678 = vmatpush3.msra.mxu0 %v4132_v25  ;;  %6712 = vmatpush3.msra.mxu1 %v4166_v11  ;;  %v3440_v25 = vadd.f32 %v3439_v0, %v10424_v60  ;;  %v4236_v11 = vld [vmem:[#allocation5 + $0xb70] sm:$0xff]  ;;  %v4225_v0 = vld [vmem:[#allocation5 + $0xb18] sm:$0xff] }
 0x29e   : > { %6679 = vmatprep.subr.mxu0 %v4147_v10  ;;  %6713 = vmatprep.subr.mxu1 %v4181_v51  ;;  %v4217_v10 = vld [vmem:[#allocation5 + $0xad8] sm:$0xff]  ;;  %v4251_v51 = vld [vmem:[#allocation5 + $0xbe8] sm:$0xff] }
 0x29f   : > { %6680 = vmatpush3.msra.mxu0 %v4131_v31  ;;  %6714 = vmatpush3.msra.mxu1 %v4165_v21  ;;  %v3848_v31 = vmax.f32 %v3356_v5, 0.0  ;;  %v4201_v21 = vld [vmem:[#allocation5 + $0xa58] sm:$0xff] }
 0x2a0   : > { %6681 = vmatprep.subr.mxu0 %v4146_v2  ;;  %6715 = vmatprep.subr.mxu1 %v4180_v55  ;;  %v4235_v2 = vld [vmem:[#allocation5 + $0xb68] sm:$0xff]  ;;  %v4216_v55 = vld [vmem:[#allocation5 + $0xad0] sm:$0xff] }
 0x2a1   : > { %6682 = vmatpush3.msra.mxu0 %v4130_v26  ;;  %6716 = vmatpush3.msra.mxu1 %v4164_v54  ;;  %v3813_v26 = vmax.f32 %v3440_v25, 0.0  ;;  %v4200_v54 = vld [vmem:[#allocation5 + $0xa50] sm:$0xff]  ;;  %v4285_v25 = vld [vmem:[#allocation5 + $0xcf8] sm:$0xff] }
 0x2a2   : > { %6683 = vmatprep.subr.mxu0 %v4145_v44  ;;  %6717 = vmatprep.subr.mxu1 %v4179_v63  ;;  %v4234_v44 = vld [vmem:[#allocation5 + $0xb60] sm:$0xff]  ;;  %v4215_v63 = vld [vmem:[#allocation5 + $0xac8] sm:$0xff] }
 0x2a3   : > { %6684 = vmatpush3.msra.mxu0 %v4129_v37  ;;  %6718 = vmatpush3.msra.mxu1 %v4163_v56  ;;  %v4249_v37 = vld [vmem:[#allocation5 + $0xbd8] sm:$0xff]  ;;  %v4199_v56 = vld [vmem:[#allocation5 + $0xa48] sm:$0xff] }
 0x2a4   : > { %6685 = vmatprep.subr.mxu0 %v4144_v36  ;;  %6719 = vmatprep.subr.mxu1 %v4178_v48  ;;  %v4233_v36 = vld [vmem:[#allocation5 + $0xb58] sm:$0xff]  ;;  %v4214_v48 = vld [vmem:[#allocation5 + $0xac0] sm:$0xff] }
 0x2a5   : > { %6686 = vmatpush3.msra.mxu0 %v4128_v58  ;;  %6720 = vmatpush3.msra.mxu1 %v4162_v15  ;;  %v4248_v58 = vld [vmem:[#allocation5 + $0xbd0] sm:$0xff] }
 0x2a6   : > { %6687 = vmatprep.subr.mxu0 %v4143_v7  ;;  %6721 = vmatprep.subr.mxu1 %v4177_v28  ;;  %v4232_v15 = vld [vmem:[#allocation5 + $0xb50] sm:$0xff]  ;;  %v4213_v7 = vld [vmem:[#allocation5 + $0xab8] sm:$0xff]  ;;  %v4231_v28 = vld [vmem:[#allocation5 + $0xb48] sm:$0xff] }
 0x2a7   : > { %6688 = vmatpush3.msra.mxu0 %v4127_v30  ;;  %6722 = vmatpush3.msra.mxu1 %v4161_v49  ;;  %v4212_v30 = vld [vmem:[#allocation5 + $0xab0] sm:$0xff]  ;;  %v4246_v49 = vld [vmem:[#allocation5 + $0xbc0] sm:$0xff] }
 0x2a8   : > { %6689 = vmatprep.subr.mxu0 %v4142_v52  ;;  %6723 = vmatprep.subr.mxu1 %v4176_v14  ;;  %v4196_v52 = vld [vmem:[#allocation5 + $0xa30] sm:$0xff]  ;;  %v4211_v14 = vld [vmem:[#allocation5 + $0xaa8] sm:$0xff] }
 0x2a9   : > { %6690 = vmatpush3.msra.mxu0 %v4126_v32  ;;  %6724 = vmatpush3.msra.mxu1 %v4160_v53  ;;  %v4245_v32 = vld [vmem:[#allocation5 + $0xbb8] sm:$0xff]  ;;  %v4195_v53 = vld [vmem:[#allocation5 + $0xa28] sm:$0xff] }
 0x2aa   : > { %5175 = vmatmul.mubr.f32.vlgmr.msra.gmra.mxu0 %v3806_v34  ;;  %6725 = vmatprep.subr.mxu1 %v4175_v41  ;;  %v4229_v34 = vld [vmem:[#allocation5 + $0xb38] sm:$0xff]  ;;  %v4244_v41 = vld [vmem:[#allocation5 + $0xbb0] sm:$0xff] }
 0x2ab   : > { %6735 = vmatprep.subr.mxu0 %v4221_v4  ;;  %5179 = vmatprep.mubr.f32.mxu0 %v3847_v29  ;;  %v4194_v4 = vld [vmem:[#allocation5 + $0xa20] sm:$0xff]  ;;  %v4193_v29 = vld [vmem:[#allocation5 + $0xa18] sm:$0xff] }
 0x2ac   : > { %6726 = vmatpush3.msra.mxu1 %v4159_v23  ;;  %6736 = vmatpush3.msra.mxu0 %v4205_v42  ;;  %v4209_v23 = vld [vmem:[#allocation5 + $0xa98] sm:$0xff]  ;;  %v4227_v42 = vld [vmem:[#allocation5 + $0xb28] sm:$0xff] }
 0x2ad   : > { %6727 = vmatprep.subr.mxu1 %v4174_v24  ;;  %6737 = vmatprep.subr.mxu0 %v4220_v33  ;;  %v4208_v24 = vld [vmem:[#allocation5 + $0xa90] sm:$0xff] }
 0x2ae   : > { %6728 = vmatpush3.msra.mxu1 %v4158_v3  ;;  %6738 = vmatpush3.msra.mxu0 %v4204_v57  ;;  %v4192_v33 = vld [vmem:[#allocation5 + $0xa10] sm:$0xff]  ;;  %v3400_v3 = vpop.f32.mrf.mxu0  ;;  %v4207_v57 = vld [vmem:[#allocation5 + $0xa88] sm:$0xff] }
 0x2af   : > { %5250 = vmatmul.mubr.f32.vlgmr.msra.gmra.mxu1 %v3808_v62  ;;  %5180 = vmatmul.mubr.f32.gmra.mxu0 %v3846_v8  ;;  %v3395_v62 = vadd.f32 %v10497_v46, %v10424_v60  ;;  %v4241_v8 = vld [vmem:[#allocation5 + $0xb98] sm:$0xff]  ;;  %v3401_v5 = vadd.f32 %v3400_v3, %v10426_v22  ;;  %v4224_v46 = vld [vmem:[#allocation5 + $0xb10] sm:$0xff]  ;;  %v4262_v3 = vld [vmem:[#allocation5 + $0xc40] sm:$0xff] }
 0x2b0   : > { %6739 = vmatprep.subr.mxu0 %v4219_v16  ;;  %6773 = vmatprep.subr.mxu1 %v4253_v13  ;;  %v3441_v16 = vpop.f32.mrf.mxu1  ;;  %v4191_v13 = vld [vmem:[#allocation5 + $0xa08] sm:$0xff] }
 0x2b1   : > { %5254 = vmatprep.mubr.f32.mxu1 %v3849_v38  ;;  %6740 = vmatpush3.msra.mxu0 %v4203_v39  ;;  %v10511_v38 = vpop.f32.mrf.mxu0  ;;  %v4206_v39 = vld [vmem:[#allocation5 + $0xa80] sm:$0xff] }
 0x2b2   : > { %5324 = vmatprep.mubr.f32.mxu0 %v3811_v59  ;;  %6774 = vmatpush3.msra.mxu1 %v4237_v61  ;;  %v4240_v59 = vld [vmem:[#allocation5 + $0xb90] sm:$0xff]  ;;  %v4190_v61 = vld [vmem:[#allocation5 + $0xa00] sm:$0xff] }
 0x2b3   : > { %6741 = vmatprep.subr.mxu0 %v4218_v6  ;;  %6775 = vmatprep.subr.mxu1 %v4252_v19  ;;  %v3810_v6 = vmax.f32 %v3395_v62, 0.0  ;;  %v3443_v19 = vpop.f32.mrf.mxu1  ;;  %v4311_v62 = vld [vmem:[#allocation5 + $0xdc8] sm:$0xff] }
 0x2b4   : > { %6742 = vmatpush3.msra.mxu0 %v4202_v43  ;;  %6776 = vmatpush3.msra.mxu1 %v4236_v11  ;;  %v4239_v43 = vld [vmem:[#allocation5 + $0xb88] sm:$0xff]  ;;  %v3438_v11 = vadd.f32 %v10504_v45, %v10424_v60 }
 0x2b5   : > { %6743 = vmatprep.subr.mxu0 %v4217_v10  ;;  %5255 = vmatmul.mubr.f32.gmra.mxu1 %v3848_v31  ;;  %v3482_v10 = vpop.f32.mrf.mxu0  ;;  %v3399_v31 = vadd.f32 %v3398_v17, %v10426_v22  ;;  %v4314_v17 = vld [vmem:[#allocation5 + $0xde0] sm:$0xff] }
 0x2b6   : > { %6777 = vmatprep.subr.mxu1 %v4251_v51  ;;  %6744 = vmatpush3.msra.mxu0 %v4201_v21  ;;  %v4223_v51 = vld [vmem:[#allocation5 + $0xb08] sm:$0xff]  ;;  %v3851_v21 = vmax.f32 %v3401_v5, 0.0  ;;  %v3483_v45 = vadd.f32 %v3482_v10, %v10424_v60  ;;  %v4294_v5 = vld [vmem:[#allocation5 + $0xd40] sm:$0xff]  ;;  %v4292_v10 = vld [vmem:[#allocation5 + $0xd30] sm:$0xff] }
 0x2b7   : > { %6778 = vmatpush3.msra.mxu1 %v4235_v2  ;;  %5399 = vmatprep.mubr.f32.mxu1 %v3813_v26  ;;  %v4269_v2 = vld [vmem:[#allocation5 + $0xc78] sm:$0xff]  ;;  %v3444_v26 = vadd.f32 %v3443_v19, %v10426_v22  ;;  %v4274_v19 = vld [vmem:[#allocation5 + $0xca0] sm:$0xff] }
 0x2b8   : > { %6745 = vmatprep.subr.mxu0 %v4216_v55  ;;  %6779 = vmatprep.subr.mxu1 %v4250_v47  ;;  %v4238_v55 = vld [vmem:[#allocation5 + $0xb80] sm:$0xff]  ;;  %v10518_v47 = vpop.f32.mrf.mxu1 }
 0x2b9   : > { %6746 = vmatpush3.msra.mxu0 %v4200_v54  ;;  %6780 = vmatpush3.msra.mxu1 %v4234_v44  ;;  %v4284_v54 = vld [vmem:[#allocation5 + $0xcf0] sm:$0xff]  ;;  %v4222_v44 = vld [vmem:[#allocation5 + $0xb00] sm:$0xff] }
 0x2ba   : > { %6747 = vmatprep.subr.mxu0 %v4215_v63  ;;  %6781 = vmatprep.subr.mxu1 %v4249_v37  ;;  %v4268_v63 = vld [vmem:[#allocation5 + $0xc70] sm:$0xff]  ;;  %v3812_v37 = vmax.f32 %v3438_v11, 0.0  ;;  %v3484_v11 = vpop.f32.mrf.mxu0 }
 0x2bb   : > { %6748 = vmatpush3.msra.mxu0 %v4199_v56  ;;  %6782 = vmatpush3.msra.mxu1 %v4233_v36  ;;  %v4283_v56 = vld [vmem:[#allocation5 + $0xce8] sm:$0xff]  ;;  %v3850_v36 = vmax.f32 %v3399_v31, 0.0 }
 0x2bc   : > { %6749 = vmatprep.subr.mxu0 %v4214_v48  ;;  %6783 = vmatprep.subr.mxu1 %v4248_v58  ;;  %v4317_v48 = vld [vmem:[#allocation5 + $0xdf8] sm:$0xff]  ;;  %v3853_v58 = vmax.f32 %v3444_v26, 0.0  ;;  %v4307_v31 = vld [vmem:[#allocation5 + $0xda8] sm:$0xff]  ;;  %v4306_v26 = vld [vmem:[#allocation5 + $0xda0] sm:$0xff] }
 0x2bd   : > { %6750 = vmatpush3.msra.mxu0 %v4198_v40  ;;  %6784 = vmatpush3.msra.mxu1 %v4232_v15  ;;  %v3525_v40 = vpop.f32.mrf.mxu1  ;;  %v4267_v15 = vld [vmem:[#allocation5 + $0xc68] sm:$0xff] }
 0x2be   : > { %6751 = vmatprep.subr.mxu0 %v4213_v7  ;;  %6785 = vmatprep.subr.mxu1 %v4247_v1  ;;  %v3442_v7 = vadd.f32 %v3441_v16, %v10426_v22  ;;  %v3815_v1 = vmax.f32 %v3483_v45, 0.0  ;;  %v4261_v16 = vld [vmem:[#allocation5 + $0xc38] sm:$0xff]  ;;  %v4290_v45 = vld [vmem:[#allocation5 + $0xd20] sm:$0xff] }
 0x2bf   : > { %6752 = vmatpush3.msra.mxu0 %v4197_v18  ;;  %6786 = vmatpush3.msra.mxu1 %v4231_v28  ;;  %v4301_v18 = vld [vmem:[#allocation5 + $0xd78] sm:$0xff]  ;;  %v4282_v28 = vld [vmem:[#allocation5 + $0xce0] sm:$0xff] }
 0x2c0   : > { %6753 = vmatprep.subr.mxu0 %v4212_v30  ;;  %6787 = vmatprep.subr.mxu1 %v4246_v49  ;;  %v4316_v30 = vld [vmem:[#allocation5 + $0xdf0] sm:$0xff]  ;;  %v4266_v49 = vld [vmem:[#allocation5 + $0xc60] sm:$0xff] }
 0x2c1   : > { %6754 = vmatpush3.msra.mxu0 %v4196_v52  ;;  %6788 = vmatpush3.msra.mxu1 %v4230_v27  ;;  %v3526_v52 = vadd.f32 %v3525_v40, %v10424_v60  ;;  %v4300_v27 = vld [vmem:[#allocation5 + $0xd70] sm:$0xff]  ;;  %v4289_v40 = vld [vmem:[#allocation5 + $0xd18] sm:$0xff] }
 0x2c2   : > { %6755 = vmatprep.subr.mxu0 %v4211_v14  ;;  %6789 = vmatprep.subr.mxu1 %v4245_v32  ;;  %v4281_v14 = vld [vmem:[#allocation5 + $0xcd8] sm:$0xff]  ;;  %v4315_v32 = vld [vmem:[#allocation5 + $0xde8] sm:$0xff] }
 0x2c3   : > { %6756 = vmatpush3.msra.mxu0 %v4195_v53  ;;  %6790 = vmatpush3.msra.mxu1 %v4229_v34  ;;  %v3852_v53 = vmax.f32 %v3442_v7, 0.0  ;;  %v4265_v34 = vld [vmem:[#allocation5 + $0xc58] sm:$0xff] }
 0x2c4   : > { %6757 = vmatprep.subr.mxu0 %v4210_v50  ;;  %6791 = vmatprep.subr.mxu1 %v4244_v41  ;;  %v4299_v50 = vld [vmem:[#allocation5 + $0xd68] sm:$0xff]  ;;  %v4280_v41 = vld [vmem:[#allocation5 + $0xcd0] sm:$0xff] }
 0x2c5   : > { %6758 = vmatpush3.msra.mxu0 %v4194_v4  ;;  %6792 = vmatpush3.msra.mxu1 %v4228_v35  ;;  %v3817_v4 = vmax.f32 %v3526_v52, 0.0  ;;  %v4264_v35 = vld [vmem:[#allocation5 + $0xc50] sm:$0xff]  ;;  %v4349_v52 = vld [vmem:[#allocation5 + $0xef8] sm:$0xff] }
 0x2c6   : > { %6759 = vmatprep.subr.mxu0 %v4209_v23  ;;  %6793 = vmatprep.subr.mxu1 %v4243_v9  ;;  %v4298_v23 = vld [vmem:[#allocation5 + $0xd60] sm:$0xff]  ;;  %v4279_v9 = vld [vmem:[#allocation5 + $0xcc8] sm:$0xff] }
 0x2c7   : > { %6760 = vmatpush3.msra.mxu0 %v4193_v29  ;;  %6794 = vmatpush3.msra.mxu1 %v4227_v42  ;;  %v4313_v29 = vld [vmem:[#allocation5 + $0xdd8] sm:$0xff]  ;;  %v4263_v42 = vld [vmem:[#allocation5 + $0xc48] sm:$0xff] }
 0x2c8   : > { %6761 = vmatprep.subr.mxu0 %v4208_v24  ;;  %6795 = vmatprep.subr.mxu1 %v4242_v12  ;;  %v4297_v24 = vld [vmem:[#allocation5 + $0xd58] sm:$0xff]  ;;  %v4278_v12 = vld [vmem:[#allocation5 + $0xcc0] sm:$0xff] }
 0x2c9   : > { %6762 = vmatpush3.msra.mxu0 %v4192_v33  ;;  %6796 = vmatpush3.msra.mxu1 %v4226_v20  ;;  %v4312_v33 = vld [vmem:[#allocation5 + $0xdd0] sm:$0xff] }
 0x2ca   : > { %6763 = vmatprep.subr.mxu0 %v4207_v57  ;;  %6797 = vmatprep.subr.mxu1 %v4241_v8  ;;  %v4296_v20 = vld [vmem:[#allocation5 + $0xd50] sm:$0xff]  ;;  %v4277_v57 = vld [vmem:[#allocation5 + $0xcb8] sm:$0xff]  ;;  %v4295_v8 = vld [vmem:[#allocation5 + $0xd48] sm:$0xff] }
 0x2cb   : > { %6764 = vmatpush3.msra.mxu0 %v4191_v13  ;;  %6798 = vmatpush3.msra.mxu1 %v4225_v0  ;;  %v4276_v13 = vld [vmem:[#allocation5 + $0xcb0] sm:$0xff]  ;;  %v4310_v0 = vld [vmem:[#allocation5 + $0xdc0] sm:$0xff] }
 0x2cc   : > { %6765 = vmatprep.subr.mxu0 %v4206_v39  ;;  %6799 = vmatprep.subr.mxu1 %v4240_v59  ;;  %v4260_v39 = vld [vmem:[#allocation5 + $0xc30] sm:$0xff]  ;;  %v4275_v59 = vld [vmem:[#allocation5 + $0xca8] sm:$0xff] }
 0x2cd   : > { %6766 = vmatpush3.msra.mxu0 %v4190_v61  ;;  %6800 = vmatpush3.msra.mxu1 %v4224_v46  ;;  %v4309_v61 = vld [vmem:[#allocation5 + $0xdb8] sm:$0xff]  ;;  %v4259_v46 = vld [vmem:[#allocation5 + $0xc28] sm:$0xff] }
 0x2ce   : > { %5325 = vmatmul.mubr.f32.vlgmr.msra.gmra.mxu0 %v3810_v6  ;;  %6801 = vmatprep.subr.mxu1 %v4239_v43  ;;  %v4293_v6 = vld [vmem:[#allocation5 + $0xd38] sm:$0xff]  ;;  %v4308_v43 = vld [vmem:[#allocation5 + $0xdb0] sm:$0xff] }
 0x2cf   : > { %6811 = vmatprep.subr.mxu0 %v4285_v25  ;;  %5329 = vmatprep.mubr.f32.mxu0 %v3851_v21  ;;  %v4258_v25 = vld [vmem:[#allocation5 + $0xc20] sm:$0xff]  ;;  %v4257_v21 = vld [vmem:[#allocation5 + $0xc18] sm:$0xff] }
 0x2d0   : > { %6802 = vmatpush3.msra.mxu1 %v4223_v51  ;;  %6812 = vmatpush3.msra.mxu0 %v4269_v2  ;;  %v4273_v51 = vld [vmem:[#allocation5 + $0xc98] sm:$0xff]  ;;  %v4291_v2 = vld [vmem:[#allocation5 + $0xd28] sm:$0xff] }
 0x2d1   : > { %6803 = vmatprep.subr.mxu1 %v4238_v55  ;;  %6813 = vmatprep.subr.mxu0 %v4284_v54  ;;  %v4272_v55 = vld [vmem:[#allocation5 + $0xc90] sm:$0xff] }
 0x2d2   : > { %6804 = vmatpush3.msra.mxu1 %v4222_v44  ;;  %6814 = vmatpush3.msra.mxu0 %v4268_v63  ;;  %v4256_v54 = vld [vmem:[#allocation5 + $0xc10] sm:$0xff]  ;;  %v3486_v44 = vpop.f32.mrf.mxu0  ;;  %v4271_v63 = vld [vmem:[#allocation5 + $0xc88] sm:$0xff] }
 0x2d3   : > { %5400 = vmatmul.mubr.f32.vlgmr.msra.gmra.mxu1 %v3812_v37  ;;  %5330 = vmatmul.mubr.f32.gmra.mxu0 %v3850_v36  ;;  %v3481_v37 = vadd.f32 %v10511_v38, %v10424_v60  ;;  %v4305_v36 = vld [vmem:[#allocation5 + $0xd98] sm:$0xff]  ;;  %v3487_v7 = vadd.f32 %v3486_v44, %v10426_v22  ;;  %v4288_v38 = vld [vmem:[#allocation5 + $0xd10] sm:$0xff]  ;;  %v4326_v44 = vld [vmem:[#allocation5 + $0xe40] sm:$0xff] }
 0x2d4   : > { %6815 = vmatprep.subr.mxu0 %v4283_v56  ;;  %6849 = vmatprep.subr.mxu1 %v4317_v48  ;;  %v3527_v56 = vpop.f32.mrf.mxu1  ;;  %v4255_v48 = vld [vmem:[#allocation5 + $0xc08] sm:$0xff] }
 0x2d5   : > { %5404 = vmatprep.mubr.f32.mxu1 %v3853_v58  ;;  %6816 = vmatpush3.msra.mxu0 %v4267_v15  ;;  %v10525_v58 = vpop.f32.mrf.mxu0  ;;  %v4270_v15 = vld [vmem:[#allocation5 + $0xc80] sm:$0xff] }
 0x2d6   : > { %5474 = vmatprep.mubr.f32.mxu0 %v3815_v1  ;;  %6850 = vmatpush3.msra.mxu1 %v4301_v18  ;;  %v4304_v1 = vld [vmem:[#allocation5 + $0xd90] sm:$0xff]  ;;  %v4254_v18 = vld [vmem:[#allocation5 + $0xc00] sm:$0xff] }
 0x2d7   : > { %6817 = vmatprep.subr.mxu0 %v4282_v28  ;;  %6851 = vmatprep.subr.mxu1 %v4316_v30  ;;  %v3814_v28 = vmax.f32 %v3481_v37, 0.0  ;;  %v3529_v30 = vpop.f32.mrf.mxu1  ;;  %v4375_v37 = vld [vmem:[#allocation5 + $0xfc8] sm:$0xff] }
 0x2d8   : > { %6818 = vmatpush3.msra.mxu0 %v4266_v49  ;;  %6852 = vmatpush3.msra.mxu1 %v4300_v27  ;;  %v4303_v49 = vld [vmem:[#allocation5 + $0xd88] sm:$0xff]  ;;  %v3524_v27 = vadd.f32 %v10518_v47, %v10424_v60 }
 0x2d9   : > { %6819 = vmatprep.subr.mxu0 %v4281_v14  ;;  %5405 = vmatmul.mubr.f32.gmra.mxu1 %v3852_v53  ;;  %v3568_v14 = vpop.f32.mrf.mxu0  ;;  %v3485_v53 = vadd.f32 %v3484_v11, %v10426_v22  ;;  %v4378_v11 = vld [vmem:[#allocation5 + $0xfe0] sm:$0xff] }
 0x2da   : > { %6853 = vmatprep.subr.mxu1 %v4315_v32  ;;  %6820 = vmatpush3.msra.mxu0 %v4265_v34  ;;  %v4287_v32 = vld [vmem:[#allocation5 + $0xd08] sm:$0xff]  ;;  %v3855_v34 = vmax.f32 %v3487_v7, 0.0  ;;  %v3569_v47 = vadd.f32 %v3568_v14, %v10424_v60  ;;  %v4358_v7 = vld [vmem:[#allocation5 + $0xf40] sm:$0xff]  ;;  %v4356_v14 = vld [vmem:[#allocation5 + $0xf30] sm:$0xff] }
 0x2db   : > { %6854 = vmatpush3.msra.mxu1 %v4299_v50  ;;  %5549 = vmatprep.mubr.f32.mxu1 %v3817_v4  ;;  %v4333_v50 = vld [vmem:[#allocation5 + $0xe78] sm:$0xff]  ;;  %v3530_v4 = vadd.f32 %v3529_v30, %v10426_v22  ;;  %v4338_v30 = vld [vmem:[#allocation5 + $0xea0] sm:$0xff] }
 0x2dc   : > { %6821 = vmatprep.subr.mxu0 %v4280_v41  ;;  %6855 = vmatprep.subr.mxu1 %v4314_v17  ;;  %v4302_v41 = vld [vmem:[#allocation5 + $0xd80] sm:$0xff]  ;;  %v10532_v17 = vpop.f32.mrf.mxu1 }
 0x2dd   : > { %6822 = vmatpush3.msra.mxu0 %v4264_v35  ;;  %6856 = vmatpush3.msra.mxu1 %v4298_v23  ;;  %v4348_v35 = vld [vmem:[#allocation5 + $0xef0] sm:$0xff]  ;;  %v4286_v23 = vld [vmem:[#allocation5 + $0xd00] sm:$0xff] }
 0x2de   : > { %6823 = vmatprep.subr.mxu0 %v4279_v9  ;;  %6857 = vmatprep.subr.mxu1 %v4313_v29  ;;  %v4332_v9 = vld [vmem:[#allocation5 + $0xe70] sm:$0xff]  ;;  %v3816_v29 = vmax.f32 %v3524_v27, 0.0  ;;  %v3570_v27 = vpop.f32.mrf.mxu0 }
 0x2df   : > { %6824 = vmatpush3.msra.mxu0 %v4263_v42  ;;  %6858 = vmatpush3.msra.mxu1 %v4297_v24  ;;  %v4347_v42 = vld [vmem:[#allocation5 + $0xee8] sm:$0xff]  ;;  %v3854_v24 = vmax.f32 %v3485_v53, 0.0 }
 0x2e0   : > { %6825 = vmatprep.subr.mxu0 %v4278_v12  ;;  %6859 = vmatprep.subr.mxu1 %v4312_v33  ;;  %v4381_v12 = vld [vmem:[#allocation5 + $0xff8] sm:$0xff]  ;;  %v3857_v33 = vmax.f32 %v3530_v4, 0.0  ;;  %v4371_v53 = vld [vmem:[#allocation5 + $0xfa8] sm:$0xff]  ;;  %v4370_v4 = vld [vmem:[#allocation5 + $0xfa0] sm:$0xff] }
 0x2e1   : > { %6826 = vmatpush3.msra.mxu0 %v4262_v3  ;;  %6860 = vmatpush3.msra.mxu1 %v4296_v20  ;;  %v3611_v3 = vpop.f32.mrf.mxu1  ;;  %v4331_v20 = vld [vmem:[#allocation5 + $0xe68] sm:$0xff] }
 0x2e2   : > { %6827 = vmatprep.subr.mxu0 %v4277_v57  ;;  %6861 = vmatprep.subr.mxu1 %v4311_v62  ;;  %v3528_v57 = vadd.f32 %v3527_v56, %v10426_v22  ;;  %v3819_v62 = vmax.f32 %v3569_v47, 0.0  ;;  %v4325_v56 = vld [vmem:[#allocation5 + $0xe38] sm:$0xff]  ;;  %v4354_v47 = vld [vmem:[#allocation5 + $0xf20] sm:$0xff] }
 0x2e3   : > { %6828 = vmatpush3.msra.mxu0 %v4261_v16  ;;  %6862 = vmatpush3.msra.mxu1 %v4295_v8  ;;  %v4365_v16 = vld [vmem:[#allocation5 + $0xf78] sm:$0xff]  ;;  %v4346_v8 = vld [vmem:[#allocation5 + $0xee0] sm:$0xff] }
 0x2e4   : > { %6829 = vmatprep.subr.mxu0 %v4276_v13  ;;  %6863 = vmatprep.subr.mxu1 %v4310_v0  ;;  %v4380_v13 = vld [vmem:[#allocation5 + $0xff0] sm:$0xff]  ;;  %v4330_v0 = vld [vmem:[#allocation5 + $0xe60] sm:$0xff] }
 0x2e5   : > { %6830 = vmatpush3.msra.mxu0 %v4260_v39  ;;  %6864 = vmatpush3.msra.mxu1 %v4294_v5  ;;  %v3612_v39 = vadd.f32 %v3611_v3, %v10424_v60  ;;  %v4364_v5 = vld [vmem:[#allocation5 + $0xf70] sm:$0xff]  ;;  %v4353_v3 = vld [vmem:[#allocation5 + $0xf18] sm:$0xff] }
 0x2e6   : > { %6831 = vmatprep.subr.mxu0 %v4275_v59  ;;  %6865 = vmatprep.subr.mxu1 %v4309_v61  ;;  %v4345_v59 = vld [vmem:[#allocation5 + $0xed8] sm:$0xff]  ;;  %v4379_v61 = vld [vmem:[#allocation5 + $0xfe8] sm:$0xff] }
 0x2e7   : > { %6832 = vmatpush3.msra.mxu0 %v4259_v46  ;;  %6866 = vmatpush3.msra.mxu1 %v4293_v6  ;;  %v3856_v46 = vmax.f32 %v3528_v57, 0.0  ;;  %v4329_v6 = vld [vmem:[#allocation5 + $0xe58] sm:$0xff] }
 0x2e8   : > { %6833 = vmatprep.subr.mxu0 %v4274_v19  ;;  %6867 = vmatprep.subr.mxu1 %v4308_v43  ;;  %v4363_v19 = vld [vmem:[#allocation5 + $0xf68] sm:$0xff]  ;;  %v4344_v43 = vld [vmem:[#allocation5 + $0xed0] sm:$0xff] }
 0x2e9   : > { %6834 = vmatpush3.msra.mxu0 %v4258_v25  ;;  %6868 = vmatpush3.msra.mxu1 %v4292_v10  ;;  %v3821_v25 = vmax.f32 %v3612_v39, 0.0  ;;  %v4328_v10 = vld [vmem:[#allocation5 + $0xe50] sm:$0xff]  ;;  %v4413_v39 = vld [vmem:[#allocation5 + $0x10f8] sm:$0xff] }
 0x2ea   : > { %6835 = vmatprep.subr.mxu0 %v4273_v51  ;;  %6869 = vmatprep.subr.mxu1 %v4307_v31  ;;  %v4362_v51 = vld [vmem:[#allocation5 + $0xf60] sm:$0xff]  ;;  %v4343_v31 = vld [vmem:[#allocation5 + $0xec8] sm:$0xff] }
 0x2eb   : > { %6836 = vmatpush3.msra.mxu0 %v4257_v21  ;;  %6870 = vmatpush3.msra.mxu1 %v4291_v2  ;;  %v4377_v21 = vld [vmem:[#allocation5 + $0xfd8] sm:$0xff]  ;;  %v4327_v2 = vld [vmem:[#allocation5 + $0xe48] sm:$0xff] }
 0x2ec   : > { %6837 = vmatprep.subr.mxu0 %v4272_v55  ;;  %6871 = vmatprep.subr.mxu1 %v4306_v26  ;;  %v4361_v55 = vld [vmem:[#allocation5 + $0xf58] sm:$0xff]  ;;  %v4342_v26 = vld [vmem:[#allocation5 + $0xec0] sm:$0xff] }
 0x2ed   : > { %6838 = vmatpush3.msra.mxu0 %v4256_v54  ;;  %6872 = vmatpush3.msra.mxu1 %v4290_v45  ;;  %v4376_v54 = vld [vmem:[#allocation5 + $0xfd0] sm:$0xff] }
 0x2ee   : > { %6839 = vmatprep.subr.mxu0 %v4271_v63  ;;  %6873 = vmatprep.subr.mxu1 %v4305_v36  ;;  %v4360_v45 = vld [vmem:[#allocation5 + $0xf50] sm:$0xff]  ;;  %v4341_v63 = vld [vmem:[#allocation5 + $0xeb8] sm:$0xff]  ;;  %v4359_v36 = vld [vmem:[#allocation5 + $0xf48] sm:$0xff] }
 0x2ef   : > { %6840 = vmatpush3.msra.mxu0 %v4255_v48  ;;  %6874 = vmatpush3.msra.mxu1 %v4289_v40  ;;  %v4340_v48 = vld [vmem:[#allocation5 + $0xeb0] sm:$0xff]  ;;  %v4374_v40 = vld [vmem:[#allocation5 + $0xfc0] sm:$0xff] }
 0x2f0   : > { %6841 = vmatprep.subr.mxu0 %v4270_v15  ;;  %6875 = vmatprep.subr.mxu1 %v4304_v1  ;;  %v4324_v15 = vld [vmem:[#allocation5 + $0xe30] sm:$0xff]  ;;  %v4339_v1 = vld [vmem:[#allocation5 + $0xea8] sm:$0xff] }
 0x2f1   : > { %6842 = vmatpush3.msra.mxu0 %v4254_v18  ;;  %6876 = vmatpush3.msra.mxu1 %v4288_v38  ;;  %v4373_v18 = vld [vmem:[#allocation5 + $0xfb8] sm:$0xff]  ;;  %v4323_v38 = vld [vmem:[#allocation5 + $0xe28] sm:$0xff] }
 0x2f2   : > { %5475 = vmatmul.mubr.f32.vlgmr.msra.gmra.mxu0 %v3814_v28  ;;  %6877 = vmatprep.subr.mxu1 %v4303_v49  ;;  %v4357_v28 = vld [vmem:[#allocation5 + $0xf38] sm:$0xff]  ;;  %v4372_v49 = vld [vmem:[#allocation5 + $0xfb0] sm:$0xff] }
 0x2f3   : > { %6887 = vmatprep.subr.mxu0 %v4349_v52  ;;  %5479 = vmatprep.mubr.f32.mxu0 %v3855_v34  ;;  %v4322_v52 = vld [vmem:[#allocation5 + $0xe20] sm:$0xff]  ;;  %v4321_v34 = vld [vmem:[#allocation5 + $0xe18] sm:$0xff] }
 0x2f4   : > { %6878 = vmatpush3.msra.mxu1 %v4287_v32  ;;  %6888 = vmatpush3.msra.mxu0 %v4333_v50  ;;  %v4337_v32 = vld [vmem:[#allocation5 + $0xe98] sm:$0xff]  ;;  %v4355_v50 = vld [vmem:[#allocation5 + $0xf28] sm:$0xff] }
 0x2f5   : > { %6879 = vmatprep.subr.mxu1 %v4302_v41  ;;  %6889 = vmatprep.subr.mxu0 %v4348_v35  ;;  %v4336_v41 = vld [vmem:[#allocation5 + $0xe90] sm:$0xff] }
 0x2f6   : > { %6880 = vmatpush3.msra.mxu1 %v4286_v23  ;;  %6890 = vmatpush3.msra.mxu0 %v4332_v9  ;;  %v4320_v35 = vld [vmem:[#allocation5 + $0xe10] sm:$0xff]  ;;  %v3572_v23 = vpop.f32.mrf.mxu0  ;;  %v4335_v9 = vld [vmem:[#allocation5 + $0xe88] sm:$0xff] }
 0x2f7   : > { %5550 = vmatmul.mubr.f32.vlgmr.msra.gmra.mxu1 %v3816_v29  ;;  %5480 = vmatmul.mubr.f32.gmra.mxu0 %v3854_v24  ;;  %v3567_v29 = vadd.f32 %v10525_v58, %v10424_v60  ;;  %v4369_v24 = vld [vmem:[#allocation5 + $0xf98] sm:$0xff]  ;;  %v3573_v57 = vadd.f32 %v3572_v23, %v10426_v22  ;;  %v4352_v58 = vld [vmem:[#allocation5 + $0xf10] sm:$0xff]  ;;  %v4390_v23 = vld [vmem:[#allocation5 + $0x1040] sm:$0xff] }
 0x2f8   : > { %6891 = vmatprep.subr.mxu0 %v4347_v42  ;;  %6925 = vmatprep.subr.mxu1 %v4381_v12  ;;  %v3613_v42 = vpop.f32.mrf.mxu1  ;;  %v4319_v12 = vld [vmem:[#allocation5 + $0xe08] sm:$0xff] }
 0x2f9   : > { %5554 = vmatprep.mubr.f32.mxu1 %v3857_v33  ;;  %6892 = vmatpush3.msra.mxu0 %v4331_v20  ;;  %v10539_v33 = vpop.f32.mrf.mxu0  ;;  %v4334_v20 = vld [vmem:[#allocation5 + $0xe80] sm:$0xff] }
 0x2fa   : > { %5624 = vmatprep.mubr.f32.mxu0 %v3819_v62  ;;  %6926 = vmatpush3.msra.mxu1 %v4365_v16  ;;  %v4368_v62 = vld [vmem:[#allocation5 + $0xf90] sm:$0xff]  ;;  %v4318_v16 = vld [vmem:[#allocation5 + $0xe00] sm:$0xff] }
 0x2fb   : > { %6893 = vmatprep.subr.mxu0 %v4346_v8  ;;  %6927 = vmatprep.subr.mxu1 %v4380_v13  ;;  %v3818_v8 = vmax.f32 %v3567_v29, 0.0  ;;  %v3615_v13 = vpop.f32.mrf.mxu1  ;;  %v4439_v29 = vld [vmem:[#allocation5 + $0x11c8] sm:$0xff] }
 0x2fc   : > { %6894 = vmatpush3.msra.mxu0 %v4330_v0  ;;  %6928 = vmatpush3.msra.mxu1 %v4364_v5  ;;  %v4367_v0 = vld [vmem:[#allocation5 + $0xf88] sm:$0xff]  ;;  %v3610_v5 = vadd.f32 %v10532_v17, %v10424_v60 }
 0x2fd   : > { %6895 = vmatprep.subr.mxu0 %v4345_v59  ;;  %5555 = vmatmul.mubr.f32.gmra.mxu1 %v3856_v46  ;;  %v3654_v59 = vpop.f32.mrf.mxu0  ;;  %v3571_v46 = vadd.f32 %v3570_v27, %v10426_v22  ;;  %v4442_v27 = vld [vmem:[#allocation5 + $0x11e0] sm:$0xff] }
 0x2fe   : > { %6929 = vmatprep.subr.mxu1 %v4379_v61  ;;  %6896 = vmatpush3.msra.mxu0 %v4329_v6  ;;  %v4351_v61 = vld [vmem:[#allocation5 + $0xf08] sm:$0xff]  ;;  %v3859_v6 = vmax.f32 %v3573_v57, 0.0  ;;  %v3655_v17 = vadd.f32 %v3654_v59, %v10424_v60  ;;  %v4422_v57 = vld [vmem:[#allocation5 + $0x1140] sm:$0xff]  ;;  %v4420_v59 = vld [vmem:[#allocation5 + $0x1130] sm:$0xff] }
 0x2ff   : > { %6930 = vmatpush3.msra.mxu1 %v4363_v19  ;;  %5699 = vmatprep.mubr.f32.mxu1 %v3821_v25  ;;  %v4397_v19 = vld [vmem:[#allocation5 + $0x1078] sm:$0xff]  ;;  %v3616_v25 = vadd.f32 %v3615_v13, %v10426_v22  ;;  %v4402_v13 = vld [vmem:[#allocation5 + $0x10a0] sm:$0xff] }
 0x300   : > { %6897 = vmatprep.subr.mxu0 %v4344_v43  ;;  %6931 = vmatprep.subr.mxu1 %v4378_v11  ;;  %v4366_v43 = vld [vmem:[#allocation5 + $0xf80] sm:$0xff]  ;;  %v10546_v11 = vpop.f32.mrf.mxu1 }
 0x301   : > { %6898 = vmatpush3.msra.mxu0 %v4328_v10  ;;  %6932 = vmatpush3.msra.mxu1 %v4362_v51  ;;  %v4412_v10 = vld [vmem:[#allocation5 + $0x10f0] sm:$0xff]  ;;  %v4350_v51 = vld [vmem:[#allocation5 + $0xf00] sm:$0xff] }
 0x302   : > { %6899 = vmatprep.subr.mxu0 %v4343_v31  ;;  %6933 = vmatprep.subr.mxu1 %v4377_v21  ;;  %v4396_v31 = vld [vmem:[#allocation5 + $0x1070] sm:$0xff]  ;;  %v3820_v21 = vmax.f32 %v3610_v5, 0.0  ;;  %v3656_v5 = vpop.f32.mrf.mxu0 }
 0x303   : > { %6900 = vmatpush3.msra.mxu0 %v4327_v2  ;;  %6934 = vmatpush3.msra.mxu1 %v4361_v55  ;;  %v4411_v2 = vld [vmem:[#allocation5 + $0x10e8] sm:$0xff]  ;;  %v3858_v55 = vmax.f32 %v3571_v46, 0.0 }
 0x304   : > { %6901 = vmatprep.subr.mxu0 %v4342_v26  ;;  %6935 = vmatprep.subr.mxu1 %v4376_v54  ;;  %v4445_v26 = vld [vmem:[#allocation5 + $0x11f8] sm:$0xff]  ;;  %v3861_v54 = vmax.f32 %v3616_v25, 0.0  ;;  %v4435_v46 = vld [vmem:[#allocation5 + $0x11a8] sm:$0xff]  ;;  %v4434_v25 = vld [vmem:[#allocation5 + $0x11a0] sm:$0xff] }
 0x305   : > { %6902 = vmatpush3.msra.mxu0 %v4326_v44  ;;  %6936 = vmatpush3.msra.mxu1 %v4360_v45  ;;  %v3697_v44 = vpop.f32.mrf.mxu1  ;;  %v4395_v45 = vld [vmem:[#allocation5 + $0x1068] sm:$0xff] }
 0x306   : > { %6903 = vmatprep.subr.mxu0 %v4341_v63  ;;  %6937 = vmatprep.subr.mxu1 %v4375_v37  ;;  %v3614_v63 = vadd.f32 %v3613_v42, %v10426_v22  ;;  %v3823_v37 = vmax.f32 %v3655_v17, 0.0  ;;  %v4389_v42 = vld [vmem:[#allocation5 + $0x1038] sm:$0xff]  ;;  %v4418_v17 = vld [vmem:[#allocation5 + $0x1120] sm:$0xff] }
 0x307   : > { %6904 = vmatpush3.msra.mxu0 %v4325_v56  ;;  %6938 = vmatpush3.msra.mxu1 %v4359_v36  ;;  %v4429_v56 = vld [vmem:[#allocation5 + $0x1178] sm:$0xff]  ;;  %v4410_v36 = vld [vmem:[#allocation5 + $0x10e0] sm:$0xff] }
 0x308   : > { %6905 = vmatprep.subr.mxu0 %v4340_v48  ;;  %6939 = vmatprep.subr.mxu1 %v4374_v40  ;;  %v4444_v48 = vld [vmem:[#allocation5 + $0x11f0] sm:$0xff]  ;;  %v4394_v40 = vld [vmem:[#allocation5 + $0x1060] sm:$0xff] }
 0x309   : > { %6906 = vmatpush3.msra.mxu0 %v4324_v15  ;;  %6940 = vmatpush3.msra.mxu1 %v4358_v7  ;;  %v3698_v15 = vadd.f32 %v3697_v44, %v10424_v60  ;;  %v4428_v7 = vld [vmem:[#allocation5 + $0x1170] sm:$0xff]  ;;  %v4417_v44 = vld [vmem:[#allocation5 + $0x1118] sm:$0xff] }
 0x30a   : > { %6907 = vmatprep.subr.mxu0 %v4339_v1  ;;  %6941 = vmatprep.subr.mxu1 %v4373_v18  ;;  %v4409_v1 = vld [vmem:[#allocation5 + $0x10d8] sm:$0xff]  ;;  %v4443_v18 = vld [vmem:[#allocation5 + $0x11e8] sm:$0xff] }
 0x30b   : > { %6908 = vmatpush3.msra.mxu0 %v4323_v38  ;;  %6942 = vmatpush3.msra.mxu1 %v4357_v28  ;;  %v3860_v38 = vmax.f32 %v3614_v63, 0.0  ;;  %v4393_v28 = vld [vmem:[#allocation5 + $0x1058] sm:$0xff] }
 0x30c   : > { %6909 = vmatprep.subr.mxu0 %v4338_v30  ;;  %6943 = vmatprep.subr.mxu1 %v4372_v49  ;;  %v4427_v30 = vld [vmem:[#allocation5 + $0x1168] sm:$0xff]  ;;  %v4408_v49 = vld [vmem:[#allocation5 + $0x10d0] sm:$0xff] }
 0x30d   : > { %6910 = vmatpush3.msra.mxu0 %v4322_v52  ;;  %6944 = vmatpush3.msra.mxu1 %v4356_v14  ;;  %v3825_v52 = vmax.f32 %v3698_v15, 0.0  ;;  %v4392_v14 = vld [vmem:[#allocation5 + $0x1050] sm:$0xff]  ;;  %v4477_v15 = vld [vmem:[#allocation5 + $0x12f8] sm:$0xff] }
 0x30e   : > { %6911 = vmatprep.subr.mxu0 %v4337_v32  ;;  %6945 = vmatprep.subr.mxu1 %v4371_v53  ;;  %v4426_v32 = vld [vmem:[#allocation5 + $0x1160] sm:$0xff]  ;;  %v4407_v53 = vld [vmem:[#allocation5 + $0x10c8] sm:$0xff] }
 0x30f   : > { %6912 = vmatpush3.msra.mxu0 %v4321_v34  ;;  %6946 = vmatpush3.msra.mxu1 %v4355_v50  ;;  %v4441_v34 = vld [vmem:[#allocation5 + $0x11d8] sm:$0xff]  ;;  %v4391_v50 = vld [vmem:[#allocation5 + $0x1048] sm:$0xff] }
 0x310   : > { %6913 = vmatprep.subr.mxu0 %v4336_v41  ;;  %6947 = vmatprep.subr.mxu1 %v4370_v4  ;;  %v4425_v41 = vld [vmem:[#allocation5 + $0x1158] sm:$0xff]  ;;  %v4406_v4 = vld [vmem:[#allocation5 + $0x10c0] sm:$0xff] }
 0x311   : > { %6914 = vmatpush3.msra.mxu0 %v4320_v35  ;;  %6948 = vmatpush3.msra.mxu1 %v4354_v47  ;;  %v4440_v35 = vld [vmem:[#allocation5 + $0x11d0] sm:$0xff] }
 0x312   : > { %6915 = vmatprep.subr.mxu0 %v4335_v9  ;;  %6949 = vmatprep.subr.mxu1 %v4369_v24  ;;  %v4424_v47 = vld [vmem:[#allocation5 + $0x1150] sm:$0xff]  ;;  %v4405_v9 = vld [vmem:[#allocation5 + $0x10b8] sm:$0xff]  ;;  %v4423_v24 = vld [vmem:[#allocation5 + $0x1148] sm:$0xff] }
 0x313   : > { %6916 = vmatpush3.msra.mxu0 %v4319_v12  ;;  %6950 = vmatpush3.msra.mxu1 %v4353_v3  ;;  %v4404_v12 = vld [vmem:[#allocation5 + $0x10b0] sm:$0xff]  ;;  %v4438_v3 = vld [vmem:[#allocation5 + $0x11c0] sm:$0xff] }
 0x314   : > { %6917 = vmatprep.subr.mxu0 %v4334_v20  ;;  %6951 = vmatprep.subr.mxu1 %v4368_v62  ;;  %v4388_v20 = vld [vmem:[#allocation5 + $0x1030] sm:$0xff]  ;;  %v4403_v62 = vld [vmem:[#allocation5 + $0x10a8] sm:$0xff] }
 0x315   : > { %6918 = vmatpush3.msra.mxu0 %v4318_v16  ;;  %6952 = vmatpush3.msra.mxu1 %v4352_v58  ;;  %v4437_v16 = vld [vmem:[#allocation5 + $0x11b8] sm:$0xff]  ;;  %v4387_v58 = vld [vmem:[#allocation5 + $0x1028] sm:$0xff] }
 0x316   : > { %5625 = vmatmul.mubr.f32.vlgmr.msra.gmra.mxu0 %v3818_v8  ;;  %6953 = vmatprep.subr.mxu1 %v4367_v0  ;;  %v4421_v8 = vld [vmem:[#allocation5 + $0x1138] sm:$0xff]  ;;  %v4436_v0 = vld [vmem:[#allocation5 + $0x11b0] sm:$0xff] }
 0x317   : > { %6963 = vmatprep.subr.mxu0 %v4413_v39  ;;  %5629 = vmatprep.mubr.f32.mxu0 %v3859_v6  ;;  %v4386_v39 = vld [vmem:[#allocation5 + $0x1020] sm:$0xff]  ;;  %v4385_v6 = vld [vmem:[#allocation5 + $0x1018] sm:$0xff] }
 0x318   : > { %6954 = vmatpush3.msra.mxu1 %v4351_v61  ;;  %6964 = vmatpush3.msra.mxu0 %v4397_v19  ;;  %v4401_v61 = vld [vmem:[#allocation5 + $0x1098] sm:$0xff]  ;;  %v4419_v19 = vld [vmem:[#allocation5 + $0x1128] sm:$0xff] }
 0x319   : > { %6955 = vmatprep.subr.mxu1 %v4366_v43  ;;  %6965 = vmatprep.subr.mxu0 %v4412_v10  ;;  %v4400_v43 = vld [vmem:[#allocation5 + $0x1090] sm:$0xff] }
 0x31a   : > { %6956 = vmatpush3.msra.mxu1 %v4350_v51  ;;  %6966 = vmatpush3.msra.mxu0 %v4396_v31  ;;  %v4384_v10 = vld [vmem:[#allocation5 + $0x1010] sm:$0xff]  ;;  %v3658_v51 = vpop.f32.mrf.mxu0  ;;  %v4399_v31 = vld [vmem:[#allocation5 + $0x1088] sm:$0xff] }
 0x31b   : > { %5700 = vmatmul.mubr.f32.vlgmr.msra.gmra.mxu1 %v3820_v21  ;;  %5630 = vmatmul.mubr.f32.gmra.mxu0 %v3858_v55  ;;  %v3653_v21 = vadd.f32 %v10539_v33, %v10424_v60  ;;  %v4433_v55 = vld [vmem:[#allocation5 + $0x1198] sm:$0xff]  ;;  %v3659_v63 = vadd.f32 %v3658_v51, %v10426_v22  ;;  %v4416_v33 = vld [vmem:[#allocation5 + $0x1110] sm:$0xff]  ;;  %v4454_v51 = vld [vmem:[#allocation5 + $0x1240] sm:$0xff] }
 0x31c   : > { %6967 = vmatprep.subr.mxu0 %v4411_v2  ;;  %7001 = vmatprep.subr.mxu1 %v4445_v26  ;;  %v3699_v2 = vpop.f32.mrf.mxu1  ;;  %v4383_v26 = vld [vmem:[#allocation5 + $0x1008] sm:$0xff] }
 0x31d   : > { %5704 = vmatprep.mubr.f32.mxu1 %v3861_v54  ;;  %6968 = vmatpush3.msra.mxu0 %v4395_v45  ;;  %v10553_v54 = vpop.f32.mrf.mxu0  ;;  %v4398_v45 = vld [vmem:[#allocation5 + $0x1080] sm:$0xff] }
 0x31e   : > { %5774 = vmatprep.mubr.f32.mxu0 %v3823_v37  ;;  %7002 = vmatpush3.msra.mxu1 %v4429_v56  ;;  %v4432_v37 = vld [vmem:[#allocation5 + $0x1190] sm:$0xff]  ;;  %v4382_v56 = vld [vmem:[#allocation5 + $0x1000] sm:$0xff] }
 0x31f   : > { %6969 = vmatprep.subr.mxu0 %v4410_v36  ;;  %7003 = vmatprep.subr.mxu1 %v4444_v48  ;;  %v3822_v36 = vmax.f32 %v3653_v21, 0.0  ;;  %v3701_v48 = vpop.f32.mrf.mxu1  ;;  %v4503_v21 = vld [vmem:[#allocation5 + $0x13c8] sm:$0xff] }
 0x320   : > { %6970 = vmatpush3.msra.mxu0 %v4394_v40  ;;  %7004 = vmatpush3.msra.mxu1 %v4428_v7  ;;  %v4431_v40 = vld [vmem:[#allocation5 + $0x1188] sm:$0xff]  ;;  %v3696_v7 = vadd.f32 %v10546_v11, %v10424_v60 }
 0x321   : > { %6971 = vmatprep.subr.mxu0 %v4409_v1  ;;  %5705 = vmatmul.mubr.f32.gmra.mxu1 %v3860_v38  ;;  %v3740_v1 = vpop.f32.mrf.mxu0  ;;  %v3657_v38 = vadd.f32 %v3656_v5, %v10426_v22  ;;  %v4506_v5 = vld [vmem:[#allocation5 + $0x13e0] sm:$0xff] }
 0x322   : > { %7005 = vmatprep.subr.mxu1 %v4443_v18  ;;  %6972 = vmatpush3.msra.mxu0 %v4393_v28  ;;  %v4415_v18 = vld [vmem:[#allocation5 + $0x1108] sm:$0xff]  ;;  %v3863_v28 = vmax.f32 %v3659_v63, 0.0  ;;  %v3741_v11 = vadd.f32 %v3740_v1, %v10424_v60  ;;  %v4486_v63 = vld [vmem:[#allocation5 + $0x1340] sm:$0xff]  ;;  %v4484_v1 = vld [vmem:[#allocation5 + $0x1330] sm:$0xff] }
 0x323   : > { %7006 = vmatpush3.msra.mxu1 %v4427_v30  ;;  %5849 = vmatprep.mubr.f32.mxu1 %v3825_v52  ;;  %v4461_v30 = vld [vmem:[#allocation5 + $0x1278] sm:$0xff]  ;;  %v3702_v52 = vadd.f32 %v3701_v48, %v10426_v22  ;;  %v4466_v48 = vld [vmem:[#allocation5 + $0x12a0] sm:$0xff] }
 0x324   : > { %6973 = vmatprep.subr.mxu0 %v4408_v49  ;;  %7007 = vmatprep.subr.mxu1 %v4442_v27  ;;  %v4430_v49 = vld [vmem:[#allocation5 + $0x1180] sm:$0xff]  ;;  %v10560_v27 = vpop.f32.mrf.mxu1 }
 0x325   : > { %6974 = vmatpush3.msra.mxu0 %v4392_v14  ;;  %7008 = vmatpush3.msra.mxu1 %v4426_v32  ;;  %v4476_v14 = vld [vmem:[#allocation5 + $0x12f0] sm:$0xff]  ;;  %v4414_v32 = vld [vmem:[#allocation5 + $0x1100] sm:$0xff] }
 0x326   : > { %6975 = vmatprep.subr.mxu0 %v4407_v53  ;;  %7009 = vmatprep.subr.mxu1 %v4441_v34  ;;  %v4460_v53 = vld [vmem:[#allocation5 + $0x1270] sm:$0xff]  ;;  %v3824_v34 = vmax.f32 %v3696_v7, 0.0  ;;  %v4450_v7 = vld [vmem:[#allocation5 + $0x1220] sm:$0xff] }
 0x327   : > { %6976 = vmatpush3.msra.mxu0 %v4391_v50  ;;  %7010 = vmatpush3.msra.mxu1 %v4425_v41  ;;  %v4475_v50 = vld [vmem:[#allocation5 + $0x12e8] sm:$0xff]  ;;  %v3862_v41 = vmax.f32 %v3657_v38, 0.0 }
 0x328   : > { %6977 = vmatprep.subr.mxu0 %v4406_v4  ;;  %7011 = vmatprep.subr.mxu1 %v4440_v35  ;;  %v4509_v4 = vld [vmem:[#allocation5 + $0x13f8] sm:$0xff]  ;;  %v3865_v35 = vmax.f32 %v3702_v52, 0.0  ;;  %v4499_v38 = vld [vmem:[#allocation5 + $0x13a8] sm:$0xff] }
 0x329   : > { %6978 = vmatpush3.msra.mxu0 %v4390_v23  ;;  %7012 = vmatpush3.msra.mxu1 %v4424_v47  ;;  %v3783_v23 = vpop.f32.mrf.mxu1  ;;  %v4459_v47 = vld [vmem:[#allocation5 + $0x1268] sm:$0xff] }
 0x32a   : > { %6979 = vmatprep.subr.mxu0 %v4405_v9  ;;  %7013 = vmatprep.subr.mxu1 %v4439_v29  ;;  %v3700_v9 = vadd.f32 %v3699_v2, %v10426_v22  ;;  %v3827_v29 = vmax.f32 %v3741_v11, 0.0  ;;  %v4453_v2 = vld [vmem:[#allocation5 + $0x1238] sm:$0xff] }
 0x32b   : > { %6980 = vmatpush3.msra.mxu0 %v4389_v42  ;;  %7014 = vmatpush3.msra.mxu1 %v4423_v24  ;;  %v4493_v42 = vld [vmem:[#allocation5 + $0x1378] sm:$0xff]  ;;  %v4474_v24 = vld [vmem:[#allocation5 + $0x12e0] sm:$0xff]  ;;  %v3785_v11 = vpop.f32.mrf.mxu1 }
 0x32c   : > { %6981 = vmatprep.subr.mxu0 %v4404_v12  ;;  %7015 = vmatprep.subr.mxu1 %v4438_v3  ;;  %v4508_v12 = vld [vmem:[#allocation5 + $0x13f0] sm:$0xff]  ;;  %v4458_v3 = vld [vmem:[#allocation5 + $0x1260] sm:$0xff] }
 0x32d   : > { %6982 = vmatpush3.msra.mxu0 %v4388_v20  ;;  %7016 = vmatpush3.msra.mxu1 %v4422_v57  ;;  %v3784_v20 = vadd.f32 %v3783_v23, %v10424_v60  ;;  %v4492_v57 = vld [vmem:[#allocation5 + $0x1370] sm:$0xff]  ;;  %v4481_v23 = vld [vmem:[#allocation5 + $0x1318] sm:$0xff] }
 0x32e   : > { %6983 = vmatprep.subr.mxu0 %v4403_v62  ;;  %7017 = vmatprep.subr.mxu1 %v4437_v16  ;;  %v4473_v62 = vld [vmem:[#allocation5 + $0x12d8] sm:$0xff]  ;;  %v4507_v16 = vld [vmem:[#allocation5 + $0x13e8] sm:$0xff] }
 0x32f   : > { %6984 = vmatpush3.msra.mxu0 %v4387_v58  ;;  %7018 = vmatpush3.msra.mxu1 %v4421_v8  ;;  %v3864_v58 = vmax.f32 %v3700_v9, 0.0  ;;  %v4457_v8 = vld [vmem:[#allocation5 + $0x1258] sm:$0xff]  ;;  %v4496_v9 = vld [vmem:[#allocation5 + $0x1390] sm:$0xff] }
 0x330   : > { %6985 = vmatprep.subr.mxu0 %v4402_v13  ;;  %7019 = vmatprep.subr.mxu1 %v4436_v0  ;;  %v4491_v13 = vld [vmem:[#allocation5 + $0x1368] sm:$0xff]  ;;  %v4472_v0 = vld [vmem:[#allocation5 + $0x12d0] sm:$0xff] }
 0x331   : > { %6986 = vmatpush3.msra.mxu0 %v4386_v39  ;;  %7020 = vmatpush3.msra.mxu1 %v4420_v59  ;;  %v3829_v39 = vmax.f32 %v3784_v20, 0.0  ;;  %v4456_v59 = vld [vmem:[#allocation5 + $0x1250] sm:$0xff]  ;;  %v3782_v20 = vadd.f32 %v10560_v27, %v10424_v60 }
 0x332   : > { %6987 = vmatprep.subr.mxu0 %v4401_v61  ;;  %7021 = vmatprep.subr.mxu1 %v4435_v46  ;;  %v4490_v61 = vld [vmem:[#allocation5 + $0x1360] sm:$0xff]  ;;  %v4471_v46 = vld [vmem:[#allocation5 + $0x12c8] sm:$0xff] }
 0x333   : > { %6988 = vmatpush3.msra.mxu0 %v4385_v6  ;;  %7022 = vmatpush3.msra.mxu1 %v4419_v19  ;;  %v4505_v6 = vld [vmem:[#allocation5 + $0x13d8] sm:$0xff]  ;;  %v4455_v19 = vld [vmem:[#allocation5 + $0x1248] sm:$0xff] }
 0x334   : > { %6989 = vmatprep.subr.mxu0 %v4400_v43  ;;  %7023 = vmatprep.subr.mxu1 %v4434_v25  ;;  %v4489_v43 = vld [vmem:[#allocation5 + $0x1358] sm:$0xff]  ;;  %v4470_v25 = vld [vmem:[#allocation5 + $0x12c0] sm:$0xff] }
 0x335   : > { %6990 = vmatpush3.msra.mxu0 %v4384_v10  ;;  %7024 = vmatpush3.msra.mxu1 %v4418_v17  ;;  %v4504_v10 = vld [vmem:[#allocation5 + $0x13d0] sm:$0xff] }
 0x336   : > { %6991 = vmatprep.subr.mxu0 %v4399_v31  ;;  %7025 = vmatprep.subr.mxu1 %v4433_v55  ;;  %v4488_v17 = vld [vmem:[#allocation5 + $0x1350] sm:$0xff]  ;;  %v4469_v31 = vld [vmem:[#allocation5 + $0x12b8] sm:$0xff]  ;;  %v4487_v55 = vld [vmem:[#allocation5 + $0x1348] sm:$0xff] }
 0x337   : > { %6992 = vmatpush3.msra.mxu0 %v4383_v26  ;;  %7026 = vmatpush3.msra.mxu1 %v4417_v44  ;;  %v4468_v26 = vld [vmem:[#allocation5 + $0x12b0] sm:$0xff]  ;;  %v4502_v44 = vld [vmem:[#allocation5 + $0x13c0] sm:$0xff] }
 0x338   : > { %6993 = vmatprep.subr.mxu0 %v4398_v45  ;;  %7027 = vmatprep.subr.mxu1 %v4432_v37  ;;  %v4452_v45 = vld [vmem:[#allocation5 + $0x1230] sm:$0xff]  ;;  %v4467_v37 = vld [vmem:[#allocation5 + $0x12a8] sm:$0xff] }
 0x339   : > { %6994 = vmatpush3.msra.mxu0 %v4382_v56  ;;  %7028 = vmatpush3.msra.mxu1 %v4416_v33  ;;  %v4501_v56 = vld [vmem:[#allocation5 + $0x13b8] sm:$0xff]  ;;  %v4451_v33 = vld [vmem:[#allocation5 + $0x1228] sm:$0xff] }
 0x33a   : > { %5775 = vmatmul.mubr.f32.vlgmr.msra.gmra.mxu0 %v3822_v36  ;;  %7029 = vmatprep.subr.mxu1 %v4431_v40  ;;  %v4485_v36 = vld [vmem:[#allocation5 + $0x1338] sm:$0xff]  ;;  %v3742_v40 = vpop.f32.mrf.mxu0 }
 0x33b   : > { %7039 = vmatprep.subr.mxu0 %v4477_v15  ;;  %5779 = vmatprep.mubr.f32.mxu0 %v3863_v28  ;;  %v4500_v15 = vld [vmem:[#allocation5 + $0x13b0] sm:$0xff]  ;;  %v4449_v28 = vld [vmem:[#allocation5 + $0x1218] sm:$0xff] }
 0x33c   : > { %7030 = vmatpush3.msra.mxu1 %v4415_v18  ;;  %7040 = vmatpush3.msra.mxu0 %v4461_v30  ;;  %v4465_v18 = vld [vmem:[#allocation5 + $0x1298] sm:$0xff]  ;;  %v4483_v30 = vld [vmem:[#allocation5 + $0x1328] sm:$0xff]  ;;  %v3744_v52 = vpop.f32.mrf.mxu0 }
 0x33d   : > { %7031 = vmatprep.subr.mxu1 %v4430_v49  ;;  %7041 = vmatprep.subr.mxu0 %v4476_v14  ;;  %v4464_v49 = vld [vmem:[#allocation5 + $0x1290] sm:$0xff]  ;;  %v4498_v14 = vld [vmem:[#allocation5 + $0x13a0] sm:$0xff] }
 0x33e   : > { %7032 = vmatpush3.msra.mxu1 %v4414_v32  ;;  %7042 = vmatpush3.msra.mxu0 %v4460_v53  ;;  %v4448_v32 = vld [vmem:[#allocation5 + $0x1210] sm:$0xff]  ;;  %v4482_v53 = vld [vmem:[#allocation5 + $0x1320] sm:$0xff]  ;;  %v10573_v27 = vpop.f32.mrf.mxu0 }
 0x33f   : > { %5850 = vmatmul.mubr.f32.vlgmr.msra.gmra.mxu1 %v3824_v34  ;;  %5780 = vmatmul.mubr.f32.gmra.mxu0 %v3862_v41  ;;  %v4463_v34 = vld [vmem:[#allocation5 + $0x1288] sm:$0xff]  ;;  %v4497_v41 = vld [vmem:[#allocation5 + $0x1398] sm:$0xff] }
 0x340   : > { %7043 = vmatprep.subr.mxu0 %v4475_v50  ;;  %7077 = vmatprep.subr.mxu1 %v4509_v4  ;;  %v3739_v50 = vadd.f32 %v10553_v54, %v10424_v60  ;;  %v4447_v4 = vld [vmem:[#allocation5 + $0x1208] sm:$0xff]  ;;  %v3743_v54 = vadd.f32 %v3742_v40, %v10426_v22 }
 0x341   : > { %5854 = vmatprep.mubr.f32.mxu1 %v3865_v35  ;;  %7044 = vmatpush3.msra.mxu0 %v4459_v47  ;;  %v3745_v35 = vadd.f32 %v3744_v52, %v10426_v22  ;;  %v4462_v47 = vld [vmem:[#allocation5 + $0x1280] sm:$0xff] }
 0x342   : > { %5924 = vmatprep.mubr.f32.mxu0 %v3827_v29  ;;  %7078 = vmatpush3.msra.mxu1 %v4493_v42  ;;  %v4446_v29 = vld [vmem:[#allocation5 + $0x1200] sm:$0xff]  ;;  %v3787_v42 = vpop.f32.mrf.mxu1 }
 0x343   : > { %7045 = vmatprep.subr.mxu0 %v4474_v24  ;;  %7079 = vmatprep.subr.mxu1 %v4508_v12  ;;  %v4480_v24 = vld [vmem:[#allocation5 + $0x1310] sm:$0xff]  ;;  %v3826_v12 = vmax.f32 %v3739_v50, 0.0 }
 0x344   : > { %7046 = vmatpush3.msra.mxu0 %v4458_v3  ;;  %7080 = vmatpush3.msra.mxu1 %v4492_v57  ;;  %v4495_v3 = vld [vmem:[#allocation5 + $0x1388] sm:$0xff]  ;;  %v3867_v57 = vmax.f32 %v3745_v35, 0.0 }
 0x345   : > { %7047 = vmatprep.subr.mxu0 %v4473_v62  ;;  %5855 = vmatmul.mubr.f32.gmra.mxu1 %v3864_v58  ;;  %v4479_v62 = vld [vmem:[#allocation5 + $0x1308] sm:$0xff]  ;;  %v4494_v58 = vld [vmem:[#allocation5 + $0x1380] sm:$0xff] }
 0x346   : > { %7081 = vmatprep.subr.mxu1 %v4507_v16  ;;  %7048 = vmatpush3.msra.mxu0 %v4457_v8  ;;  %v3788_v16 = vadd.f32 %v3787_v42, %v10426_v22  ;;  %v4478_v8 = vld [vmem:[#allocation5 + $0x1300] sm:$0xff] }
 0x347   : > { %7082 = vmatpush3.msra.mxu1 %v4491_v13  ;;  %5999 = vmatprep.mubr.f32.mxu1 %v3829_v39  ;;  %v3866_v13 = vmax.f32 %v3743_v54, 0.0  ;;  %v3786_v39 = vadd.f32 %v3785_v11, %v10426_v22  ;;  %v6010_v22 = vld [vmem:[%s10652_s3] sm:$0xff] }
 0x348   : > { %7049 = vmatprep.subr.mxu0 %v4472_v0  ;;  %7083 = vmatprep.subr.mxu1 %v4506_v5  ;;  %v3828_v0 = vmax.f32 %v3782_v20, 0.0  ;;  %v3869_v5 = vmax.f32 %v3788_v16, 0.0 }
 0x349   : > { %7050 = vmatpush3.msra.mxu0 %v4456_v59  ;;  %7084 = vmatpush3.msra.mxu1 %v4490_v61  ;;  %v3868_v60 = vmax.f32 %v3786_v39, 0.0  ;;  %v10575_v59 = vpop.f32.mrf.mxu0  ;;  %v6425_v61 = vpop.f32.mrf.mxu1 }
 0x34a   : > { %7051 = vmatprep.subr.mxu0 %v4471_v46  ;;  %7085 = vmatprep.subr.mxu1 %v4505_v6 }
 0x34b   : > { %7052 = vmatpush3.msra.mxu0 %v4455_v19  ;;  %7086 = vmatpush3.msra.mxu1 %v4489_v43  ;;  %v6390_v46 = vpop.f32.mrf.mxu0  ;;  %v6426_v6 = vpop.f32.mrf.mxu1 }
 0x34c   : > { %7053 = vmatprep.subr.mxu0 %v4470_v25  ;;  %7087 = vmatprep.subr.mxu1 %v4504_v10 }
 0x34d   : > { %7054 = vmatpush3.msra.mxu0 %v4454_v51  ;;  %7088 = vmatpush3.msra.mxu1 %v4488_v17  ;;  %v6391_v19 = vpop.f32.mrf.mxu0  ;;  %v6428_v43 = vpop.f32.mrf.mxu1 }
 0x34e   : > { %7055 = vmatprep.subr.mxu0 %v4469_v31  ;;  %7089 = vmatprep.subr.mxu1 %v4503_v21 }
 0x34f   : > { %7056 = vmatpush3.msra.mxu0 %v4453_v2  ;;  %7090 = vmatpush3.msra.mxu1 %v4487_v55  ;;  %v6463_v25 = vpop.f32.mrf.mxu0  ;;  %v6429_v10 = vpop.f32.mrf.mxu1 }
 0x350   : > { %7057 = vmatprep.subr.mxu0 %v4468_v26  ;;  %7091 = vmatprep.subr.mxu1 %v4502_v44 }
 0x351   : > { %7058 = vmatpush3.msra.mxu0 %v4452_v45  ;;  %7092 = vmatpush3.msra.mxu1 %v4486_v63  ;;  %v6464_v51 = vpop.f32.mrf.mxu0  ;;  %v6501_v17 = vpop.f32.mrf.mxu1 }
 0x352   : > { %7059 = vmatprep.subr.mxu0 %v4467_v37  ;;  %7093 = vmatprep.subr.mxu1 %v4501_v56 }
 0x353   : > { %7060 = vmatpush3.msra.mxu0 %v4451_v33  ;;  %7094 = vmatpush3.msra.mxu1 %v4485_v36  ;;  %v6466_v31 = vpop.f32.mrf.mxu0  ;;  %v6502_v21 = vpop.f32.mrf.mxu1 }
 0x354   : > { %7061 = vmatprep.subr.mxu0 %v4466_v48  ;;  %7095 = vmatprep.subr.mxu1 %v4500_v15 }
 0x355   : > { %7062 = vmatpush3.msra.mxu0 %v4450_v7  ;;  %7096 = vmatpush3.msra.mxu1 %v4484_v1  ;;  %v6467_v2 = vpop.f32.mrf.mxu0  ;;  %v6504_v55 = vpop.f32.mrf.mxu1 }
 0x356   : > { %7063 = vmatprep.subr.mxu0 %v4465_v18  ;;  %7097 = vmatprep.subr.mxu1 %v4499_v38  ;;  %v6468_v39 = vadd.f32 %v6467_v2, %v6466_v31 }
 0x357   : > { %7064 = vmatpush3.msra.mxu0 %v4449_v28  ;;  %7098 = vmatpush3.msra.mxu1 %v4483_v30  ;;  %v6539_v26 = vpop.f32.mrf.mxu0  ;;  %v6505_v44 = vpop.f32.mrf.mxu1 }
 0x358   : > { %7065 = vmatprep.subr.mxu0 %v4464_v49  ;;  %7099 = vmatprep.subr.mxu1 %v4498_v14 }
 0x359   : > { %7066 = vmatpush3.msra.mxu0 %v4448_v32  ;;  %7100 = vmatpush3.msra.mxu1 %v4482_v53  ;;  %v6540_v45 = vpop.f32.mrf.mxu0  ;;  %v6577_v63 = vpop.f32.mrf.mxu1 }
 0x35a   : > { %7067 = vmatprep.subr.mxu0 %v4463_v34  ;;  %7101 = vmatprep.subr.mxu1 %v4497_v41 }
 0x35b   : > { %7068 = vmatpush3.msra.mxu0 %v4447_v4  ;;  %7102 = vmatpush3.msra.mxu1 %v4481_v23  ;;  %v6542_v37 = vpop.f32.mrf.mxu0  ;;  %v6578_v56 = vpop.f32.mrf.mxu1 }
 0x35c   : > { %7069 = vmatprep.subr.mxu0 %v4462_v47  ;;  %7103 = vmatprep.subr.mxu1 %v4496_v9  ;;  %v6579_v2 = vadd.f32 %v6578_v56, %v6577_v63 }
 0x35d   : > { %7070 = vmatpush3.msra.mxu0 %v4446_v29  ;;  %7104 = vmatpush3.msra.mxu1 %v4480_v24  ;;  %v6543_v33 = vpop.f32.mrf.mxu0  ;;  %v6580_v36 = vpop.f32.mrf.mxu1 }
 0x35e   : > { %5925 = vmatmul.mubr.f32.vlgmr.msra.gmra.mxu0 %v3826_v12  ;;  %7105 = vmatprep.subr.mxu1 %v4495_v3 }
 0x35f   : > { %5929 = vmatprep.mubr.f32.mxu0 %v3867_v57  ;;  %7106 = vmatpush3.msra.mxu1 %v4479_v62  ;;  %v6615_v48 = vpop.f32.mrf.mxu0  ;;  %v6581_v40 = vpop.f32.mrf.mxu1 }
 0x360   : > { %7107 = vmatprep.subr.mxu1 %v4494_v58  ;;  %v6430_v58 = vadd.f32 %v6429_v10, %v6428_v43 }
 0x361   : > { %7108 = vmatpush3.msra.mxu1 %v4478_v8  ;;  %v6616_v15 = vpop.f32.mrf.mxu0  ;;  %v10581_v7 = vpop.f32.mrf.mxu1 }
 0x362   : > { %5930 = vmatmul.mubr.f32.gmra.mxu0 %v3866_v13  ;;  %6000 = vmatmul.mubr.f32.vlgmr.msra.gmra.mxu1 %v3828_v0  ;;  %v6392_v13 = vadd.f32 %v6391_v19, %v6390_v46  ;;  %v6427_v0 = vadd.f32 %v6426_v6, %v6425_v61  ;;  %v6541_v61 = vadd.f32 %v6540_v45, %v6539_v26 }
 0x363   : > { %6004 = vmatprep.mubr.f32.mxu1 %v3869_v5  ;;  %7131 = vmatprep.mubr.msk.f32.mxu0 %vm6038_vm11, %v6010_v22  ;;  %v6618_v1 = vpop.f32.mrf.mxu0  ;;  %v6654_v18 = vpop.f32.mrf.mxu1  ;;  %v6389_v22 = vadd.f32 %v10575_v59, %v10573_v27  ;;  %v6582_v6 = vadd.f32 %v6581_v40, %v6580_v36 }
 0x365   : > { %v6619_v38 = vpop.f32.mrf.mxu0  ;;  %v6656_v28 = vpop.f32.mrf.mxu1 }
 0x366   : > { %6005 = vmatmul.mubr.f32.gmra.mxu1 %v3868_v60 }
 0x367   : > { %v6657_v49 = vpop.f32.mrf.mxu1 }
 0x36a   : > { %v10583_v30 = vpop.f32.mrf.mxu0 }
 0x36c   : > { %v6692_v52 = vpop.f32.mrf.mxu0 }
 0x36d   : > { %v6693_v45 = vadd.f32 %v6692_v52, %v10583_v30 }
 0x36f   : > { %v10585_v14 = vpop.f32.mrf.mxu1  ;;  %v6694_v32 = vpop.f32.mrf.mxu0 }
 0x371   : > { %v10587_v11 = vpop.f32.mrf.mxu1  ;;  %v6695_v53 = vpop.f32.mrf.mxu0 }
 0x375   : > { %v6732_v34 = vpop.f32.mrf.mxu1 }
 0x377   : > { %v6733_v41 = vpop.f32.mrf.mxu1 }
 0x378   : > { %v6734_v36 = vadd.f32 %v6733_v41, %v6732_v34 }
 0x38e   : > { %v10589_v50 = vpop.f32.mrf.mxu0 }
 0x38f   : > { %10676 = vst [vmem:[#allocation9_spill] sm:$0xff] %v10589_v50 }
 0x390   : > { %v10591_v4 = vpop.f32.mrf.mxu0 }
 0x391   : > { %10677 = vst [vmem:[#allocation10_spill] sm:$0xff] %v10591_v4  ;;  %v6544_v4 = vadd.f32 %v6543_v33, %v6542_v37  ;;  %v6696_v37 = vadd.f32 %v6695_v53, %v6694_v32 }
 0x393   : > { %v10593_v35 = vpop.f32.mrf.mxu1  ;;  %v6770_v23 = vpop.f32.mrf.mxu0 }
 0x394   : > { %10678 = vst [vmem:[#allocation11_spill] sm:$0xff] %v10593_v35  ;;  %v6503_v35 = vadd.f32 %v6502_v21, %v6501_v17  ;;  %v6655_v21 = vadd.f32 %v6654_v18, %v10581_v7 }
 0x395   : > { %v10595_v47 = vpop.f32.mrf.mxu1  ;;  %v6771_v9 = vpop.f32.mrf.mxu0 }
 0x396   : > { %10679 = vst [vmem:[#allocation12_spill] sm:$0xff] %v10595_v47 }
 0x399   : > { %v6808_v29 = vpop.f32.mrf.mxu1 }
 0x39b   : > { %v6809_v24 = vpop.f32.mrf.mxu1  ;;  %v10689_v30 = vld [vmem:[#allocation11_spill] sm:$0xff] }
 0x39c   : > { %v6810_v18 = vadd.f32 %v6809_v24, %v6808_v29 }
 0x39d   : > { %v10690_v52 = vld [vmem:[#allocation12_spill] sm:$0xff] }
 0x39e   : > { %v6807_v34 = vadd.f32 %v10690_v52, %v10689_v30 }
 0x3b2   : > { %v10597_v42 = vpop.f32.mrf.mxu0 }
 0x3b3   : > { %10680 = vst [vmem:[#allocation13_spill] sm:$0xff] %v10597_v42  ;;  %v6506_v42 = vadd.f32 %v6505_v44, %v6504_v55 }
 0x3b4   : > { %v10599_v12 = vpop.f32.mrf.mxu0 }
 0x3b5   : > { %10681 = vst [vmem:[#allocation14_spill] sm:$0xff] %v10599_v12  ;;  %v6465_v12 = vadd.f32 %v6464_v51, %v6463_v25  ;;  %v6617_v25 = vadd.f32 %v6616_v15, %v6615_v48  ;;  %v6658_v51 = vadd.f32 %v6657_v49, %v6656_v28  ;;  %v6731_v48 = vadd.f32 %v10587_v11, %v10585_v14  ;;  %v10687_v49 = vld [vmem:[#allocation9_spill] sm:$0xff] }
 0x3b6   : > { %v6772_v15 = vadd.f32 %v6771_v9, %v6770_v23 }
 0x3b7   : > { %v10601_v54 = vpop.f32.mrf.mxu1  ;;  %v6846_v3 = vpop.f32.mrf.mxu0 }
 0x3b8   : > { %10682 = vst [vmem:[#allocation15_spill] sm:$0xff] %v10601_v54  ;;  %v4657_v54 = vadd.f32 %v6430_v58, %v6392_v13 }
 0x3b9   : > { %v10603_v20 = vpop.f32.mrf.mxu1  ;;  %v6847_v57 = vpop.f32.mrf.mxu0 }
 0x3ba   : > { %10683 = vst [vmem:[#allocation16_spill] sm:$0xff] %v10603_v20  ;;  %v4652_v20 = vadd.f32 %v6427_v0, %v6389_v22  ;;  %v4732_v47 = vadd.f32 %v6468_v39, %v4657_v54  ;;  %v6848_v41 = vadd.f32 %v6847_v57, %v6846_v3 }
 0x3bc   : > { %v4727_v10 = vadd.f32 %v6465_v12, %v4652_v20  ;;  %v4807_v46 = vadd.f32 %v6506_v42, %v4732_v47  ;;  %v10691_v20 = vld [vmem:[#allocation13_spill] sm:$0xff]  ;;  %v10692_v58 = vld [vmem:[#allocation14_spill] sm:$0xff] }
 0x3bd   : > { %v6884_v62 = vpop.f32.mrf.mxu1  ;;  %v6845_v14 = vadd.f32 %v10692_v58, %v10691_v20 }
 0x3be   : > { %v4802_v19 = vadd.f32 %v6503_v35, %v4727_v10  ;;  %v4882_v31 = vadd.f32 %v6544_v4, %v4807_v46  ;;  %v10688_v4 = vld [vmem:[#allocation10_spill] sm:$0xff] }
 0x3bf   : > { %v6885_v8 = vpop.f32.mrf.mxu1  ;;  %v6769_v7 = vadd.f32 %v10688_v4, %v10687_v49  ;;  %v10693_v39 = vld [vmem:[#allocation15_spill] sm:$0xff] }
 0x3c0   : > { %v4877_v27 = vadd.f32 %v6541_v61, %v4802_v19  ;;  %v4957_v59 = vadd.f32 %v6582_v6, %v4882_v31  ;;  %v6886_v11 = vadd.f32 %v6885_v8, %v6884_v62 }
 0x3c1   : > { %v10694_v29 = vld [vmem:[#allocation16_spill] sm:$0xff] }
 0x3c2   : > { %v4952_v44 = vadd.f32 %v6579_v2, %v4877_v27  ;;  %v6883_v24 = vadd.f32 %v10694_v29, %v10693_v39 }
 0x3c4   : > { %v5027_v47 = vadd.f32 %v6617_v25, %v4952_v44 }
 0x3c6   : > { %v5102_v40 = vadd.f32 %v6655_v21, %v5027_v47 }
 0x3d6   : > { %v10605_v16 = vpop.f32.mrf.mxu0 }
 0x3d7   : > { %10684 = vst [vmem:[#allocation17_spill] sm:$0xff] %v10605_v16 }
 0x3d8   : > { %v10607_v5 = vpop.f32.mrf.mxu0 }
 0x3d9   : > { %10685 = vst [vmem:[#allocation18_spill] sm:$0xff] %v10607_v5 }
 0x3db   : > { %v10609_v60 = vpop.f32.mrf.mxu1  ;;  %v6922_v16 = vpop.f32.mrf.mxu0 }
 0x3dc   : > { %10686 = vst [vmem:[#allocation19_spill] sm:$0xff] %v10609_v60  ;;  %v6620_v60 = vadd.f32 %v6619_v38, %v6618_v1  ;;  %v5177_v38 = vadd.f32 %v6693_v45, %v5102_v40 }
 0x3dd   : > { %v6958_v43 = vpop.f32.mrf.mxu1  ;;  %v6923_v5 = vpop.f32.mrf.mxu0 }
 0x3de   : > { %v5032_v17 = vadd.f32 %v6620_v60, %v4957_v59  ;;  %v5252_v35 = vadd.f32 %v6731_v48, %v5177_v38  ;;  %v6924_v60 = vadd.f32 %v6923_v5, %v6922_v16  ;;  %v10695_v61 = vld [vmem:[#allocation17_spill] sm:$0xff] }
 0x3e0   : > { %v5107_v26 = vadd.f32 %v6658_v51, %v5032_v17  ;;  %v5327_v12 = vadd.f32 %v6769_v7, %v5252_v35  ;;  %v10696_v6 = vld [vmem:[#allocation18_spill] sm:$0xff] }
 0x3e1   : > { %v6960_v50 = vpop.f32.mrf.mxu1  ;;  %v6921_v3 = vadd.f32 %v10696_v6, %v10695_v61 }
 0x3e2   : > { %v5182_v1 = vadd.f32 %v6696_v37, %v5107_v26  ;;  %v5402_v13 = vadd.f32 %v6807_v34, %v5327_v12 }
 0x3e3   : > { %v6961_v33 = vpop.f32.mrf.mxu1  ;;  %v10697_v62 = vld [vmem:[#allocation19_spill] sm:$0xff] }
 0x3e4   : > { %v5257_v28 = vadd.f32 %v6734_v36, %v5182_v1  ;;  %v5477_v10 = vadd.f32 %v6845_v14, %v5402_v13  ;;  %v6962_v57 = vadd.f32 %v6961_v33, %v6960_v50  ;;  %v6959_v8 = vadd.f32 %v6958_v43, %v10697_v62  ;;  %v6137_v14 = vld [vmem:[#allocation3 + $0x8] sm:$0x3] }
 0x3e6   : > { %v5332_v42 = vadd.f32 %v6772_v15, %v5257_v28  ;;  %v5552_v2 = vadd.f32 %v6883_v24, %v5477_v10 }
 0x3e8   : > { %v5407_v54 = vadd.f32 %v6810_v18, %v5332_v42  ;;  %v5627_v44 = vadd.f32 %v6921_v3, %v5552_v2  ;;  %v6136_v18 = vld [vmem:[#allocation3] sm:$0xff]  ;;  %v6031_v42 = vpop.permute.xlu0 %6030 }
 0x3e9   : > { %7145 = vmatprep.mubr.msk.f32.mxu1 %vm6150_vm12, %v6136_v18 }
 0x3ea   : > { %v5482_v0 = vadd.f32 %v6848_v41, %v5407_v54  ;;  %v5702_v47 = vadd.f32 %v6959_v8, %v5627_v44 }
 0x3ec   : > { %v5557_v46 = vadd.f32 %v6886_v11, %v5482_v0  ;;  %v6021_v20 = vpop.permute.xlu0 %6020 }
 0x3ee   : > { %v5632_v27 = vadd.f32 %v6924_v60, %v5557_v46 }
 0x3f0   : > { %v5707_v17 = vadd.f32 %v6962_v57, %v5632_v27  ;;  %v6148_v11 = vpop.permute.xlu0 %6147 }
 0x3fa   : > { %v6995_v55 = vpop.f32.mrf.mxu0 }
 0x3fc   : > { %v6996_v63 = vpop.f32.mrf.mxu0 }
 0x3fd   : > { %v6997_v21 = vadd.f32 %v6996_v63, %v6995_v55  ;;  %v6011_v55 = vld [vmem:[%s10652_s3 + $0x8] sm:$0xff]  ;;  %v6012_v63 = vld [vmem:[%s10652_s3 + $0x10] sm:$0xff] }
 0x3ff   : > { %v7033_v56 = vpop.f32.mrf.mxu1  ;;  %v6998_v32 = vpop.f32.mrf.mxu0  ;;  %v5777_v33 = vadd.f32 %v6997_v21, %v5702_v47 }
 0x401   : > { %v7034_v53 = vpop.f32.mrf.mxu1  ;;  %v6999_v23 = vpop.f32.mrf.mxu0 }
 0x402   : > { %v7000_v59 = vadd.f32 %v6999_v23, %v6998_v32  ;;  %v7035_v45 = vadd.f32 %v7034_v53, %v7033_v56  ;;  %v6013_v56 = vld [vmem:[%s10652_s3 + $0x18] sm:$0xff]  ;;  %v6036_v53 = vpop.permute.xlu1 %6035 }
 0x404   : > { %v5782_v26 = vadd.f32 %v7000_v59, %v5707_v17  ;;  %v5852_v15 = vadd.f32 %v7035_v45, %v5777_v33 }
 0x405   : > { %v7036_v9 = vpop.f32.mrf.mxu1 }
 0x406   : > { %v6026_v12 = vpop.permute.xlu1 %6025 }
 0x407   : > { %v7037_v31 = vpop.f32.mrf.mxu1 }
 0x408   : > { %v7038_v16 = vadd.f32 %v7037_v31, %v7036_v9 }
 0x40a   : > { %v5857_v40 = vadd.f32 %v7038_v16, %v5782_v26  ;;  %v6143_v13 = vpop.permute.xlu1 %6142 }
 0x41e   : > { %v7071_v22 = vpop.f32.mrf.mxu0 }
 0x420   : > { %v7072_v19 = vpop.f32.mrf.mxu0 }
 0x421   : > { %v7073_v1 = vadd.f32 %v7072_v19, %v7071_v22 }
 0x422   : > { %v7074_v25 = vpop.f32.mrf.mxu0  ;;  %v7109_v51 = vpop.f32.mrf.mxu1 }
 0x423   : > { %v5927_v49 = vadd.f32 %v7073_v1, %v5852_v15 }
 0x424   : > { %v7075_v5 = vpop.f32.mrf.mxu0  ;;  %v7110_v37 = vpop.f32.mrf.mxu1 }
 0x425   : > { %v7076_v36 = vadd.f32 %v7075_v5, %v7074_v25  ;;  %v7111_v38 = vadd.f32 %v7110_v37, %v7109_v51 }
 0x426   : > { %v7112_v50 = vpop.f32.mrf.mxu1 }
 0x427   : > { %v5932_v43 = vadd.f32 %v7076_v36, %v5857_v40  ;;  %v6002_v7 = vadd.f32 %v7111_v38, %v5927_v49 }
 0x428   : > { %v7113_v48 = vpop.f32.mrf.mxu1 }
 0x429   : > { %v7114_v28 = vadd.f32 %v7113_v48, %v7112_v50 }
 0x42b   : > { %v6007_v4 = vadd.f32 %v7114_v28, %v5932_v43 }
 0x42d   : > { %7127 = vmatprep.subr.mxu0 %v6007_v4 }
 0x42e   : > { %7128 = vmatpush3.msra.mxu0 %v6007_v4 }
 0x42f   : > { %7129 = vmatprep.subr.mxu0 %v6002_v7 }
 0x430   : > { %7130 = vmatpush3.msra.mxu0 %v6002_v7 }
 0x431   : > { %7132 = vmatmul.mubr.msk.f32.vlgmr.msra.gmra.mxu0 %vm6038_vm11, %v6011_v55 }
 0x432   : > { %7134 = vmatprep.mubr.msk.f32.mxu0 %vm6038_vm11, %v6012_v63 }
 0x435   : > { %7135 = vmatmul.mubr.msk.f32.gmra.mxu0 %vm6038_vm11, %v6013_v56 }
 0x4f1   : > { %v7133_v32 = vpop.f32.mrf.mxu0 }
 0x4f2   : > { %v6123_v54 = vadd.f32 %v7133_v32, %v6026_v12 }
 0x4f3   : > { %v6117_v35 = vpop.f32.mrf.mxu0 }
 0x4f4   : > { %v6118_v58 = vadd.f32 %v6117_v35, %v6021_v20 }
 0x4f5   : > { %v7136_v30 = vpop.f32.mrf.mxu0 }
 0x4f6   : > { %v6133_v52 = vadd.f32 %v7136_v30, %v6036_v53 }
 0x4f7   : > { %v6127_v34 = vpop.f32.mrf.mxu0 }
 0x4f8   : > { %v6128_v41 = vadd.f32 %v6127_v34, %v6031_v42  ;;  %7137 = vmatprep.subr.mxu1 %v6133_v52 }
 0x4f9   : > { %7138 = vmatpush3.msra.mxu1 %v6133_v52 }
 0x4fa   : > { %7139 = vmatprep.subr.mxu1 %v6128_v41 }
 0x4fb   : > { %7140 = vmatpush3.msra.mxu1 %v6128_v41 }
 0x4fc   : > { %7141 = vmatprep.subr.mxu1 %v6123_v54 }
 0x4fd   : > { %7142 = vmatpush3.msra.mxu1 %v6123_v54 }
 0x4fe   : > { %7143 = vmatprep.subr.mxu1 %v6118_v58 }
 0x4ff   : > { %7144 = vmatpush3.msra.mxu1 %v6118_v58 }
 0x500   : > { %7146 = vmatmul.mubr.msk.f32.vlgmr.msra.gmra.mxu1 %vm6150_vm12, %v6137_v14 }
 0x5c0   : > { %v7147_v23 = vpop.f32.mrf.mxu1 }
 0x5c1   : > { %v6229_v9 = vadd.f32 %v7147_v23, %v6148_v11 }
 0x5c2   : > { %v6223_v0 = vpop.f32.mrf.mxu1 }
 0x5c3   : > { %6235 = vst.msk [vmem:[%s281_s14 + $0x8] sm:$0x3] %vm6234_vm13, %v6229_v9  ;;  %v6224_v39 = vadd.f32 %v6223_v0, %v6143_v13 }
 0x5c5   : > { %6233 = vst.msk [vmem:[%s281_s14] sm:$0xff] %vm6232_vm14, %v6224_v39 }
 0x5c6 PF: > { %s18_s21 = sadd.s32 1, %s8051_s21  }
 0x5c7   : > { %p15_p2 = scmp.ge.s32.totalorder %s18_s21, 4  }
 0x5c9   :  { %17 = sbr.rel (!%p15_p2) target bundleno = 2 (0x2), region = 83 }
 0x5ce   :  { %6257 = vsyncpa [#allocation4], 1 }
 0x5cf   :  { %6259 = vsyncpa [#allocation4 + $0x1], 1 }
 0x5d0   :  { %6260 = vsyncpa [#allocation6], 1 }

</bundles_post_ra>
